<compile_context>
chip_gen: v7x
topology: tpu7x:2x2x1
jax: 0.10.0
libtpu: 0.0.40
codegen_flags: <defaults>
</compile_context>

<pallas_src>
import numpy as np
import jax
import jax.numpy as jnp
from jax.experimental import pallas as pl
from jax.experimental.pallas import tpu as pltpu


# ----------------------------------------------------------------------------
# Fused decoder kernel: fc -> deconv1(relu) -> deconv2(relu) -> deconv3(sigmoid)
# One grid step == one batch element; everything stays in VMEM.
# ----------------------------------------------------------------------------
def _decoder_kernel(z_ref, wfcb_ref, bfcb_ref,
                    a1_ref, m1_ref, b1_ref,
                    a2_ref, m2_ref, b2_ref,
                    a3_ref, m3_ref, b3_ref,
                    out_ref):
    f32 = jnp.float32

    # fc folded into a single (4, 4*latent) @ (4*latent, 256) matmul that
    # directly yields the layer-1 input in (H=4, W*C=256) channels-last layout
    # (no in-kernel reshape/transpose of the fc output needed).
    x = jnp.dot(z_ref[0], wfcb_ref[...], preferred_element_type=f32) + bfcb_ref[...]

    def deconv(x, a_ref, m_ref, b_ref):
        acc = None
        for ky in range(3):
            t = jnp.dot(x, m_ref[ky], preferred_element_type=f32)    # (Hin,  Wout*Cout)
            t = jnp.dot(a_ref[ky], t, preferred_element_type=f32)    # (Hout, Wout*Cout)
            acc = t if acc is None else acc + t
        return acc + b_ref[...]

    y = jnp.maximum(deconv(x, a1_ref, m1_ref, b1_ref), 0.0)          # (7, 7*64)
    y = jnp.maximum(deconv(y, a2_ref, m2_ref, b2_ref), 0.0)          # (14, 14*32)
    y = deconv(y, a3_ref, m3_ref, b3_ref)                            # (28, 28)
    out_ref[0] = 1.0 / (1.0 + jnp.exp(-y))                           # sigmoid


# ----------------------------------------------------------------------------
# Parameter initialization (PyTorch layouts) and one-time operator-matrix prep
# ----------------------------------------------------------------------------
def init_decoder_params(key, latent_dim=20):
    ks = jax.random.split(key, 8)
    rnd = lambda k, shape, s: s * jax.random.normal(k, shape, jnp.float32)
    return {
        "fc_w": rnd(ks[0], (latent_dim, 64 * 4 * 4), 0.25),
        "fc_b": rnd(ks[1], (64 * 4 * 4,), 0.10),
        "w1": rnd(ks[2], (64, 64, 3, 3), 0.12),   # ConvTranspose2d weight (Cin,Cout,kh,kw)
        "b1": rnd(ks[3], (64,), 0.10),
        "w2": rnd(ks[4], (64, 32, 3, 3), 0.12),
        "b2": rnd(ks[5], (32,), 0.10),
        "w3": rnd(ks[6], (32, 1, 3, 3), 0.16),
        "b3": rnd(ks[7], (1,), 0.10),
    }


def _deconv_ops(w, b, hin, win, output_padding):
    """Operator matrices for ConvTranspose2d(k=3, stride=2, padding=1, op).

    out[oy, ox, co] += X[iy, ix, ci] * W[ci, co, ky, kx]
        with oy = 2*iy - 1 + ky,  ox = 2*ix - 1 + kx  (bounds-checked).
    Grouped by ky:  Y = sum_ky A_ky @ X @ M_ky  in (H, W*C) layout.
    """
    w = np.asarray(w, np.float32)                       # (Cin, Cout, 3, 3)
    cin, cout, k, _ = w.shape
    hout = 2 * hin - 1 + output_padding
    wout = 2 * win - 1 + output_padding
    A = np.zeros((k, hout, hin), np.float32)
    M = np.zeros((k, win * cin, wout * cout), np.float32)
    for ky in range(k):
        for iy in range(hin):
            oy = 2 * iy - 1 + ky
            if 0 <= oy < hout:
                A[ky, oy, iy] = 1.0
        for ix in range(win):
            for kx in range(k):
                ox = 2 * ix - 1 + kx
                if 0 <= ox < wout:
                    M[ky, ix * cin:(ix + 1) * cin, ox * cout:(ox + 1) * cout] = w[:, :, ky, kx]
    brow = np.tile(np.asarray(b, np.float32), wout)[None, :]   # (1, Wout*Cout)
    return jnp.asarray(A), jnp.asarray(M), jnp.asarray(brow)


def prepare_decoder_ops(params, latent_dim=20):
    # fc output column c*16 + y*4 + x (PyTorch view(-1,64,4,4)) is re-indexed to
    # channels-last order y*256 + x*64 + c, and the weight is stacked per output
    # row so the kernel gets the layer-1 input via one (4, 4L) @ (4L, 256) matmul.
    idx = np.array([c * 16 + y * 4 + x
                    for y in range(4) for x in range(4) for c in range(64)], np.int32)
    wfc_perm = np.asarray(params["fc_w"], np.float32)[:, idx]          # (L, 1024)
    bfc_perm = np.asarray(params["fc_b"], np.float32)[idx]             # (1024,)
    L = latent_dim
    wfc_blk = wfc_perm.reshape(L, 4, 256).transpose(1, 0, 2).reshape(4 * L, 256)
    bfc_blk = bfc_perm.reshape(4, 256)

    a1, m1, b1 = _deconv_ops(params["w1"], params["b1"], 4, 4, 0)      # 4x4   -> 7x7
    a2, m2, b2 = _deconv_ops(params["w2"], params["b2"], 7, 7, 1)      # 7x7   -> 14x14
    a3, m3, b3 = _deconv_ops(params["w3"], params["b3"], 14, 14, 1)    # 14x14 -> 28x28
    return {"wfcb": jnp.asarray(wfc_blk), "bfcb": jnp.asarray(bfc_blk),
            "a1": a1, "m1": m1, "b1": b1,
            "a2": a2, "m2": m2, "b2": b2,
            "a3": a3, "m3": m3, "b3": b3}


# ----------------------------------------------------------------------------
# Forward pass: one fused pallas_call over a batch-parallel grid
# ----------------------------------------------------------------------------
@jax.jit
def decoder_forward(z, ops):
    B, latent = z.shape
    # block-diagonal expansion of z so fc is a plain 2-D matmul inside the kernel
    zblk = (jnp.eye(4, dtype=z.dtype)[None, :, :, None] *
            z[:, None, None, :]).reshape(B, 4, 4 * latent)

    operands = (zblk, ops["wfcb"], ops["bfcb"],
                ops["a1"], ops["m1"], ops["b1"],
                ops["a2"], ops["m2"], ops["b2"],
                ops["a3"], ops["m3"], ops["b3"])

    def full(arr):  # whole-array block, resident in VMEM across the batch grid
        n = arr.ndim
        return pl.BlockSpec(arr.shape, lambda b: (0,) * n)

    mm = lambda m, k, n: 2 * m * k * n
    flops_per_sample = (mm(4, 4 * latent, 256)
                        + 3 * (mm(4, 256, 448) + mm(7, 4, 448))
                        + 3 * (mm(7, 448, 448) + mm(14, 7, 448))
                        + 3 * (mm(14, 448, 28) + mm(28, 14, 28)))
    bytes_accessed = sum(int(np.prod(a.shape)) * 4 for a in operands) + B * 28 * 28 * 4

    out = pl.pallas_call(
        _decoder_kernel,
        out_shape=jax.ShapeDtypeStruct((B, 28, 28), jnp.float32),
        grid=(B,),
        in_specs=[pl.BlockSpec((1, 4, 4 * latent), lambda b: (b, 0, 0))]
                 + [full(a) for a in operands[1:]],
        out_specs=pl.BlockSpec((1, 28, 28), lambda b: (b, 0, 0)),
        compiler_params=pltpu.CompilerParams(
            dimension_semantics=("parallel",),          # v7x megacore: split batch
            vmem_limit_bytes=32 * 1024 * 1024),
        cost_estimate=pl.CostEstimate(
            flops=B * flops_per_sample,
            transcendentals=B * 28 * 28,
            bytes_accessed=bytes_accessed),
    )(*operands)
    return out.reshape(B, 1, 28, 28)                    # NCHW, Cout = 1


# ----------------------------------------------------------------------------
# Pure-JAX (XLA) reference for correctness checking
# ----------------------------------------------------------------------------
def _conv_transpose_ref(x_nhwc, w, b, stride, padding, output_padding):
    B, H, W, Cin = x_nhwc.shape
    Cout, k = w.shape[1], w.shape[2]
    Hd, Wd = (H - 1) * stride + 1, (W - 1) * stride + 1
    xd = jnp.zeros((B, Hd, Wd, Cin), x_nhwc.dtype).at[:, ::stride, ::stride, :].set(x_nhwc)
    lo = k - 1 - padding
    hi = k - 1 - padding + output_padding
    xp = jnp.pad(xd, ((0, 0), (lo, hi), (lo, hi), (0, 0)))
    Hout, Wout = Hd + lo + hi - k + 1, Wd + lo + hi - k + 1
    wc = jnp.transpose(jnp.flip(w, (2, 3)), (2, 3, 0, 1))            # (k,k,Cin,Cout)
    y = jnp.zeros((B, Hout, Wout, Cout), jnp.float32) + b
    for kh in range(k):
        for kw in range(k):
            y = y + jnp.einsum("bhwc,cd->bhwd",
                               xp[:, kh:kh + Hout, kw:kw + Wout, :], wc[kh, kw],
                               precision=jax.lax.Precision.HIGHEST)
    return y


@jax.jit
def decoder_forward_ref(z, params):
    B = z.shape[0]
    h = jnp.dot(z, params["fc_w"], precision=jax.lax.Precision.HIGHEST) + params["fc_b"]
    x = jnp.transpose(h.reshape(B, 64, 4, 4), (0, 2, 3, 1))
    x = jax.nn.relu(_conv_transpose_ref(x, params["w1"], params["b1"], 2, 1, 0))
    x = jax.nn.relu(_conv_transpose_ref(x, params["w2"], params["b2"], 2, 1, 1))
    x = jax.nn.sigmoid(_conv_transpose_ref(x, params["w3"], params["b3"], 2, 1, 1))
    return jnp.transpose(x, (0, 3, 1, 2))


if __name__ == "__main__":
    key = jax.random.PRNGKey(0)
    k_param, k_z = jax.random.split(key)
    latent_dim = 20

    params = init_decoder_params(k_param, latent_dim)
    ops = prepare_decoder_ops(params, latent_dim)
    z = jax.random.normal(k_z, (2, latent_dim), jnp.float32)

    x_hat = decoder_forward(z, ops)
    jax.block_until_ready(x_hat)

    assert x_hat.shape == (2, 1, 28, 28), x_hat.shape
    assert x_hat.dtype == jnp.float32
    assert bool(jnp.all(jnp.isfinite(x_hat)))
    assert bool(jnp.all((x_hat >= 0.0) & (x_hat <= 1.0)))   # sigmoid range

    # cross-check the fused Pallas kernel against the plain-XLA reference
    x_ref = decoder_forward_ref(z, params)
    max_diff = float(jnp.max(jnp.abs(x_hat - x_ref)))
    assert max_diff < 2e-3, max_diff

    print("KERNEL_OK")
</pallas_src>

<mosaic_0001>
module attributes {stable_mosaic.version = 11 : i64} {
  func.func @_decoder_kernel(%arg0: i32, %arg1: memref<1x4x80xf32, #tpu.memory_space<vmem>>, %arg2: memref<80x256xf32, #tpu.memory_space<vmem>>, %arg3: memref<4x256xf32, #tpu.memory_space<vmem>>, %arg4: memref<3x7x4xf32, #tpu.memory_space<vmem>>, %arg5: memref<3x256x448xf32, #tpu.memory_space<vmem>>, %arg6: memref<1x448xf32, #tpu.memory_space<vmem>>, %arg7: memref<3x14x7xf32, #tpu.memory_space<vmem>>, %arg8: memref<3x448x448xf32, #tpu.memory_space<vmem>>, %arg9: memref<1x448xf32, #tpu.memory_space<vmem>>, %arg10: memref<3x28x14xf32, #tpu.memory_space<vmem>>, %arg11: memref<3x448x28xf32, #tpu.memory_space<vmem>>, %arg12: memref<1x28xf32, #tpu.memory_space<vmem>>, %arg13: memref<1x28x28xf32, #tpu.memory_space<vmem>>) attributes {dimension_semantics = [#tpu.dimension_semantics<parallel>], iteration_bounds = array<i64: 2>, scalar_prefetch = 0 : i64, scratch_operands = 0 : i64, tpu.core_type = #tpu.core_type<tc>, window_params = [{transform_indices = @transform_0, window_bounds = array<i64: 1, 4, 80>}, {pipeline_mode = #tpu.pipeline_mode<synchronous>, transform_indices = @transform_1, window_bounds = array<i64: 80, 256>}, {pipeline_mode = #tpu.pipeline_mode<synchronous>, transform_indices = @transform_2, window_bounds = array<i64: 4, 256>}, {pipeline_mode = #tpu.pipeline_mode<synchronous>, transform_indices = @transform_3, window_bounds = array<i64: 3, 7, 4>}, {pipeline_mode = #tpu.pipeline_mode<synchronous>, transform_indices = @transform_4, window_bounds = array<i64: 3, 256, 448>}, {pipeline_mode = #tpu.pipeline_mode<synchronous>, transform_indices = @transform_5, window_bounds = array<i64: 1, 448>}, {pipeline_mode = #tpu.pipeline_mode<synchronous>, transform_indices = @transform_6, window_bounds = array<i64: 3, 14, 7>}, {pipeline_mode = #tpu.pipeline_mode<synchronous>, transform_indices = @transform_7, window_bounds = array<i64: 3, 448, 448>}, {pipeline_mode = #tpu.pipeline_mode<synchronous>, transform_indices = @transform_8, window_bounds = array<i64: 1, 448>}, {pipeline_mode = #tpu.pipeline_mode<synchronous>, transform_indices = @transform_9, window_bounds = array<i64: 3, 28, 14>}, {pipeline_mode = #tpu.pipeline_mode<synchronous>, transform_indices = @transform_10, window_bounds = array<i64: 3, 448, 28>}, {pipeline_mode = #tpu.pipeline_mode<synchronous>, transform_indices = @transform_11, window_bounds = array<i64: 1, 28>}, {transform_indices = @transform_12, window_bounds = array<i64: 1, 28, 28>}]} {
    %c0 = arith.constant 0 : index
    %c0_0 = arith.constant 0 : index
    %c0_1 = arith.constant 0 : index
    %0 = vector.load %arg1[%c0, %c0_0, %c0_1] : memref<1x4x80xf32, #tpu.memory_space<vmem>>, vector<1x4x80xf32>
    %1 = vector.shape_cast %0 : vector<1x4x80xf32> to vector<4x80xf32>
    %c0_2 = arith.constant 0 : index
    %c0_3 = arith.constant 0 : index
    %2 = vector.load %arg2[%c0_2, %c0_3] : memref<80x256xf32, #tpu.memory_space<vmem>>, vector<80x256xf32>
    %cst = arith.constant dense<0.000000e+00> : vector<4x256xf32>
    %3 = tpu.matmul %1, %2, %cst {dimension_numbers = #tpu.dot_dimension_numbers<[1], [0], [0], [1], [0, 0, 1, 1], [], []>} : vector<4x80xf32>, vector<80x256xf32>, vector<4x256xf32> -> vector<4x256xf32>
    %c0_4 = arith.constant 0 : index
    %c0_5 = arith.constant 0 : index
    %4 = vector.load %arg3[%c0_4, %c0_5] : memref<4x256xf32, #tpu.memory_space<vmem>>, vector<4x256xf32>
    %5 = arith.addf %3, %4 : vector<4x256xf32>
    %c0_6 = arith.constant 0 : index
    %c0_7 = arith.constant 0 : index
    %c0_8 = arith.constant 0 : index
    %6 = vector.load %arg5[%c0_6, %c0_7, %c0_8] : memref<3x256x448xf32, #tpu.memory_space<vmem>>, vector<1x256x448xf32>
    %7 = vector.shape_cast %6 : vector<1x256x448xf32> to vector<256x448xf32>
    %cst_9 = arith.constant dense<0.000000e+00> : vector<4x448xf32>
    %8 = tpu.matmul %5, %7, %cst_9 {dimension_numbers = #tpu.dot_dimension_numbers<[1], [0], [0], [1], [0, 0, 1, 1], [], []>} : vector<4x256xf32>, vector<256x448xf32>, vector<4x448xf32> -> vector<4x448xf32>
    %c0_10 = arith.constant 0 : index
    %c0_11 = arith.constant 0 : index
    %c0_12 = arith.constant 0 : index
    %9 = vector.load %arg4[%c0_10, %c0_11, %c0_12] : memref<3x7x4xf32, #tpu.memory_space<vmem>>, vector<1x7x4xf32>
    %10 = vector.shape_cast %9 : vector<1x7x4xf32> to vector<7x4xf32>
    %cst_13 = arith.constant dense<0.000000e+00> : vector<7x448xf32>
    %11 = tpu.matmul %10, %8, %cst_13 {dimension_numbers = #tpu.dot_dimension_numbers<[1], [0], [0], [1], [0, 0, 1, 1], [], []>} : vector<7x4xf32>, vector<4x448xf32>, vector<7x448xf32> -> vector<7x448xf32>
    %c1 = arith.constant 1 : index
    %c0_14 = arith.constant 0 : index
    %c0_15 = arith.constant 0 : index
    %12 = vector.load %arg5[%c1, %c0_14, %c0_15] : memref<3x256x448xf32, #tpu.memory_space<vmem>>, vector<1x256x448xf32>
    %13 = vector.shape_cast %12 : vector<1x256x448xf32> to vector<256x448xf32>
    %cst_16 = arith.constant dense<0.000000e+00> : vector<4x448xf32>
    %14 = tpu.matmul %5, %13, %cst_16 {dimension_numbers = #tpu.dot_dimension_numbers<[1], [0], [0], [1], [0, 0, 1, 1], [], []>} : vector<4x256xf32>, vector<256x448xf32>, vector<4x448xf32> -> vector<4x448xf32>
    %c1_17 = arith.constant 1 : index
    %c0_18 = arith.constant 0 : index
    %c0_19 = arith.constant 0 : index
    %15 = vector.load %arg4[%c1_17, %c0_18, %c0_19] : memref<3x7x4xf32, #tpu.memory_space<vmem>>, vector<1x7x4xf32>
    %16 = vector.shape_cast %15 : vector<1x7x4xf32> to vector<7x4xf32>
    %cst_20 = arith.constant dense<0.000000e+00> : vector<7x448xf32>
    %17 = tpu.matmul %16, %14, %cst_20 {dimension_numbers = #tpu.dot_dimension_numbers<[1], [0], [0], [1], [0, 0, 1, 1], [], []>} : vector<7x4xf32>, vector<4x448xf32>, vector<7x448xf32> -> vector<7x448xf32>
    %18 = arith.addf %11, %17 : vector<7x448xf32>
    %c2 = arith.constant 2 : index
    %c0_21 = arith.constant 0 : index
    %c0_22 = arith.constant 0 : index
    %19 = vector.load %arg5[%c2, %c0_21, %c0_22] : memref<3x256x448xf32, #tpu.memory_space<vmem>>, vector<1x256x448xf32>
    %20 = vector.shape_cast %19 : vector<1x256x448xf32> to vector<256x448xf32>
    %cst_23 = arith.constant dense<0.000000e+00> : vector<4x448xf32>
    %21 = tpu.matmul %5, %20, %cst_23 {dimension_numbers = #tpu.dot_dimension_numbers<[1], [0], [0], [1], [0, 0, 1, 1], [], []>} : vector<4x256xf32>, vector<256x448xf32>, vector<4x448xf32> -> vector<4x448xf32>
    %c2_24 = arith.constant 2 : index
    %c0_25 = arith.constant 0 : index
    %c0_26 = arith.constant 0 : index
    %22 = vector.load %arg4[%c2_24, %c0_25, %c0_26] : memref<3x7x4xf32, #tpu.memory_space<vmem>>, vector<1x7x4xf32>
    %23 = vector.shape_cast %22 : vector<1x7x4xf32> to vector<7x4xf32>
    %cst_27 = arith.constant dense<0.000000e+00> : vector<7x448xf32>
    %24 = tpu.matmul %23, %21, %cst_27 {dimension_numbers = #tpu.dot_dimension_numbers<[1], [0], [0], [1], [0, 0, 1, 1], [], []>} : vector<7x4xf32>, vector<4x448xf32>, vector<7x448xf32> -> vector<7x448xf32>
    %25 = arith.addf %18, %24 : vector<7x448xf32>
    %c0_28 = arith.constant 0 : index
    %c0_29 = arith.constant 0 : index
    %26 = vector.load %arg6[%c0_28, %c0_29] : memref<1x448xf32, #tpu.memory_space<vmem>>, vector<1x448xf32>
    %27 = vector.broadcast %26 : vector<1x448xf32> to vector<7x448xf32>
    %28 = arith.addf %25, %27 : vector<7x448xf32>
    %cst_30 = arith.constant 0.000000e+00 : f32
    %29 = vector.broadcast %cst_30 : f32 to vector<7x448xf32>
    %30 = arith.maximumf %28, %29 : vector<7x448xf32>
    %c0_31 = arith.constant 0 : index
    %c0_32 = arith.constant 0 : index
    %c0_33 = arith.constant 0 : index
    %31 = vector.load %arg8[%c0_31, %c0_32, %c0_33] : memref<3x448x448xf32, #tpu.memory_space<vmem>>, vector<1x448x448xf32>
    %32 = vector.shape_cast %31 : vector<1x448x448xf32> to vector<448x448xf32>
    %cst_34 = arith.constant dense<0.000000e+00> : vector<7x448xf32>
    %33 = tpu.matmul %30, %32, %cst_34 {dimension_numbers = #tpu.dot_dimension_numbers<[1], [0], [0], [1], [0, 0, 1, 1], [], []>} : vector<7x448xf32>, vector<448x448xf32>, vector<7x448xf32> -> vector<7x448xf32>
    %c0_35 = arith.constant 0 : index
    %c0_36 = arith.constant 0 : index
    %c0_37 = arith.constant 0 : index
    %34 = vector.load %arg7[%c0_35, %c0_36, %c0_37] : memref<3x14x7xf32, #tpu.memory_space<vmem>>, vector<1x14x7xf32>
    %35 = vector.shape_cast %34 : vector<1x14x7xf32> to vector<14x7xf32>
    %cst_38 = arith.constant dense<0.000000e+00> : vector<14x448xf32>
    %36 = tpu.matmul %35, %33, %cst_38 {dimension_numbers = #tpu.dot_dimension_numbers<[1], [0], [0], [1], [0, 0, 1, 1], [], []>} : vector<14x7xf32>, vector<7x448xf32>, vector<14x448xf32> -> vector<14x448xf32>
    %c1_39 = arith.constant 1 : index
    %c0_40 = arith.constant 0 : index
    %c0_41 = arith.constant 0 : index
    %37 = vector.load %arg8[%c1_39, %c0_40, %c0_41] : memref<3x448x448xf32, #tpu.memory_space<vmem>>, vector<1x448x448xf32>
    %38 = vector.shape_cast %37 : vector<1x448x448xf32> to vector<448x448xf32>
    %cst_42 = arith.constant dense<0.000000e+00> : vector<7x448xf32>
    %39 = tpu.matmul %30, %38, %cst_42 {dimension_numbers = #tpu.dot_dimension_numbers<[1], [0], [0], [1], [0, 0, 1, 1], [], []>} : vector<7x448xf32>, vector<448x448xf32>, vector<7x448xf32> -> vector<7x448xf32>
    %c1_43 = arith.constant 1 : index
    %c0_44 = arith.constant 0 : index
    %c0_45 = arith.constant 0 : index
    %40 = vector.load %arg7[%c1_43, %c0_44, %c0_45] : memref<3x14x7xf32, #tpu.memory_space<vmem>>, vector<1x14x7xf32>
    %41 = vector.shape_cast %40 : vector<1x14x7xf32> to vector<14x7xf32>
    %cst_46 = arith.constant dense<0.000000e+00> : vector<14x448xf32>
    %42 = tpu.matmul %41, %39, %cst_46 {dimension_numbers = #tpu.dot_dimension_numbers<[1], [0], [0], [1], [0, 0, 1, 1], [], []>} : vector<14x7xf32>, vector<7x448xf32>, vector<14x448xf32> -> vector<14x448xf32>
    %43 = arith.addf %36, %42 : vector<14x448xf32>
    %c2_47 = arith.constant 2 : index
    %c0_48 = arith.constant 0 : index
    %c0_49 = arith.constant 0 : index
    %44 = vector.load %arg8[%c2_47, %c0_48, %c0_49] : memref<3x448x448xf32, #tpu.memory_space<vmem>>, vector<1x448x448xf32>
    %45 = vector.shape_cast %44 : vector<1x448x448xf32> to vector<448x448xf32>
    %cst_50 = arith.constant dense<0.000000e+00> : vector<7x448xf32>
    %46 = tpu.matmul %30, %45, %cst_50 {dimension_numbers = #tpu.dot_dimension_numbers<[1], [0], [0], [1], [0, 0, 1, 1], [], []>} : vector<7x448xf32>, vector<448x448xf32>, vector<7x448xf32> -> vector<7x448xf32>
    %c2_51 = arith.constant 2 : index
    %c0_52 = arith.constant 0 : index
    %c0_53 = arith.constant 0 : index
    %47 = vector.load %arg7[%c2_51, %c0_52, %c0_53] : memref<3x14x7xf32, #tpu.memory_space<vmem>>, vector<1x14x7xf32>
    %48 = vector.shape_cast %47 : vector<1x14x7xf32> to vector<14x7xf32>
    %cst_54 = arith.constant dense<0.000000e+00> : vector<14x448xf32>
    %49 = tpu.matmul %48, %46, %cst_54 {dimension_numbers = #tpu.dot_dimension_numbers<[1], [0], [0], [1], [0, 0, 1, 1], [], []>} : vector<14x7xf32>, vector<7x448xf32>, vector<14x448xf32> -> vector<14x448xf32>
    %50 = arith.addf %43, %49 : vector<14x448xf32>
    %c0_55 = arith.constant 0 : index
    %c0_56 = arith.constant 0 : index
    %51 = vector.load %arg9[%c0_55, %c0_56] : memref<1x448xf32, #tpu.memory_space<vmem>>, vector<1x448xf32>
    %52 = vector.broadcast %51 : vector<1x448xf32> to vector<14x448xf32>
    %53 = arith.addf %50, %52 : vector<14x448xf32>
    %cst_57 = arith.constant 0.000000e+00 : f32
    %54 = vector.broadcast %cst_57 : f32 to vector<14x448xf32>
    %55 = arith.maximumf %53, %54 : vector<14x448xf32>
    %c0_58 = arith.constant 0 : index
    %c0_59 = arith.constant 0 : index
    %c0_60 = arith.constant 0 : index
    %56 = vector.load %arg11[%c0_58, %c0_59, %c0_60] : memref<3x448x28xf32, #tpu.memory_space<vmem>>, vector<1x448x28xf32>
    %57 = vector.shape_cast %56 : vector<1x448x28xf32> to vector<448x28xf32>
    %cst_61 = arith.constant dense<0.000000e+00> : vector<14x28xf32>
    %58 = tpu.matmul %55, %57, %cst_61 {dimension_numbers = #tpu.dot_dimension_numbers<[1], [0], [0], [1], [0, 0, 1, 1], [], []>} : vector<14x448xf32>, vector<448x28xf32>, vector<14x28xf32> -> vector<14x28xf32>
    %c0_62 = arith.constant 0 : index
    %c0_63 = arith.constant 0 : index
    %c0_64 = arith.constant 0 : index
    %59 = vector.load %arg10[%c0_62, %c0_63, %c0_64] : memref<3x28x14xf32, #tpu.memory_space<vmem>>, vector<1x28x14xf32>
    %60 = vector.shape_cast %59 : vector<1x28x14xf32> to vector<28x14xf32>
    %cst_65 = arith.constant dense<0.000000e+00> : vector<28x28xf32>
    %61 = tpu.matmul %60, %58, %cst_65 {dimension_numbers = #tpu.dot_dimension_numbers<[1], [0], [0], [1], [0, 0, 1, 1], [], []>} : vector<28x14xf32>, vector<14x28xf32>, vector<28x28xf32> -> vector<28x28xf32>
    %c1_66 = arith.constant 1 : index
    %c0_67 = arith.constant 0 : index
    %c0_68 = arith.constant 0 : index
    %62 = vector.load %arg11[%c1_66, %c0_67, %c0_68] : memref<3x448x28xf32, #tpu.memory_space<vmem>>, vector<1x448x28xf32>
    %63 = vector.shape_cast %62 : vector<1x448x28xf32> to vector<448x28xf32>
    %cst_69 = arith.constant dense<0.000000e+00> : vector<14x28xf32>
    %64 = tpu.matmul %55, %63, %cst_69 {dimension_numbers = #tpu.dot_dimension_numbers<[1], [0], [0], [1], [0, 0, 1, 1], [], []>} : vector<14x448xf32>, vector<448x28xf32>, vector<14x28xf32> -> vector<14x28xf32>
    %c1_70 = arith.constant 1 : index
    %c0_71 = arith.constant 0 : index
    %c0_72 = arith.constant 0 : index
    %65 = vector.load %arg10[%c1_70, %c0_71, %c0_72] : memref<3x28x14xf32, #tpu.memory_space<vmem>>, vector<1x28x14xf32>
    %66 = vector.shape_cast %65 : vector<1x28x14xf32> to vector<28x14xf32>
    %cst_73 = arith.constant dense<0.000000e+00> : vector<28x28xf32>
    %67 = tpu.matmul %66, %64, %cst_73 {dimension_numbers = #tpu.dot_dimension_numbers<[1], [0], [0], [1], [0, 0, 1, 1], [], []>} : vector<28x14xf32>, vector<14x28xf32>, vector<28x28xf32> -> vector<28x28xf32>
    %68 = arith.addf %61, %67 : vector<28x28xf32>
    %c2_74 = arith.constant 2 : index
    %c0_75 = arith.constant 0 : index
    %c0_76 = arith.constant 0 : index
    %69 = vector.load %arg11[%c2_74, %c0_75, %c0_76] : memref<3x448x28xf32, #tpu.memory_space<vmem>>, vector<1x448x28xf32>
    %70 = vector.shape_cast %69 : vector<1x448x28xf32> to vector<448x28xf32>
    %cst_77 = arith.constant dense<0.000000e+00> : vector<14x28xf32>
    %71 = tpu.matmul %55, %70, %cst_77 {dimension_numbers = #tpu.dot_dimension_numbers<[1], [0], [0], [1], [0, 0, 1, 1], [], []>} : vector<14x448xf32>, vector<448x28xf32>, vector<14x28xf32> -> vector<14x28xf32>
    %c2_78 = arith.constant 2 : index
    %c0_79 = arith.constant 0 : index
    %c0_80 = arith.constant 0 : index
    %72 = vector.load %arg10[%c2_78, %c0_79, %c0_80] : memref<3x28x14xf32, #tpu.memory_space<vmem>>, vector<1x28x14xf32>
    %73 = vector.shape_cast %72 : vector<1x28x14xf32> to vector<28x14xf32>
    %cst_81 = arith.constant dense<0.000000e+00> : vector<28x28xf32>
    %74 = tpu.matmul %73, %71, %cst_81 {dimension_numbers = #tpu.dot_dimension_numbers<[1], [0], [0], [1], [0, 0, 1, 1], [], []>} : vector<28x14xf32>, vector<14x28xf32>, vector<28x28xf32> -> vector<28x28xf32>
    %75 = arith.addf %68, %74 : vector<28x28xf32>
    %c0_82 = arith.constant 0 : index
    %c0_83 = arith.constant 0 : index
    %76 = vector.load %arg12[%c0_82, %c0_83] : memref<1x28xf32, #tpu.memory_space<vmem>>, vector<1x28xf32>
    %77 = vector.broadcast %76 : vector<1x28xf32> to vector<28x28xf32>
    %78 = arith.addf %75, %77 : vector<28x28xf32>
    %cst_84 = arith.constant 0.000000e+00 : f32
    %79 = vector.broadcast %cst_84 : f32 to vector<28x28xf32>
    %80 = arith.subf %79, %78 : vector<28x28xf32>
    %81 = math.exp %80 : vector<28x28xf32>
    %cst_85 = arith.constant 1.000000e+00 : f32
    %82 = vector.broadcast %cst_85 : f32 to vector<28x28xf32>
    %83 = arith.addf %82, %81 : vector<28x28xf32>
    %cst_86 = arith.constant 1.000000e+00 : f32
    %84 = vector.broadcast %cst_86 : f32 to vector<28x28xf32>
    %85 = arith.divf %84, %83 : vector<28x28xf32>
    %c0_87 = arith.constant 0 : index
    %c0_88 = arith.constant 0 : index
    %c0_89 = arith.constant 0 : index
    %86 = vector.load %arg13[%c0_87, %c0_88, %c0_89] : memref<1x28x28xf32, #tpu.memory_space<vmem>>, vector<1x28x28xf32>
    %87 = vector.shape_cast %86 : vector<1x28x28xf32> to vector<28x28xf32>
    %88 = vector.shape_cast %85 : vector<28x28xf32> to vector<1x28x28xf32>
    tpu.vector_store %arg13[%c0_87, %c0_88, %c0_89], %88 {strides = array<i32>} : memref<1x28x28xf32, #tpu.memory_space<vmem>>, vector<1x28x28xf32>,
    return
  }
  func.func @transform_0(%arg0: i32) -> (i32, i32, i32) {
    %c0_i32 = arith.constant 0 : i32
    %c0_i32_0 = arith.constant 0 : i32
    %c0_i32_1 = arith.constant 0 : i32
    return %arg0, %c0_i32, %c0_i32_0 : i32, i32, i32
  }
  func.func @transform_1(%arg0: i32) -> (i32, i32) {
    %c0_i32 = arith.constant 0 : i32
    %c0_i32_0 = arith.constant 0 : i32
    %c0_i32_1 = arith.constant 0 : i32
    return %c0_i32, %c0_i32_0 : i32, i32
  }
  func.func @transform_2(%arg0: i32) -> (i32, i32) {
    %c0_i32 = arith.constant 0 : i32
    %c0_i32_0 = arith.constant 0 : i32
    %c0_i32_1 = arith.constant 0 : i32
    return %c0_i32, %c0_i32_0 : i32, i32
  }
  func.func @transform_3(%arg0: i32) -> (i32, i32, i32) {
    %c0_i32 = arith.constant 0 : i32
    %c0_i32_0 = arith.constant 0 : i32
    %c0_i32_1 = arith.constant 0 : i32
    %c0_i32_2 = arith.constant 0 : i32
    return %c0_i32, %c0_i32_0, %c0_i32_1 : i32, i32, i32
  }
  func.func @transform_4(%arg0: i32) -> (i32, i32, i32) {
    %c0_i32 = arith.constant 0 : i32
    %c0_i32_0 = arith.constant 0 : i32
    %c0_i32_1 = arith.constant 0 : i32
    %c0_i32_2 = arith.constant 0 : i32
    return %c0_i32, %c0_i32_0, %c0_i32_1 : i32, i32, i32
  }
  func.func @transform_5(%arg0: i32) -> (i32, i32) {
    %c0_i32 = arith.constant 0 : i32
    %c0_i32_0 = arith.constant 0 : i32
    %c0_i32_1 = arith.constant 0 : i32
    return %c0_i32, %c0_i32_0 : i32, i32
  }
  func.func @transform_6(%arg0: i32) -> (i32, i32, i32) {
    %c0_i32 = arith.constant 0 : i32
    %c0_i32_0 = arith.constant 0 : i32
    %c0_i32_1 = arith.constant 0 : i32
    %c0_i32_2 = arith.constant 0 : i32
    return %c0_i32, %c0_i32_0, %c0_i32_1 : i32, i32, i32
  }
  func.func @transform_7(%arg0: i32) -> (i32, i32, i32) {
    %c0_i32 = arith.constant 0 : i32
    %c0_i32_0 = arith.constant 0 : i32
    %c0_i32_1 = arith.constant 0 : i32
    %c0_i32_2 = arith.constant 0 : i32
    return %c0_i32, %c0_i32_0, %c0_i32_1 : i32, i32, i32
  }
  func.func @transform_8(%arg0: i32) -> (i32, i32) {
    %c0_i32 = arith.constant 0 : i32
    %c0_i32_0 = arith.constant 0 : i32
    %c0_i32_1 = arith.constant 0 : i32
    return %c0_i32, %c0_i32_0 : i32, i32
  }
  func.func @transform_9(%arg0: i32) -> (i32, i32, i32) {
    %c0_i32 = arith.constant 0 : i32
    %c0_i32_0 = arith.constant 0 : i32
    %c0_i32_1 = arith.constant 0 : i32
    %c0_i32_2 = arith.constant 0 : i32
    return %c0_i32, %c0_i32_0, %c0_i32_1 : i32, i32, i32
  }
  func.func @transform_10(%arg0: i32) -> (i32, i32, i32) {
    %c0_i32 = arith.constant 0 : i32
    %c0_i32_0 = arith.constant 0 : i32
    %c0_i32_1 = arith.constant 0 : i32
    %c0_i32_2 = arith.constant 0 : i32
    return %c0_i32, %c0_i32_0, %c0_i32_1 : i32, i32, i32
  }
  func.func @transform_11(%arg0: i32) -> (i32, i32) {
    %c0_i32 = arith.constant 0 : i32
    %c0_i32_0 = arith.constant 0 : i32
    %c0_i32_1 = arith.constant 0 : i32
    return %c0_i32, %c0_i32_0 : i32, i32
  }
  func.func @transform_12(%arg0: i32) -> (i32, i32, i32) {
    %c0_i32 = arith.constant 0 : i32
    %c0_i32_0 = arith.constant 0 : i32
    %c0_i32_1 = arith.constant 0 : i32
    return %arg0, %c0_i32, %c0_i32_0 : i32, i32, i32
  }
}

</mosaic_0001>

<bundles_post_ra>
// kernel: decoder_forward.1
= control target key start
LH: loop header
LB: loop body
LE: loop exit
PB: predicated region body
PF: predicated region fallthrough
CT: control target
= control target key end

     0   :  { %s7499_s21 = smov 0   ;;  %s11645_s0 = inlined_call_operand.vmem [shape: f32[2,4,80], index: 0, kind: input, shape index: {}]   ;;  %s11646_s1 = inlined_call_operand.vmem [shape: f32[80,256], index: 1, kind: input, shape index: {}]   ;;  %s11647_s2 = inlined_call_operand.vmem [shape: f32[4,256], index: 2, kind: input, shape index: {}]   ;;  %s11648_s3 = inlined_call_operand.vmem [shape: f32[3,7,4], index: 3, kind: input, shape index: {}]   ;;  %s11649_s4 = inlined_call_operand.vmem [shape: f32[3,256,448], index: 4, kind: input, shape index: {}]   ;;  %s11650_s5 = inlined_call_operand.vmem [shape: f32[1,448], index: 5, kind: input, shape index: {}]   ;;  %s11651_s6 = inlined_call_operand.vmem [shape: f32[3,14,7], index: 6, kind: input, shape index: {}]   ;;  %s11652_s7 = inlined_call_operand.vmem [shape: f32[3,448,448], index: 7, kind: input, shape index: {}]   ;;  %s11653_s8 = inlined_call_operand.vmem [shape: f32[1,448], index: 8, kind: input, shape index: {}]   ;;  %s11654_s9 = inlined_call_operand.vmem [shape: f32[3,28,14], index: 9, kind: input, shape index: {}]   ;;  %s11655_s10 = inlined_call_operand.vmem [shape: f32[3,448,28], index: 10, kind: input, shape index: {}]   ;;  %s11656_s11 = inlined_call_operand.vmem [shape: f32[1,28], index: 11, kind: input, shape index: {}]   ;;  %s11657_s12 = inlined_call_operand.vmem [shape: f32[2,28,28], index: 12, kind: output, shape index: {}]  }
   0x1 LB: > { %s4979_s22 = sadd.s32 4294967295, %s7429_s21   ;;  %p4983_p0 = scmp.ge.s32.totalorder %s7429_s21, 1  ;;  %s7429_s21 = sphi %s7499_s21, %s22_s21  }
   0x2   : > { %p361_p1 = scmp.lt.s32.totalorder %s7429_s21, 3 }
   0x4   : > { %p362_p2 = pnand %p4983_p0, %p361_p1 }
   0x5   : > { %v413_v0 = vld [vmem:[%s11646_s1 + $0x8] sm:$0xff] (!%p362_p2)  ;;  %v415_v1 = vld [vmem:[%s11646_s1 + $0x18] sm:$0xff] (!%p362_p2)  ;;  %v412_v2 = vld [vmem:[%s11646_s1] sm:$0xff] (!%p362_p2)  ;;  %v7431_v7 = vmov (!%p362_p2), 0.0   ;;  %p7546_p3 = scmp.lt.s32.totalorder (!%p362_p2), %s4979_s22, 1  ;;  %vm436_vm0 = vcmask (!%p362_p2), 654336  }
   0x6   : > { %365 = sbr.rel (%p362_p2) target bundleno = 2741 (0xab5), region = 68  ;;  %v6053_v3 = vpack.c.bf16 (!%p362_p2), %v415_v1, %v413_v0  ;;  %v414_v4 = vld [vmem:[%s11646_s1 + $0x10] sm:$0xff] (!%p362_p2)  ;;  %v417_v5 = vld [vmem:[%s11646_s1 + $0x28] sm:$0xff] (!%p362_p2)  ;;  %v419_v6 = vld [vmem:[%s11646_s1 + $0x38] sm:$0xff] (!%p362_p2)  ;;  %504 = vmatprep.mubr.f32.mxu0 (!%p362_p2), %v7431_v7  ;;  %vm1059_vm1 = vcmask (!%p362_p2), 1043456   ;;  %vm1055_vm2 = vcmask (!%p362_p2), 31744  }
   0x7   : > { %v6055_v8 = vpack.c.bf16 (!%p362_p2), %v414_v4, %v412_v2  ;;  %v6057_v9 = vpack.c.bf16 (!%p362_p2), %v419_v6, %v417_v5  ;;  %v416_v10 = vld [vmem:[%s11646_s1 + $0x20] sm:$0xff] (!%p362_p2)  ;;  %v418_v11 = vld [vmem:[%s11646_s1 + $0x30] sm:$0xff] (!%p362_p2)  ;;  %v421_v12 = vld [vmem:[%s11646_s1 + $0x48] sm:$0xff] (!%p362_p2)  ;;  %vm2059_vm3 = vcmask (!%p362_p2), 523264   ;;  %vm2868_vm4 = vcmask (!%p362_p2), 1046528  }
   0x8   : > { %6054 = vmatprep.subr.bf16.mxu0 (!%p362_p2), %v6053_v3  ;;  %v423_v13 = vld [vmem:[%s11646_s1 + $0x58] sm:$0xff] (!%p362_p2)  ;;  %v6059_v14 = vpack.c.bf16 (!%p362_p2), %v418_v11, %v416_v10  ;;  %v420_v16 = vld [vmem:[%s11646_s1 + $0x40] sm:$0xff] (!%p362_p2)  ;;  %v422_v17 = vld [vmem:[%s11646_s1 + $0x50] sm:$0xff] (!%p362_p2)  ;;  %vm2861_vm5 = vcmask (!%p362_p2), 56320   ;;  %vm4365_vm6 = vcmask (!%p362_p2), 113664   ;;  %vm4378_vm7 = vcmask (!%p362_p2), 1045504  }
   0x9   : > { %6056 = vmatpush1.bf16.msra.mxu0 (!%p362_p2), %v6055_v8  ;;  %v6061_v15 = vpack.c.bf16 (!%p362_p2), %v423_v13, %v421_v12  ;;  %v425_v18 = vld [vmem:[%s11646_s1 + $0x68] sm:$0xff] (!%p362_p2)  ;;  %v427_v19 = vld [vmem:[%s11646_s1 + $0x78] sm:$0xff] (!%p362_p2)  ;;  %v6063_v22 = vpack.c.bf16 (!%p362_p2), %v422_v17, %v420_v16  ;;  %v511_v24 = vld [vmem:[%s11649_s4] sm:$0xff] (!%p362_p2)  ;;  %vm7433_vm8 = vmmov (!%p362_p2), 1   ;;  %vm4918_vm10 = vcmask (!%p362_p2), 228352  }
   0xa   : > { %6058 = vmatprep.subr.bf16.mxu0 (!%p362_p2), %v6057_v9  ;;  %v512_v20 = vld [vmem:[%s11649_s4 + $0x8] sm:$0xff] (!%p362_p2)  ;;  %v515_v25 = vld [vmem:[%s11649_s4 + $0x20] sm:$0xff] (!%p362_p2)  ;;  %v6065_v26 = vpack.c.bf16 (!%p362_p2), %v427_v19, %v425_v18  ;;  %v426_v28 = vld [vmem:[%s11646_s1 + $0x70] sm:$0xff] (!%p362_p2)  ;;  %vm4922_vm11 = vcmask (!%p362_p2), 224256  }
   0xb   : > { %v516_v21 = vld [vmem:[%s11649_s4 + $0x28] sm:$0xff] (!%p362_p2)  ;;  %v424_v27 = vld [vmem:[%s11646_s1 + $0x60] sm:$0xff] (!%p362_p2)  ;;  %v6075_v29 = vpack.c.bf16 (!%p362_p2), %v515_v25, %v511_v24  ;;  %v431_v32 = vld [vmem:[%s11646_s1 + $0x98] sm:$0xff] (!%p362_p2) }
   0xc   : > { %v6073_v23 = vpack.c.bf16 (!%p362_p2), %v516_v21, %v512_v20  ;;  %v520_v30 = vld [vmem:[%s11649_s4 + $0x48] sm:$0xff] (!%p362_p2)  ;;  %v519_v35 = vld [vmem:[%s11649_s4 + $0x40] sm:$0xff] (!%p362_p2)  ;;  %v6067_v37 = vpack.c.bf16 (!%p362_p2), %v426_v28, %v424_v27  ;;  %v430_v43 = vld [vmem:[%s11646_s1 + $0x90] sm:$0xff] (!%p362_p2) }
   0xd   : > { %6060 = vmatpush1.bf16.msra.mxu0 %v6059_v14  ;;  %s11662_s22 = smov (!%p7546_p3, %s4979_s22), 1  ;;  %v429_v31 = vld [vmem:[%s11646_s1 + $0x88] sm:$0xff]  ;;  %v523_v36 = vld [vmem:[%s11649_s4 + $0x60] sm:$0xff]  ;;  %v514_v46 = vld [vmem:[%s11649_s4 + $0x18] sm:$0xff] }
   0xe   : > { %6062 = vmatprep.subr.bf16.mxu0 %v6061_v15  ;;  %6074 = vmatprep.subr.bf16.mxu1 %v6073_v23  ;;  %v524_v33 = vld [vmem:[%s11649_s4 + $0x68] sm:$0xff]  ;;  %v6079_v38 = vpack.c.bf16 %v523_v36, %v519_v35  ;;  %v6069_v41 = vpack.c.bf16 %v431_v32, %v429_v31  ;;  %v428_v42 = vld [vmem:[%s11646_s1 + $0x80] sm:$0xff]  ;;  %s4984_s19 = sshll.u32 %s11662_s22, 2  ;;  %v518_v47 = vld [vmem:[%s11649_s4 + $0x38] sm:$0xff]  ;;  %s5890_s13 = sshll.u32 %s11662_s22, 5 }
   0xf   : > { %6076 = vmatpush1.bf16.msra.mxu1 %v6075_v29  ;;  %v6077_v34 = vpack.c.bf16 %v524_v33, %v520_v30  ;;  %v528_v39 = vld [vmem:[%s11649_s4 + $0x88] sm:$0xff]  ;;  %v527_v45 = vld [vmem:[%s11649_s4 + $0x80] sm:$0xff]  ;;  %v6071_v52 = vpack.c.bf16 %v430_v43, %v428_v42  ;;  %s405_s18 = scalar_lea.vmem %s11645_s0, %s4984_s19  ;;  %v6137_v56 = vpack.c.bf16 %v518_v47, %v514_v46  ;;  %v513_v57 = vld [vmem:[%s11649_s4 + $0x10] sm:$0xff]  ;;  %s410_s27 = scalar_lea.vmem %s11657_s12, %s5890_s13 }
  0x10   : > { %v532_v40 = vld [vmem:[%s11649_s4 + $0xa8] sm:$0xff]  ;;  %v531_v48 = vld [vmem:[%s11649_s4 + $0xa0] sm:$0xff]  ;;  %v517_v58 = vld [vmem:[%s11649_s4 + $0x30] sm:$0xff] }
  0x11   : > { %6064 = vmatpush1.bf16.msra.mxu0 %v6063_v22  ;;  %6078 = vmatprep.subr.bf16.mxu1 %v6077_v34  ;;  %v6081_v44 = vpack.c.bf16 %v532_v40, %v528_v39  ;;  %v6083_v49 = vpack.c.bf16 %v531_v48, %v527_v45  ;;  %v536_v50 = vld [vmem:[%s11649_s4 + $0xc8] sm:$0xff]  ;;  %v535_v54 = vld [vmem:[%s11649_s4 + $0xc0] sm:$0xff]  ;;  %v522_v60 = vld [vmem:[%s11649_s4 + $0x58] sm:$0xff]  ;;  %v6139_v1 = vpack.c.bf16 %v517_v58, %v513_v57 }
  0x12   : > { %6066 = vmatprep.subr.bf16.mxu0 %v6065_v26  ;;  %v540_v51 = vld [vmem:[%s11649_s4 + $0xe8] sm:$0xff]  ;;  %v539_v55 = vld [vmem:[%s11649_s4 + $0xe0] sm:$0xff]  ;;  %v526_v61 = vld [vmem:[%s11649_s4 + $0x78] sm:$0xff] }
  0x13   : > { %6080 = vmatpush1.bf16.msra.mxu1 %v6079_v38  ;;  %v6085_v53 = vpack.c.bf16 %v540_v51, %v536_v50  ;;  %v544_v59 = vld [vmem:[%s11649_s4 + $0x108] sm:$0xff]  ;;  %v411_v63 = vld [vmem:[%s405_s18] sm:$0xf]  ;;  %v6087_v0 = vpack.c.bf16 %v539_v55, %v535_v54  ;;  %v521_v2 = vld [vmem:[%s11649_s4 + $0x50] sm:$0xff]  ;;  %v6141_v6 = vpack.c.bf16 %v526_v61, %v522_v60 }
  0x14   : > { %6082 = vmatprep.subr.bf16.mxu1 %v6081_v44  ;;  %v548_v62 = vld [vmem:[%s11649_s4 + $0x128] sm:$0xff]  ;;  %v543_v4 = vld [vmem:[%s11649_s4 + $0x100] sm:$0xff]  ;;  %v525_v8 = vld [vmem:[%s11649_s4 + $0x70] sm:$0xff] }
  0x15   : > { %6068 = vmatpush1.bf16.msra.mxu0 %v6067_v37  ;;  %v6089_v3 = vpack.c.bf16 %v548_v62, %v544_v59  ;;  %v547_v5 = vld [vmem:[%s11649_s4 + $0x120] sm:$0xff]  ;;  %v552_v9 = vld [vmem:[%s11649_s4 + $0x148] sm:$0xff]  ;;  %v530_v11 = vld [vmem:[%s11649_s4 + $0x98] sm:$0xff]  ;;  %v6143_v14 = vpack.c.bf16 %v525_v8, %v521_v2 }
  0x16   : > { %6070 = vmatprep.subr.bf16.mxu0 %v6069_v41  ;;  %v556_v10 = vld [vmem:[%s11649_s4 + $0x168] sm:$0xff]  ;;  %v534_v12 = vld [vmem:[%s11649_s4 + $0xb8] sm:$0xff]  ;;  %v6091_v13 = vpack.c.bf16 %v547_v5, %v543_v4  ;;  %v529_v15 = vld [vmem:[%s11649_s4 + $0x90] sm:$0xff] }
  0x17   : > { %6084 = vmatpush1.bf16.msra.mxu1 %v6083_v49  ;;  %v6093_v16 = vpack.c.bf16 %v556_v10, %v552_v9  ;;  %v551_v17 = vld [vmem:[%s11649_s4 + $0x140] sm:$0xff]  ;;  %v6145_v19 = vpack.c.bf16 %v534_v12, %v530_v11  ;;  %v533_v20 = vld [vmem:[%s11649_s4 + $0xb0] sm:$0xff]  ;;  %v560_v21 = vld [vmem:[%s11649_s4 + $0x188] sm:$0xff] }
  0x18   : > { %6086 = vmatprep.subr.bf16.mxu1 %v6085_v53  ;;  %v555_v18 = vld [vmem:[%s11649_s4 + $0x160] sm:$0xff]  ;;  %v564_v22 = vld [vmem:[%s11649_s4 + $0x1a8] sm:$0xff]  ;;  %v538_v23 = vld [vmem:[%s11649_s4 + $0xd8] sm:$0xff]  ;;  %v6147_v26 = vpack.c.bf16 %v533_v20, %v529_v15 }
  0x19   : > { %6072 = vmatpush1.bf16.msra.mxu0 %v6071_v52  ;;  %v542_v24 = vld [vmem:[%s11649_s4 + $0xf8] sm:$0xff]  ;;  %v6095_v25 = vpack.c.bf16 %v555_v18, %v551_v17  ;;  %v537_v27 = vld [vmem:[%s11649_s4 + $0xd0] sm:$0xff]  ;;  %v6097_v28 = vpack.c.bf16 %v564_v22, %v560_v21  ;;  %v559_v29 = vld [vmem:[%s11649_s4 + $0x180] sm:$0xff] }
  0x1a   : > { %6138 = vmatprep.subr.bf16.mxu0 %v6137_v56  ;;  %v563_v30 = vld [vmem:[%s11649_s4 + $0x1a0] sm:$0xff]  ;;  %v6149_v31 = vpack.c.bf16 %v542_v24, %v538_v23  ;;  %v541_v32 = vld [vmem:[%s11649_s4 + $0xf0] sm:$0xff]  ;;  %v568_v33 = vld [vmem:[%s11649_s4 + $0x1c8] sm:$0xff] }
  0x1b   : > { %6088 = vmatpush1.bf16.msra.mxu1 %v6087_v0  ;;  %v572_v34 = vld [vmem:[%s11649_s4 + $0x1e8] sm:$0xff]  ;;  %v546_v35 = vld [vmem:[%s11649_s4 + $0x118] sm:$0xff]  ;;  %v6099_v37 = vpack.c.bf16 %v563_v30, %v559_v29  ;;  %v6151_v38 = vpack.c.bf16 %v541_v32, %v537_v27  ;;  %v545_v39 = vld [vmem:[%s11649_s4 + $0x110] sm:$0xff] }
  0x1c   : > { %4987 = vmatmul.mubr.msk.f32.vlgmr.msra.gmra.mrb[0].mxu0 %vm436_vm0, %v411_v63  ;;  %6090 = vmatprep.subr.bf16.mxu1 %v6089_v3  ;;  %v550_v36 = vld [vmem:[%s11649_s4 + $0x138] sm:$0xff]  ;;  %v6101_v40 = vpack.c.bf16 %v572_v34, %v568_v33  ;;  %v567_v41 = vld [vmem:[%s11649_s4 + $0x1c0] sm:$0xff]  ;;  %v549_v44 = vld [vmem:[%s11649_s4 + $0x130] sm:$0xff] }
  0x1d   : > { %6140 = vmatpush1.bf16.msra.mxu0 %v6139_v1  ;;  %v571_v42 = vld [vmem:[%s11649_s4 + $0x1e0] sm:$0xff]  ;;  %v6153_v43 = vpack.c.bf16 %v550_v36, %v546_v35  ;;  %v576_v45 = vld [vmem:[%s11649_s4 + $0x208] sm:$0xff]  ;;  %v554_v47 = vld [vmem:[%s11649_s4 + $0x158] sm:$0xff]  ;;  %v6155_v50 = vpack.c.bf16 %v549_v44, %v545_v39 }
  0x1e   : > { %6142 = vmatprep.subr.bf16.mxu0 %v6141_v6  ;;  %v580_v46 = vld [vmem:[%s11649_s4 + $0x228] sm:$0xff]  ;;  %v558_v48 = vld [vmem:[%s11649_s4 + $0x178] sm:$0xff]  ;;  %v6103_v49 = vpack.c.bf16 %v571_v42, %v567_v41  ;;  %v553_v51 = vld [vmem:[%s11649_s4 + $0x150] sm:$0xff] }
  0x1f   : > { %6092 = vmatpush1.bf16.msra.mxu1 %v6091_v13  ;;  %v6105_v52 = vpack.c.bf16 %v580_v46, %v576_v45  ;;  %v575_v53 = vld [vmem:[%s11649_s4 + $0x200] sm:$0xff]  ;;  %v6157_v55 = vpack.c.bf16 %v558_v48, %v554_v47  ;;  %v557_v56 = vld [vmem:[%s11649_s4 + $0x170] sm:$0xff]  ;;  %v584_v57 = vld [vmem:[%s11649_s4 + $0x248] sm:$0xff] }
  0x20   : > { %6094 = vmatprep.subr.bf16.mxu1 %v6093_v16  ;;  %v579_v54 = vld [vmem:[%s11649_s4 + $0x220] sm:$0xff]  ;;  %v588_v58 = vld [vmem:[%s11649_s4 + $0x268] sm:$0xff]  ;;  %v562_v59 = vld [vmem:[%s11649_s4 + $0x198] sm:$0xff]  ;;  %v6159_v62 = vpack.c.bf16 %v557_v56, %v553_v51 }
  0x21   : > { %6144 = vmatpush1.bf16.msra.mxu0 %v6143_v14  ;;  %v566_v60 = vld [vmem:[%s11649_s4 + $0x1b8] sm:$0xff]  ;;  %v6107_v61 = vpack.c.bf16 %v579_v54, %v575_v53  ;;  %v561_v63 = vld [vmem:[%s11649_s4 + $0x190] sm:$0xff]  ;;  %v6109_v0 = vpack.c.bf16 %v588_v58, %v584_v57  ;;  %v583_v1 = vld [vmem:[%s11649_s4 + $0x240] sm:$0xff] }
  0x22   : > { %6146 = vmatprep.subr.bf16.mxu0 %v6145_v19  ;;  %v587_v2 = vld [vmem:[%s11649_s4 + $0x260] sm:$0xff]  ;;  %v6161_v3 = vpack.c.bf16 %v566_v60, %v562_v59  ;;  %v565_v4 = vld [vmem:[%s11649_s4 + $0x1b0] sm:$0xff]  ;;  %v592_v5 = vld [vmem:[%s11649_s4 + $0x288] sm:$0xff] }
  0x23   : > { %6096 = vmatpush1.bf16.msra.mxu1 %v6095_v25  ;;  %v596_v6 = vld [vmem:[%s11649_s4 + $0x2a8] sm:$0xff]  ;;  %v570_v8 = vld [vmem:[%s11649_s4 + $0x1d8] sm:$0xff]  ;;  %v6111_v10 = vpack.c.bf16 %v587_v2, %v583_v1  ;;  %v6163_v11 = vpack.c.bf16 %v565_v4, %v561_v63  ;;  %v569_v12 = vld [vmem:[%s11649_s4 + $0x1d0] sm:$0xff] }
  0x24   : > { %6098 = vmatprep.subr.bf16.mxu1 %v6097_v28  ;;  %v574_v9 = vld [vmem:[%s11649_s4 + $0x1f8] sm:$0xff]  ;;  %v6113_v13 = vpack.c.bf16 %v596_v6, %v592_v5  ;;  %v591_v14 = vld [vmem:[%s11649_s4 + $0x280] sm:$0xff]  ;;  %v573_v17 = vld [vmem:[%s11649_s4 + $0x1f0] sm:$0xff] }
  0x25   : > { %6148 = vmatpush1.bf16.msra.mxu0 %v6147_v26  ;;  %v595_v15 = vld [vmem:[%s11649_s4 + $0x2a0] sm:$0xff]  ;;  %v6165_v16 = vpack.c.bf16 %v574_v9, %v570_v8  ;;  %v600_v18 = vld [vmem:[%s11649_s4 + $0x2c8] sm:$0xff]  ;;  %v578_v20 = vld [vmem:[%s11649_s4 + $0x218] sm:$0xff]  ;;  %v6167_v23 = vpack.c.bf16 %v573_v17, %v569_v12 }
  0x26   : > { %6150 = vmatprep.subr.bf16.mxu0 %v6149_v31  ;;  %v604_v19 = vld [vmem:[%s11649_s4 + $0x2e8] sm:$0xff]  ;;  %v582_v21 = vld [vmem:[%s11649_s4 + $0x238] sm:$0xff]  ;;  %v6115_v22 = vpack.c.bf16 %v595_v15, %v591_v14  ;;  %v577_v24 = vld [vmem:[%s11649_s4 + $0x210] sm:$0xff] }
  0x27   : > { %6100 = vmatpush1.bf16.msra.mxu1 %v6099_v37  ;;  %v6117_v25 = vpack.c.bf16 %v604_v19, %v600_v18  ;;  %v599_v26 = vld [vmem:[%s11649_s4 + $0x2c0] sm:$0xff]  ;;  %v6169_v28 = vpack.c.bf16 %v582_v21, %v578_v20  ;;  %v581_v29 = vld [vmem:[%s11649_s4 + $0x230] sm:$0xff]  ;;  %v608_v30 = vld [vmem:[%s11649_s4 + $0x308] sm:$0xff] }
  0x28   : > { %6102 = vmatprep.subr.bf16.mxu1 %v6101_v40  ;;  %v603_v27 = vld [vmem:[%s11649_s4 + $0x2e0] sm:$0xff]  ;;  %v612_v31 = vld [vmem:[%s11649_s4 + $0x328] sm:$0xff]  ;;  %v586_v32 = vld [vmem:[%s11649_s4 + $0x258] sm:$0xff]  ;;  %v6171_v35 = vpack.c.bf16 %v581_v29, %v577_v24 }
  0x29   : > { %6152 = vmatpush1.bf16.msra.mxu0 %v6151_v38  ;;  %v590_v33 = vld [vmem:[%s11649_s4 + $0x278] sm:$0xff]  ;;  %v6119_v34 = vpack.c.bf16 %v603_v27, %v599_v26  ;;  %v585_v36 = vld [vmem:[%s11649_s4 + $0x250] sm:$0xff]  ;;  %v6121_v37 = vpack.c.bf16 %v612_v31, %v608_v30  ;;  %v607_v38 = vld [vmem:[%s11649_s4 + $0x300] sm:$0xff] }
  0x2a   : > { %6154 = vmatprep.subr.bf16.mxu0 %v6153_v43  ;;  %v611_v39 = vld [vmem:[%s11649_s4 + $0x320] sm:$0xff]  ;;  %v6173_v40 = vpack.c.bf16 %v590_v33, %v586_v32  ;;  %v589_v41 = vld [vmem:[%s11649_s4 + $0x270] sm:$0xff]  ;;  %v616_v42 = vld [vmem:[%s11649_s4 + $0x348] sm:$0xff] }
  0x2b   : > { %6104 = vmatpush1.bf16.msra.mxu1 %v6103_v49  ;;  %v620_v43 = vld [vmem:[%s11649_s4 + $0x368] sm:$0xff]  ;;  %v594_v44 = vld [vmem:[%s11649_s4 + $0x298] sm:$0xff]  ;;  %v6123_v46 = vpack.c.bf16 %v611_v39, %v607_v38  ;;  %v6175_v47 = vpack.c.bf16 %v589_v41, %v585_v36  ;;  %v593_v48 = vld [vmem:[%s11649_s4 + $0x290] sm:$0xff] }
  0x2c   : > { %6106 = vmatprep.subr.bf16.mxu1 %v6105_v52  ;;  %v598_v45 = vld [vmem:[%s11649_s4 + $0x2b8] sm:$0xff]  ;;  %v6125_v49 = vpack.c.bf16 %v620_v43, %v616_v42  ;;  %v619_v51 = vld [vmem:[%s11649_s4 + $0x360] sm:$0xff]  ;;  %v597_v53 = vld [vmem:[%s11649_s4 + $0x2b0] sm:$0xff] }
  0x2d   : > { %6156 = vmatpush1.bf16.msra.mxu0 %v6155_v50  ;;  %v615_v50 = vld [vmem:[%s11649_s4 + $0x340] sm:$0xff]  ;;  %v6177_v52 = vpack.c.bf16 %v598_v45, %v594_v44  ;;  %v624_v54 = vld [vmem:[%s11649_s4 + $0x388] sm:$0xff]  ;;  %v602_v56 = vld [vmem:[%s11649_s4 + $0x2d8] sm:$0xff]  ;;  %v6179_v59 = vpack.c.bf16 %v597_v53, %v593_v48 }
  0x2e   : > { %6158 = vmatprep.subr.bf16.mxu0 %v6157_v55  ;;  %v628_v55 = vld [vmem:[%s11649_s4 + $0x3a8] sm:$0xff]  ;;  %v606_v57 = vld [vmem:[%s11649_s4 + $0x2f8] sm:$0xff]  ;;  %v6127_v58 = vpack.c.bf16 %v619_v51, %v615_v50  ;;  %v605_v1 = vld [vmem:[%s11649_s4 + $0x2f0] sm:$0xff] }
  0x2f   : > { %6108 = vmatpush1.bf16.msra.mxu1 %v6107_v61  ;;  %v6129_v60 = vpack.c.bf16 %v628_v55, %v624_v54  ;;  %v623_v61 = vld [vmem:[%s11649_s4 + $0x380] sm:$0xff]  ;;  %v6181_v63 = vpack.c.bf16 %v606_v57, %v602_v56  ;;  %v610_v2 = vld [vmem:[%s11649_s4 + $0x318] sm:$0xff]  ;;  %v609_v8 = vld [vmem:[%s11649_s4 + $0x310] sm:$0xff] }
  0x30   : > { %6110 = vmatprep.subr.bf16.mxu1 %v6109_v0  ;;  %v601_v0 = vld [vmem:[%s11649_s4 + $0x2d0] sm:$0xff]  ;;  %v630_v17 = vld [vmem:[%s11649_s4 + $0x3b8] sm:$0xff]  ;;  %v636_v24 = vld [vmem:[%s11649_s4 + $0x3e8] sm:$0xff] }
  0x31   : > { %6160 = vmatpush1.bf16.msra.mxu0 %v6159_v62  ;;  %v627_v62 = vld [vmem:[%s11649_s4 + $0x3a0] sm:$0xff]  ;;  %v6183_v5 = vpack.c.bf16 %v605_v1, %v601_v0  ;;  %v613_v9 = vld [vmem:[%s11649_s4 + $0x330] sm:$0xff]  ;;  %v638_v27 = vld [vmem:[%s11649_s4 + $0x3f8] sm:$0xff] }
  0x32   : > { %6162 = vmatprep.subr.bf16.mxu0 %v6161_v3  ;;  %v614_v3 = vld [vmem:[%s11649_s4 + $0x338] sm:$0xff]  ;;  %v6131_v4 = vpack.c.bf16 %v627_v62, %v623_v61  ;;  %v6187_v12 = vpack.c.bf16 %v613_v9, %v609_v8  ;;  %v617_v14 = vld [vmem:[%s11649_s4 + $0x350] sm:$0xff]  ;;  %v635_v29 = vld [vmem:[%s11649_s4 + $0x3e0] sm:$0xff] }
  0x33   : > { %6112 = vmatpush1.bf16.msra.mxu1 %v6111_v10  ;;  %v6185_v6 = vpack.c.bf16 %v614_v3, %v610_v2  ;;  %v618_v10 = vld [vmem:[%s11649_s4 + $0x358] sm:$0xff]  ;;  %v621_v15 = vld [vmem:[%s11649_s4 + $0x370] sm:$0xff]  ;;  %v4993_v36 = vld [vmem:[%s11649_s4 + $0x428] sm:$0xff] }
  0x34   : > { %6114 = vmatprep.subr.bf16.mxu1 %v6113_v13  ;;  %v6191_v18 = vpack.c.bf16 %v621_v15, %v617_v14  ;;  %v625_v20 = vld [vmem:[%s11649_s4 + $0x390] sm:$0xff]  ;;  %v4995_v39 = vld [vmem:[%s11649_s4 + $0x438] sm:$0xff]  ;;  %v432_v41 = vld [vmem:[%s11647_s2] sm:$0xff] }
  0x35   : > { %6164 = vmatpush1.bf16.msra.mxu0 %v6163_v11  ;;  %v622_v11 = vld [vmem:[%s11649_s4 + $0x378] sm:$0xff]  ;;  %v629_v21 = vld [vmem:[%s11649_s4 + $0x3b0] sm:$0xff]  ;;  %v434_v42 = vcombine.high %v432_v41, %v432_v41  ;;  %v4988_v43 = vld [vmem:[%s11649_s4 + $0x400] sm:$0xff] }
  0x36   : > { %6166 = vmatprep.subr.bf16.mxu0 %v6165_v16  ;;  %v6189_v13 = vpack.c.bf16 %v622_v11, %v618_v10  ;;  %v626_v16 = vld [vmem:[%s11649_s4 + $0x398] sm:$0xff]  ;;  %v633_v32 = vld [vmem:[%s11649_s4 + $0x3d0] sm:$0xff]  ;;  %v4992_v44 = vld [vmem:[%s11649_s4 + $0x420] sm:$0xff] }
  0x37   : > { %6116 = vmatpush1.bf16.msra.mxu1 %v6115_v22  ;;  %v6193_v19 = vpack.c.bf16 %v630_v17, %v626_v16  ;;  %v6195_v22 = vpack.c.bf16 %v629_v21, %v625_v20  ;;  %v637_v33 = vld [vmem:[%s11649_s4 + $0x3f0] sm:$0xff]  ;;  %v4997_v48 = vld [vmem:[%s11649_s4 + $0x448] sm:$0xff]  ;;  %v4999_v51 = vld [vmem:[%s11649_s4 + $0x458] sm:$0xff]  ;;  %v6203_v54 = vpack.c.bf16 %v4992_v44, %v4988_v43 }
  0x38   : > { %6118 = vmatprep.subr.bf16.mxu1 %v6117_v25  ;;  %v634_v25 = vld [vmem:[%s11649_s4 + $0x3d8] sm:$0xff]  ;;  %v4990_v45 = vld [vmem:[%s11649_s4 + $0x410] sm:$0xff]  ;;  %v5001_v50 = vld [vmem:[%s11649_s4 + $0x468] sm:$0xff] }
  0x39   : > { %6168 = vmatpush1.bf16.msra.mxu0 %v6167_v23  ;;  %v632_v23 = vld [vmem:[%s11649_s4 + $0x3c8] sm:$0xff]  ;;  %v6197_v30 = vpack.c.bf16 %v638_v27, %v634_v25  ;;  %v4996_v56 = vld [vmem:[%s11649_s4 + $0x440] sm:$0xff]  ;;  %v6205_v62 = vpack.c.bf16 %v5001_v50, %v4997_v48  ;;  %v5007_v1 = vld [vmem:[%s11649_s4 + $0x498] sm:$0xff] }
  0x3a   : > { %6170 = vmatprep.subr.bf16.mxu0 %v6169_v28  ;;  %v6133_v26 = vpack.c.bf16 %v636_v24, %v632_v23  ;;  %v631_v28 = vld [vmem:[%s11649_s4 + $0x3c0] sm:$0xff]  ;;  %v5005_v61 = vld [vmem:[%s11649_s4 + $0x488] sm:$0xff]  ;;  %v5011_v2 = vld [vmem:[%s11649_s4 + $0x4b8] sm:$0xff] }
  0x3b   : > { %6120 = vmatpush1.bf16.msra.mxu1 %v6119_v34  ;;  %v6135_v31 = vpack.c.bf16 %v635_v29, %v631_v28  ;;  %v6199_v34 = vpack.c.bf16 %v637_v33, %v633_v32  ;;  %v5000_v57 = vld [vmem:[%s11649_s4 + $0x460] sm:$0xff]  ;;  %v5009_v0 = vld [vmem:[%s11649_s4 + $0x4a8] sm:$0xff]  ;;  %v6273_v9 = vpack.c.bf16 %v5011_v2, %v5007_v1  ;;  %v5006_v10 = vld [vmem:[%s11649_s4 + $0x490] sm:$0xff] }
  0x3c   : > { %6122 = vmatprep.subr.bf16.mxu1 %v6121_v37  ;;  %v4991_v37 = vld [vmem:[%s11649_s4 + $0x418] sm:$0xff]  ;;  %v6207_v3 = vpack.c.bf16 %v5000_v57, %v4996_v56  ;;  %v6209_v8 = vpack.c.bf16 %v5009_v0, %v5005_v61  ;;  %v5010_v11 = vld [vmem:[%s11649_s4 + $0x4b0] sm:$0xff]  ;;  %v5021_v24 = vld [vmem:[%s11649_s4 + $0x508] sm:$0xff] }
  0x3d   : > { %6172 = vmatpush1.bf16.msra.mxu0 %v6171_v35  ;;  %v4989_v35 = vld [vmem:[%s11649_s4 + $0x408] sm:$0xff]  ;;  %v5015_v14 = vld [vmem:[%s11649_s4 + $0x4d8] sm:$0xff]  ;;  %v6275_v17 = vpack.c.bf16 %v5010_v11, %v5006_v10  ;;  %v5018_v23 = vld [vmem:[%s11649_s4 + $0x4f0] sm:$0xff] }
  0x3e   : > { %6174 = vmatprep.subr.bf16.mxu0 %v6173_v40  ;;  %v6201_v38 = vpack.c.bf16 %v4993_v36, %v4989_v35  ;;  %v6265_v40 = vpack.c.bf16 %v4995_v39, %v4991_v37  ;;  %v5019_v15 = vld [vmem:[%s11649_s4 + $0x4f8] sm:$0xff]  ;;  %v5025_v25 = vld [vmem:[%s11649_s4 + $0x528] sm:$0xff]  ;;  %v5026_v35 = vld [vmem:[%s11649_s4 + $0x530] sm:$0xff] }
  0x3f   : > { %6124 = vmatpush1.bf16.msra.mxu1 %v6123_v46  ;;  %v4994_v46 = vld [vmem:[%s11649_s4 + $0x430] sm:$0xff]  ;;  %v6277_v21 = vpack.c.bf16 %v5019_v15, %v5015_v14  ;;  %v5027_v27 = vld [vmem:[%s11649_s4 + $0x538] sm:$0xff]  ;;  %v6217_v32 = vpack.c.bf16 %v5025_v25, %v5021_v24  ;;  %v5029_v36 = vld [vmem:[%s11649_s4 + $0x548] sm:$0xff] }
  0x40   : > { %6126 = vmatprep.subr.bf16.mxu1 %v6125_v49  ;;  %v6267_v55 = vpack.c.bf16 %v4994_v46, %v4990_v45  ;;  %v5033_v37 = vld [vmem:[%s11649_s4 + $0x568] sm:$0xff]  ;;  %v5035_v39 = vld [vmem:[%s11649_s4 + $0x578] sm:$0xff]  ;;  %v5032_v43 = vld [vmem:[%s11649_s4 + $0x560] sm:$0xff] }
  0x41   : > { %6176 = vmatpush1.bf16.msra.mxu0 %v6175_v47  ;;  %v6221_v44 = vpack.c.bf16 %v5033_v37, %v5029_v36  ;;  %v5030_v46 = vld [vmem:[%s11649_s4 + $0x550] sm:$0xff]  ;;  %v5037_v48 = vld [vmem:[%s11649_s4 + $0x588] sm:$0xff]  ;;  %v5039_v50 = vld [vmem:[%s11649_s4 + $0x598] sm:$0xff] }
  0x42   : > { %6178 = vmatprep.subr.bf16.mxu0 %v6177_v52  ;;  %v5003_v52 = vld [vmem:[%s11649_s4 + $0x478] sm:$0xff]  ;;  %v5040_v56 = vld [vmem:[%s11649_s4 + $0x5a0] sm:$0xff]  ;;  %v5042_v61 = vld [vmem:[%s11649_s4 + $0x5b0] sm:$0xff] }
  0x43   : > { %6128 = vmatpush1.bf16.msra.mxu1 %v6127_v58  ;;  %v5047_v0 = vld [vmem:[%s11649_s4 + $0x5d8] sm:$0xff]  ;;  %v5050_v10 = vld [vmem:[%s11649_s4 + $0x5f0] sm:$0xff]  ;;  %v5053_v11 = vld [vmem:[%s11649_s4 + $0x608] sm:$0xff] }
  0x44   : > { %6130 = vmatprep.subr.bf16.mxu1 %v6129_v60  ;;  %v5002_v60 = vld [vmem:[%s11649_s4 + $0x470] sm:$0xff]  ;;  %v5051_v1 = vld [vmem:[%s11649_s4 + $0x5f8] sm:$0xff]  ;;  %v5065_v24 = vld [vmem:[%s11649_s4 + $0x668] sm:$0xff] }
  0x45   : > { %6180 = vmatpush1.bf16.msra.mxu0 %v6179_v59  ;;  %v4998_v59 = vld [vmem:[%s11649_s4 + $0x450] sm:$0xff]  ;;  %v5059_v14 = vld [vmem:[%s11649_s4 + $0x638] sm:$0xff]  ;;  %v5073_v36 = vld [vmem:[%s11649_s4 + $0x6a8] sm:$0xff] }
  0x46   : > { %6182 = vmatprep.subr.bf16.mxu0 %v6181_v63  ;;  %v6269_v63 = vpack.c.bf16 %v5003_v52, %v4999_v51  ;;  %v5043_v51 = vld [vmem:[%s11649_s4 + $0x5b8] sm:$0xff]  ;;  %vm11473_vm9 = vmpackc.low %vm4378_vm7, %vm7433_vm8 }
  0x47   : > { %6132 = vmatpush1.bf16.msra.mxu1 %v6131_v4  ;;  %v6271_v4 = vpack.c.bf16 %v5002_v60, %v4998_v59  ;;  %v6289_v59 = vpack.c.bf16 %v5043_v51, %v5039_v50  ;;  %v5038_v60 = vld [vmem:[%s11649_s4 + $0x590] sm:$0xff]  ;;  %v5063_v25 = vld [vmem:[%s11649_s4 + $0x658] sm:$0xff] }
  0x48   : > { %6134 = vmatprep.subr.bf16.mxu1 %v6133_v26  ;;  %v5023_v26 = vld [vmem:[%s11649_s4 + $0x518] sm:$0xff] }
  0x49   : > { %6184 = vmatpush1.bf16.msra.mxu0 %v6183_v5  ;;  %v5004_v5 = vld [vmem:[%s11649_s4 + $0x480] sm:$0xff]  ;;  %v6281_v33 = vpack.c.bf16 %v5027_v27, %v5023_v26  ;;  %v5067_v26 = vld [vmem:[%s11649_s4 + $0x678] sm:$0xff] }
  0x4a   : > { %6186 = vmatprep.subr.bf16.mxu0 %v6185_v6  ;;  %v5008_v6 = vld [vmem:[%s11649_s4 + $0x4a0] sm:$0xff]  ;;  %v5071_v37 = vld [vmem:[%s11649_s4 + $0x698] sm:$0xff] }
  0x4b   : > { %6136 = vmatpush1.bf16.msra.mxu1 %v6135_v31  ;;  %v6211_v16 = vpack.c.bf16 %v5008_v6, %v5004_v5  ;;  %v5024_v31 = vld [vmem:[%s11649_s4 + $0x520] sm:$0xff]  ;;  %v5083_v50 = vld [vmem:[%s11649_s4 + $0x6f8] sm:$0xff] }
  0x4c   : > { %6202 = vmatprep.subr.bf16.mxu1 %v6201_v38  ;;  %v5031_v38 = vld [vmem:[%s11649_s4 + $0x558] sm:$0xff]  ;;  %v5048_v5 = vld [vmem:[%s11649_s4 + $0x5e0] sm:$0xff] }
  0x4d   : > { %6188 = vmatpush1.bf16.msra.mxu0 %v6187_v12  ;;  %v5013_v12 = vld [vmem:[%s11649_s4 + $0x4c8] sm:$0xff]  ;;  %v6285_v45 = vpack.c.bf16 %v5035_v39, %v5031_v38  ;;  %v5075_v38 = vld [vmem:[%s11649_s4 + $0x6b8] sm:$0xff] }
  0x4e   : > { %6190 = vmatprep.subr.bf16.mxu0 %v6189_v13  ;;  %v5017_v13 = vld [vmem:[%s11649_s4 + $0x4e8] sm:$0xff] }
  0x4f   : > { %v6213_v20 = vpack.c.bf16 %v5017_v13, %v5013_v12  ;;  %v5057_v12 = vld [vmem:[%s11649_s4 + $0x628] sm:$0xff]  ;;  %v5055_v13 = vld [vmem:[%s11649_s4 + $0x618] sm:$0xff] }
  0x51   : > { %6192 = vmatpush1.bf16.msra.mxu0 %v6191_v18  ;;  %v5012_v18 = vld [vmem:[%s11649_s4 + $0x4c0] sm:$0xff] }
  0x52   : > { %6194 = vmatprep.subr.bf16.mxu0 %v6193_v19  ;;  %v5016_v19 = vld [vmem:[%s11649_s4 + $0x4e0] sm:$0xff] }
  0x53   : > { %v6215_v28 = vpack.c.bf16 %v5016_v19, %v5012_v18  ;;  %v5056_v18 = vld [vmem:[%s11649_s4 + $0x620] sm:$0xff]  ;;  %v6233_v19 = vpack.c.bf16 %v5057_v12, %v5053_v11  ;;  %v5097_v11 = vld [vmem:[%s11649_s4 + $0x768] sm:$0xff]  ;;  %v5095_v12 = vld [vmem:[%s11649_s4 + $0x758] sm:$0xff] }
  0x55   : > { %6196 = vmatpush1.bf16.msra.mxu0 %v6195_v22  ;;  %v5014_v22 = vld [vmem:[%s11649_s4 + $0x4d0] sm:$0xff] }
  0x56   : > { %6198 = vmatprep.subr.bf16.mxu0 %v6197_v30  ;;  %v6279_v29 = vpack.c.bf16 %v5018_v23, %v5014_v22  ;;  %v5020_v30 = vld [vmem:[%s11649_s4 + $0x500] sm:$0xff]  ;;  %v5058_v22 = vld [vmem:[%s11649_s4 + $0x630] sm:$0xff]  ;;  %v5061_v23 = vld [vmem:[%s11649_s4 + $0x648] sm:$0xff] }
  0x59   : > { %6200 = vmatpush1.bf16.msra.mxu0 %v6199_v34  ;;  %v5022_v34 = vld [vmem:[%s11649_s4 + $0x510] sm:$0xff] }
  0x5a   : > { %6266 = vmatprep.subr.bf16.mxu0 %v6265_v40  ;;  %v6219_v40 = vpack.c.bf16 %v5024_v31, %v5020_v30  ;;  %v5064_v30 = vld [vmem:[%s11649_s4 + $0x660] sm:$0xff]  ;;  %v6237_v31 = vpack.c.bf16 %v5065_v24, %v5061_v23  ;;  %v5105_v23 = vld [vmem:[%s11649_s4 + $0x7a8] sm:$0xff]  ;;  %v5103_v24 = vld [vmem:[%s11649_s4 + $0x798] sm:$0xff] }
  0xef   : > { %v506_v47 = vpop.f32.mrb[0].mxu0 }
  0xf0   : > { %v508_v49 = vpop.f32.mrb[1].mxu0  ;;  %v8015_v58 = vadd.f32 %v506_v47, %v432_v41  ;;  %v6283_v41 = vpack.c.bf16 %v5026_v35, %v5022_v34  ;;  %v5034_v47 = vld [vmem:[%s11649_s4 + $0x570] sm:$0xff]  ;;  %v5069_v35 = vld [vmem:[%s11649_s4 + $0x688] sm:$0xff] }
  0xf1   : > { %v8007_v53 = vadd.f32 %v508_v49, %v434_v42  ;;  %v5028_v42 = vld [vmem:[%s11649_s4 + $0x540] sm:$0xff]  ;;  %v5041_v49 = vld [vmem:[%s11649_s4 + $0x5a8] sm:$0xff]  ;;  %v5066_v34 = vld [vmem:[%s11649_s4 + $0x670] sm:$0xff] }
  0xf2   : > { %v6223_v52 = vpack.c.bf16 %v5032_v43, %v5028_v42  ;;  %v6225_v57 = vpack.c.bf16 %v5041_v49, %v5037_v48  ;;  %v5072_v42 = vld [vmem:[%s11649_s4 + $0x6a0] sm:$0xff]  ;;  %v6241_v43 = vpack.c.bf16 %v5073_v36, %v5069_v35  ;;  %v5081_v48 = vld [vmem:[%s11649_s4 + $0x6e8] sm:$0xff]  ;;  %v5079_v49 = vld [vmem:[%s11649_s4 + $0x6d8] sm:$0xff] }
  0xf3   : > { %703 = vmatprep.mubr.f32.mxu1 %v8007_v53  ;;  %774 = vmatprep.mubr.f32.mxu0 %v8007_v53  ;;  %v5113_v35 = vld [vmem:[%s11649_s4 + $0x7e8] sm:$0xff]  ;;  %v5111_v36 = vld [vmem:[%s11649_s4 + $0x7d8] sm:$0xff] }
  0xf4   : > { %704 = vmatmul.mubr.f32.vlgmr.msra.gmra.mrb[0].mxu1 %v8015_v58  ;;  %775 = vmatmul.mubr.f32.vlgmr.msra.gmra.mrb[2].mxu0 %v8015_v58 }
  0xf5   : > { %6204 = vmatpush1.bf16.msra.mxu1 %v6203_v54  ;;  %6268 = vmatpush1.bf16.msra.mxu0 %v6267_v55  ;;  %v6287_v54 = vpack.c.bf16 %v5034_v47, %v5030_v46  ;;  %v5036_v55 = vld [vmem:[%s11649_s4 + $0x580] sm:$0xff]  ;;  %v5074_v46 = vld [vmem:[%s11649_s4 + $0x6b0] sm:$0xff]  ;;  %v5077_v47 = vld [vmem:[%s11649_s4 + $0x6c8] sm:$0xff] }
  0xf6   : > { %975 = vmatprep.mubr.f32.mxu1 %v8007_v53  ;;  %1046 = vmatprep.mubr.f32.mxu0 %v8007_v53  ;;  %v6227_v2 = vpack.c.bf16 %v5040_v56, %v5036_v55  ;;  %v5080_v55 = vld [vmem:[%s11649_s4 + $0x6e0] sm:$0xff]  ;;  %v6245_v56 = vpack.c.bf16 %v5081_v48, %v5077_v47 }
  0xf7   : > { %6206 = vmatprep.subr.bf16.mxu1 %v6205_v62  ;;  %6270 = vmatprep.subr.bf16.mxu0 %v6269_v63  ;;  %v5045_v62 = vld [vmem:[%s11649_s4 + $0x5c8] sm:$0xff] }
  0xf8   : > { %v5049_v63 = vld [vmem:[%s11649_s4 + $0x5e8] sm:$0xff] }
  0xf9   : > { %6208 = vmatpush1.bf16.msra.mxu1 %v6207_v3  ;;  %6272 = vmatpush1.bf16.msra.mxu0 %v6271_v4  ;;  %v6291_v3 = vpack.c.bf16 %v5042_v61, %v5038_v60  ;;  %v5044_v4 = vld [vmem:[%s11649_s4 + $0x5c0] sm:$0xff]  ;;  %v6229_v6 = vpack.c.bf16 %v5049_v63, %v5045_v62  ;;  %v5082_v60 = vld [vmem:[%s11649_s4 + $0x6f0] sm:$0xff]  ;;  %v5085_v61 = vld [vmem:[%s11649_s4 + $0x708] sm:$0xff] }
  0xfa   : > { %6210 = vmatprep.subr.bf16.mxu1 %v6209_v8  ;;  %6274 = vmatprep.subr.bf16.mxu0 %v6273_v9  ;;  %v6293_v8 = vpack.c.bf16 %v5051_v1, %v5047_v0  ;;  %v5046_v9 = vld [vmem:[%s11649_s4 + $0x5d0] sm:$0xff]  ;;  %v6231_v15 = vpack.c.bf16 %v5048_v5, %v5044_v4  ;;  %v5089_v62 = vld [vmem:[%s11649_s4 + $0x728] sm:$0xff]  ;;  %v5087_v63 = vld [vmem:[%s11649_s4 + $0x718] sm:$0xff] }
  0xfb   : > { %v5091_v0 = vld [vmem:[%s11649_s4 + $0x738] sm:$0xff]  ;;  %v5088_v4 = vld [vmem:[%s11649_s4 + $0x720] sm:$0xff]  ;;  %v6249_v5 = vpack.c.bf16 %v5089_v62, %v5085_v61 }
  0xfd   : > { %6212 = vmatpush1.bf16.msra.mxu1 %v6211_v16  ;;  %6276 = vmatpush1.bf16.msra.mxu0 %v6275_v17  ;;  %v6295_v16 = vpack.c.bf16 %v5050_v10, %v5046_v9  ;;  %v5052_v17 = vld [vmem:[%s11649_s4 + $0x600] sm:$0xff]  ;;  %v5090_v9 = vld [vmem:[%s11649_s4 + $0x730] sm:$0xff]  ;;  %v5093_v10 = vld [vmem:[%s11649_s4 + $0x748] sm:$0xff] }
  0xfe   : > { %6214 = vmatprep.subr.bf16.mxu1 %v6213_v20  ;;  %6278 = vmatprep.subr.bf16.mxu0 %v6277_v21  ;;  %v6297_v20 = vpack.c.bf16 %v5059_v14, %v5055_v13  ;;  %v5054_v21 = vld [vmem:[%s11649_s4 + $0x610] sm:$0xff]  ;;  %v6235_v27 = vpack.c.bf16 %v5056_v18, %v5052_v17  ;;  %v5099_v13 = vld [vmem:[%s11649_s4 + $0x778] sm:$0xff]  ;;  %v5096_v17 = vld [vmem:[%s11649_s4 + $0x760] sm:$0xff]  ;;  %v6253_v18 = vpack.c.bf16 %v5097_v11, %v5093_v10 }
  0xff   : > { %v5152_v10 = vld [vmem:[%s11649_s4 + $0x8b8] sm:$0xff]  ;;  %v781_v11 = vld [vmem:[%s11648_s3] sm:$0x7f] }
 0x101   : > { %6216 = vmatpush1.bf16.msra.mxu1 %v6215_v28  ;;  %6280 = vmatpush1.bf16.msra.mxu0 %v6279_v29  ;;  %v6299_v28 = vpack.c.bf16 %v5058_v22, %v5054_v21  ;;  %v5060_v29 = vld [vmem:[%s11649_s4 + $0x640] sm:$0xff]  ;;  %v5098_v21 = vld [vmem:[%s11649_s4 + $0x770] sm:$0xff]  ;;  %v5101_v22 = vld [vmem:[%s11649_s4 + $0x788] sm:$0xff] }
 0x102   : > { %6218 = vmatprep.subr.bf16.mxu1 %v6217_v32  ;;  %6282 = vmatprep.subr.bf16.mxu0 %v6281_v33  ;;  %v6301_v32 = vpack.c.bf16 %v5067_v26, %v5063_v25  ;;  %v5062_v33 = vld [vmem:[%s11649_s4 + $0x650] sm:$0xff]  ;;  %v6239_v39 = vpack.c.bf16 %v5064_v30, %v5060_v29  ;;  %v5107_v25 = vld [vmem:[%s11649_s4 + $0x7b8] sm:$0xff]  ;;  %v5104_v29 = vld [vmem:[%s11649_s4 + $0x7a0] sm:$0xff]  ;;  %v6257_v30 = vpack.c.bf16 %v5105_v23, %v5101_v22 }
 0x103   : > { %v5160_v22 = vld [vmem:[%s11649_s4 + $0x8f8] sm:$0xff] }
 0x105   : > { %6220 = vmatpush1.bf16.msra.mxu1 %v6219_v40  ;;  %6284 = vmatpush1.bf16.msra.mxu0 %v6283_v41  ;;  %v6303_v40 = vpack.c.bf16 %v5066_v34, %v5062_v33  ;;  %v5068_v41 = vld [vmem:[%s11649_s4 + $0x680] sm:$0xff]  ;;  %v5106_v33 = vld [vmem:[%s11649_s4 + $0x7b0] sm:$0xff]  ;;  %v5109_v34 = vld [vmem:[%s11649_s4 + $0x7c8] sm:$0xff] }
 0x106   : > { %6222 = vmatprep.subr.bf16.mxu1 %v6221_v44  ;;  %6286 = vmatprep.subr.bf16.mxu0 %v6285_v45  ;;  %v6305_v44 = vpack.c.bf16 %v5075_v38, %v5071_v37  ;;  %v5070_v45 = vld [vmem:[%s11649_s4 + $0x690] sm:$0xff]  ;;  %v6243_v51 = vpack.c.bf16 %v5072_v42, %v5068_v41  ;;  %v5115_v37 = vld [vmem:[%s11649_s4 + $0x7f8] sm:$0xff]  ;;  %v6261_v41 = vpack.c.bf16 %v5113_v35, %v5109_v34 }
 0x107   : > { %v6325_v42 = vpack.c.bf16 %v5115_v37, %v5111_v36  ;;  %v5168_v34 = vld [vmem:[%s11649_s4 + $0x938] sm:$0xff] }
 0x109   : > { %6224 = vmatpush1.bf16.msra.mxu1 %v6223_v52  ;;  %6288 = vmatpush1.bf16.msra.mxu0 %v6287_v54  ;;  %v6307_v52 = vpack.c.bf16 %v5074_v46, %v5070_v45  ;;  %v5076_v54 = vld [vmem:[%s11649_s4 + $0x6c0] sm:$0xff]  ;;  %v5114_v45 = vld [vmem:[%s11649_s4 + $0x7f0] sm:$0xff] }
 0x10a   : > { %6226 = vmatprep.subr.bf16.mxu1 %v6225_v57  ;;  %6290 = vmatprep.subr.bf16.mxu0 %v6289_v59  ;;  %v6309_v57 = vpack.c.bf16 %v5083_v50, %v5079_v49  ;;  %v5078_v59 = vld [vmem:[%s11649_s4 + $0x6d0] sm:$0xff]  ;;  %v6247_v1 = vpack.c.bf16 %v5080_v55, %v5076_v54  ;;  %v5136_v54 = vld [vmem:[%s11649_s4 + $0x838] sm:$0xff] }
 0x10b   : > { %v5131_v55 = vld [vmem:[%s11649_s4 + $0x810] sm:$0xff] }
 0x10d   : > { %6228 = vmatpush1.bf16.msra.mxu1 %v6227_v2  ;;  %6292 = vmatpush1.bf16.msra.mxu0 %v6291_v3  ;;  %v6311_v2 = vpack.c.bf16 %v5082_v60, %v5078_v59  ;;  %v5084_v3 = vld [vmem:[%s11649_s4 + $0x700] sm:$0xff]  ;;  %v5116_v60 = vld [vmem:[%s11648_s3 + $0x8] sm:$0x7f] }
 0x10e   : > { %6230 = vmatprep.subr.bf16.mxu1 %v6229_v6  ;;  %6294 = vmatprep.subr.bf16.mxu0 %v6293_v8  ;;  %v6313_v6 = vpack.c.bf16 %v5091_v0, %v5087_v63  ;;  %v5086_v8 = vld [vmem:[%s11649_s4 + $0x710] sm:$0xff]  ;;  %v6251_v14 = vpack.c.bf16 %v5088_v4, %v5084_v3  ;;  %v5140_v0 = vld [vmem:[%s11649_s4 + $0x858] sm:$0xff] }
 0x10f   : > { %v5139_v3 = vld [vmem:[%s11649_s4 + $0x850] sm:$0xff] }
 0x110   : > { %v5143_v4 = vld [vmem:[%s11649_s4 + $0x870] sm:$0xff] }
 0x111   : > { %6232 = vmatpush1.bf16.msra.mxu1 %v6231_v15  ;;  %6296 = vmatpush1.bf16.msra.mxu0 %v6295_v16  ;;  %v6315_v15 = vpack.c.bf16 %v5090_v9, %v5086_v8  ;;  %v5092_v16 = vld [vmem:[%s11649_s4 + $0x740] sm:$0xff]  ;;  %v5134_v8 = vld [vmem:[%s11649_s4 + $0x828] sm:$0xff]  ;;  %v5148_v9 = vld [vmem:[%s11649_s4 + $0x898] sm:$0xff] }
 0x112   : > { %6234 = vmatprep.subr.bf16.mxu1 %v6233_v19  ;;  %6298 = vmatprep.subr.bf16.mxu0 %v6297_v20  ;;  %v6317_v19 = vpack.c.bf16 %v5099_v13, %v5095_v12  ;;  %v5094_v20 = vld [vmem:[%s11649_s4 + $0x750] sm:$0xff]  ;;  %v6255_v26 = vpack.c.bf16 %v5096_v17, %v5092_v16  ;;  %v6399_v12 = vpack.c.bf16 %v5143_v4, %v5139_v3  ;;  %v5170_v4 = vld [vmem:[%s11649_s4 + $0x948] sm:$0xff] }
 0x113   : > { %v5147_v16 = vld [vmem:[%s11649_s4 + $0x890] sm:$0xff]  ;;  %v6401_v17 = vpack.c.bf16 %v5152_v10, %v5148_v9 }
 0x114   : > { %v5183_v3 = vld [vmem:[%s11649_s4 + $0x9b0] sm:$0xff] }
 0x115   : > { %6236 = vmatpush1.bf16.msra.mxu1 %v6235_v27  ;;  %6300 = vmatpush1.bf16.msra.mxu0 %v6299_v28  ;;  %v6319_v27 = vpack.c.bf16 %v5098_v21, %v5094_v20  ;;  %v5100_v28 = vld [vmem:[%s11649_s4 + $0x780] sm:$0xff]  ;;  %v5142_v20 = vld [vmem:[%s11649_s4 + $0x868] sm:$0xff]  ;;  %v5156_v21 = vld [vmem:[%s11649_s4 + $0x8d8] sm:$0xff] }
 0x116   : > { %6238 = vmatprep.subr.bf16.mxu1 %v6237_v31  ;;  %6302 = vmatprep.subr.bf16.mxu0 %v6301_v32  ;;  %v6321_v31 = vpack.c.bf16 %v5107_v25, %v5103_v24  ;;  %v5102_v32 = vld [vmem:[%s11649_s4 + $0x790] sm:$0xff]  ;;  %v6259_v38 = vpack.c.bf16 %v5104_v29, %v5100_v28  ;;  %v6405_v29 = vpack.c.bf16 %v5160_v22, %v5156_v21 }
 0x117   : > { %v5155_v28 = vld [vmem:[%s11649_s4 + $0x8d0] sm:$0xff] }
 0x119   : > { %6240 = vmatpush1.bf16.msra.mxu1 %v6239_v39  ;;  %6304 = vmatpush1.bf16.msra.mxu0 %v6303_v40  ;;  %v6323_v39 = vpack.c.bf16 %v5106_v33, %v5102_v32  ;;  %v5108_v40 = vld [vmem:[%s11649_s4 + $0x7c0] sm:$0xff]  ;;  %v5150_v32 = vld [vmem:[%s11649_s4 + $0x8a8] sm:$0xff]  ;;  %v5164_v33 = vld [vmem:[%s11649_s4 + $0x918] sm:$0xff] }
 0x11a   : > { %6242 = vmatprep.subr.bf16.mxu1 %v6241_v43  ;;  %6306 = vmatprep.subr.bf16.mxu0 %v6305_v44  ;;  %v5112_v43 = vld [vmem:[%s11649_s4 + $0x7e0] sm:$0xff]  ;;  %v5110_v44 = vld [vmem:[%s11649_s4 + $0x7d0] sm:$0xff] }
 0x11b   : > { %v6263_v46 = vpack.c.bf16 %v5112_v43, %v5108_v40  ;;  %v6327_v47 = vpack.c.bf16 %v5114_v45, %v5110_v44  ;;  %v5163_v40 = vld [vmem:[%s11649_s4 + $0x910] sm:$0xff]  ;;  %v5158_v43 = vld [vmem:[%s11649_s4 + $0x8e8] sm:$0xff]  ;;  %v5172_v44 = vld [vmem:[%s11649_s4 + $0x958] sm:$0xff] }
 0x11c   : > { %v5176_v45 = vld [vmem:[%s11649_s4 + $0x978] sm:$0xff] }
 0x11d   : > { %6244 = vmatpush1.bf16.msra.mxu1 %v6243_v51  ;;  %6308 = vmatpush1.bf16.msra.mxu0 %v6307_v52  ;;  %v5132_v52 = vld [vmem:[%s11649_s4 + $0x818] sm:$0xff] }
 0x11e   : > { %6246 = vmatprep.subr.bf16.mxu1 %v6245_v56  ;;  %6310 = vmatprep.subr.bf16.mxu0 %v6309_v57  ;;  %v5135_v56 = vld [vmem:[%s11649_s4 + $0x830] sm:$0xff]  ;;  %v6393_v63 = vpack.c.bf16 %v5136_v54, %v5132_v52  ;;  %v6413_v52 = vpack.c.bf16 %v5176_v45, %v5172_v44 }
 0x11f   : > { %v5175_v54 = vld [vmem:[%s11649_s4 + $0x970] sm:$0xff] }
 0x121   : > { %6248 = vmatpush1.bf16.msra.mxu1 %v6247_v1  ;;  %6312 = vmatpush1.bf16.msra.mxu0 %v6311_v2  ;;  %v5144_v1 = vld [vmem:[%s11649_s4 + $0x878] sm:$0xff]  ;;  %v6395_v2 = vpack.c.bf16 %v5135_v56, %v5131_v55  ;;  %v5162_v55 = vld [vmem:[%s11649_s4 + $0x908] sm:$0xff] }
 0x122   : > { %6250 = vmatprep.subr.bf16.mxu1 %v6249_v5  ;;  %6314 = vmatprep.subr.bf16.mxu0 %v6313_v6  ;;  %v6397_v5 = vpack.c.bf16 %v5144_v1, %v5140_v0  ;;  %v5130_v6 = vld [vmem:[%s11649_s4 + $0x808] sm:$0xff]  ;;  %v5165_v0 = vld [vmem:[%s11649_s4 + $0x920] sm:$0xff]  ;;  %v5179_v1 = vld [vmem:[%s11649_s4 + $0x990] sm:$0xff] }
 0x123   : > { %v6329_v13 = vpack.c.bf16 %v5134_v8, %v5130_v6  ;;  %v5166_v56 = vld [vmem:[%s11649_s4 + $0x928] sm:$0xff]  ;;  %v5188_v6 = vld [vmem:[%s11649_s4 + $0x9d8] sm:$0xff]  ;;  %v6419_v10 = vpack.c.bf16 %v5183_v3, %v5179_v1  ;;  %v5223_v1 = vld [vmem:[%s11649_s4 + $0xaf0] sm:$0xff] }
 0x124   : > { %v5192_v8 = vld [vmem:[%s11649_s4 + $0x9f8] sm:$0xff]  ;;  %v5214_v3 = vld [vmem:[%s11649_s4 + $0xaa8] sm:$0xff] }
 0x125   : > { %6252 = vmatpush1.bf16.msra.mxu1 %v6251_v14  ;;  %6316 = vmatpush1.bf16.msra.mxu0 %v6315_v15  ;;  %v5129_v14 = vld [vmem:[%s11649_s4 + $0x800] sm:$0xff] }
 0x126   : > { %6254 = vmatprep.subr.bf16.mxu1 %v6253_v18  ;;  %6318 = vmatprep.subr.bf16.mxu0 %v6317_v19  ;;  %v5133_v15 = vld [vmem:[%s11649_s4 + $0x820] sm:$0xff]  ;;  %v5151_v18 = vld [vmem:[%s11649_s4 + $0x8b0] sm:$0xff]  ;;  %v5138_v19 = vld [vmem:[%s11649_s4 + $0x848] sm:$0xff] }
 0x127   : > { %v6331_v23 = vpack.c.bf16 %v5133_v15, %v5129_v14  ;;  %v6403_v24 = vpack.c.bf16 %v5151_v18, %v5147_v16  ;;  %v6333_v25 = vpack.c.bf16 %v5142_v20, %v5138_v19  ;;  %v5187_v14 = vld [vmem:[%s11649_s4 + $0x9d0] sm:$0xff]  ;;  %v6421_v15 = vpack.c.bf16 %v5192_v8, %v5188_v6  ;;  %v5182_v18 = vld [vmem:[%s11649_s4 + $0x9a8] sm:$0xff]  ;;  %v5196_v19 = vld [vmem:[%s11649_s4 + $0xa18] sm:$0xff] }
 0x128   : > { %v5191_v16 = vld [vmem:[%s11649_s4 + $0x9f0] sm:$0xff]  ;;  %v5200_v20 = vld [vmem:[%s11649_s4 + $0xa38] sm:$0xff] }
 0x129   : > { %6256 = vmatpush1.bf16.msra.mxu1 %v6255_v26  ;;  %6320 = vmatpush1.bf16.msra.mxu0 %v6319_v27  ;;  %v5137_v26 = vld [vmem:[%s11649_s4 + $0x840] sm:$0xff]  ;;  %v6423_v22 = vpack.c.bf16 %v5191_v16, %v5187_v14  ;;  %v5231_v14 = vld [vmem:[%s11649_s4 + $0xb30] sm:$0xff]  ;;  %v5222_v16 = vld [vmem:[%s11649_s4 + $0xae8] sm:$0xff] }
 0x12a   : > { %6258 = vmatprep.subr.bf16.mxu1 %v6257_v30  ;;  %6322 = vmatprep.subr.bf16.mxu0 %v6321_v31  ;;  %v5141_v27 = vld [vmem:[%s11649_s4 + $0x860] sm:$0xff]  ;;  %v5159_v30 = vld [vmem:[%s11649_s4 + $0x8f0] sm:$0xff]  ;;  %v5146_v31 = vld [vmem:[%s11649_s4 + $0x888] sm:$0xff] }
 0x12b   : > { %v6335_v35 = vpack.c.bf16 %v5141_v27, %v5137_v26  ;;  %v6407_v36 = vpack.c.bf16 %v5159_v30, %v5155_v28  ;;  %v6337_v37 = vpack.c.bf16 %v5150_v32, %v5146_v31  ;;  %v5195_v26 = vld [vmem:[%s11649_s4 + $0xa10] sm:$0xff]  ;;  %v6425_v27 = vpack.c.bf16 %v5200_v20, %v5196_v19  ;;  %v5190_v30 = vld [vmem:[%s11649_s4 + $0x9e8] sm:$0xff]  ;;  %v5204_v31 = vld [vmem:[%s11649_s4 + $0xa58] sm:$0xff] }
 0x12c   : > { %v5199_v28 = vld [vmem:[%s11649_s4 + $0xa30] sm:$0xff]  ;;  %v5208_v32 = vld [vmem:[%s11649_s4 + $0xa78] sm:$0xff] }
 0x12d   : > { %6260 = vmatpush1.bf16.msra.mxu1 %v6259_v38  ;;  %6324 = vmatpush1.bf16.msra.mxu0 %v6323_v39  ;;  %v5145_v38 = vld [vmem:[%s11649_s4 + $0x880] sm:$0xff] }
 0x12e   : > { %6262 = vmatprep.subr.bf16.mxu1 %v6261_v41  ;;  %6326 = vmatprep.subr.bf16.mxu0 %v6325_v42  ;;  %v5149_v39 = vld [vmem:[%s11649_s4 + $0x8a0] sm:$0xff]  ;;  %v6409_v41 = vpack.c.bf16 %v5168_v34, %v5164_v33  ;;  %v5154_v42 = vld [vmem:[%s11649_s4 + $0x8c8] sm:$0xff]  ;;  %v6427_v34 = vpack.c.bf16 %v5199_v28, %v5195_v26  ;;  %v5239_v26 = vld [vmem:[%s11649_s4 + $0xb70] sm:$0xff] }
 0x12f   : > { %v5230_v28 = vld [vmem:[%s11649_s4 + $0xb28] sm:$0xff] }
 0x131   : > { %6264 = vmatpush1.bf16.msra.mxu1 %v6263_v46  ;;  %6328 = vmatpush1.bf16.msra.mxu0 %v6327_v47  ;;  %v6339_v46 = vpack.c.bf16 %v5149_v39, %v5145_v38  ;;  %v5203_v38 = vld [vmem:[%s11649_s4 + $0xa50] sm:$0xff]  ;;  %v6429_v39 = vpack.c.bf16 %v5208_v32, %v5204_v31 }
 0x134   : > { %976 = vmatmul.mubr.f32.vlgmr.msra.gmra.mrb[2].mxu1 %v8015_v58  ;;  %1047 = vmatmul.mubr.f32.vlgmr.msra.gmra.mrb[4].mxu0 %v8015_v58 }
 0x135   : > { %1136 = vmatprep.mubr.f32.mxu0 %v7431_v7  ;;  %1207 = vmatprep.mubr.f32.mxu1 %v7431_v7 }
 0x1c7   : > { %v705_v48 = vpop.f32.mrb[0].mxu1  ;;  %v776_v49 = vpop.f32.mrb[2].mxu0 }
 0x1c8   : > { %v707_v50 = vpop.f32.mrb[1].mxu1  ;;  %v778_v51 = vpop.f32.mrb[3].mxu0 }
 0x207   : > { %v977_v57 = vpop.f32.mrb[2].mxu1  ;;  %v1048_v59 = vpop.f32.mrb[4].mxu0 }
 0x208   : > { %v979_v61 = vpop.f32.mrb[3].mxu1  ;;  %v1050_v62 = vpop.f32.mrb[5].mxu0 }
 0x209   : > { %5117 = vmatprep.subr.msk.mxu0 %vm1059_vm1, %v979_v61  ;;  %5120 = vmatprep.subr.msk.mxu1 %vm1059_vm1, %v1050_v62  ;;  %v6345_v62 = vpack.c.bf16 %v5166_v56, %v5162_v55  ;;  %v5220_v55 = vld [vmem:[%s11649_s4 + $0xad8] sm:$0xff] }
 0x20a   : > { %5118 = vmatpush1.msk.msra.mxu0 %vm1059_vm1, %v977_v57  ;;  %5121 = vmatpush1.msk.msra.mxu1 %vm1059_vm1, %v1048_v59  ;;  %v5180_v57 = vld [vmem:[%s11649_s4 + $0x998] sm:$0xff] }
 0x20b   : > { %5119 = vmatmul.mubr.msk.f32.vlgmr.msra.gmra.mrb[6].mxu0 %vm1055_vm2, %v5116_v60  ;;  %5122 = vmatmul.mubr.msk.f32.vlgmr.msra.gmra.mrb[4].mxu1 %vm1055_vm2, %v5116_v60  ;;  %v5184_v59 = vld [vmem:[%s11649_s4 + $0x9b8] sm:$0xff] }
 0x20c   : > { %5123 = vmatprep.subr.msk.mxu1 %vm1059_vm1, %v707_v50  ;;  %6394 = vmatprep.subr.bf16.mxu0 %v6393_v63  ;;  %v5157_v50 = vld [vmem:[%s11649_s4 + $0x8e0] sm:$0xff]  ;;  %v5224_v56 = vld [vmem:[%s11649_s4 + $0xaf8] sm:$0xff] }
 0x20d   : > { %5124 = vmatpush1.msk.msra.mxu1 %vm1059_vm1, %v705_v48  ;;  %6396 = vmatpush1.bf16.msra.mxu0 %v6395_v2  ;;  %v6341_v48 = vpack.c.bf16 %v5158_v43, %v5154_v42  ;;  %v5161_v63 = vld [vmem:[%s11649_s4 + $0x900] sm:$0xff]  ;;  %v6417_v2 = vpack.c.bf16 %v5184_v59, %v5180_v57  ;;  %v5212_v42 = vld [vmem:[%s11649_s4 + $0xa98] sm:$0xff] }
 0x20e   : > { %1635 = vmatprep.mubr.f32.mxu0 %v8007_v53  ;;  %5126 = vmatprep.subr.msk.mxu1 %vm1059_vm1, %v778_v51  ;;  %v5171_v51 = vld [vmem:[%s11649_s4 + $0x950] sm:$0xff]  ;;  %v6347_v9 = vpack.c.bf16 %v5165_v0, %v5161_v63  ;;  %v5216_v43 = vld [vmem:[%s11649_s4 + $0xab8] sm:$0xff]  ;;  %v6437_v0 = vpack.c.bf16 %v5224_v56, %v5220_v55  ;;  %v5241_v56 = vld [vmem:[%s11649_s4 + $0xb80] sm:$0xff] }
 0x20f   : > { %1293 = vmatprep.mubr.f32.mxu1 %v7431_v7  ;;  %6398 = vmatprep.subr.bf16.mxu0 %v6397_v5  ;;  %v6415_v61 = vpack.c.bf16 %v5175_v54, %v5171_v51  ;;  %v5174_v5 = vld [vmem:[%s11649_s4 + $0x968] sm:$0xff]  ;;  %v5215_v51 = vld [vmem:[%s11649_s4 + $0xab0] sm:$0xff] }
 0x210   : > { %5125 = vmatmul.mubr.msk.f32.vlgmr.msra.gmra.mrb[6].mxu1 %vm1055_vm2, %v781_v11  ;;  %v5206_v54 = vld [vmem:[%s11649_s4 + $0xa68] sm:$0xff]  ;;  %v5219_v63 = vld [vmem:[%s11649_s4 + $0xad0] sm:$0xff] }
 0x211   : > { %5127 = vmatpush1.msk.msra.mxu1 %vm1059_vm1, %v776_v49  ;;  %6400 = vmatpush1.bf16.msra.mxu0 %v6399_v12  ;;  %v5153_v49 = vld [vmem:[%s11649_s4 + $0x8c0] sm:$0xff]  ;;  %v6439_v8 = vpack.c.bf16 %v5223_v1, %v5219_v63 }
 0x212   : > { %1364 = vmatprep.mubr.f32.mxu1 %v7431_v7  ;;  %6330 = vmatprep.subr.bf16.mxu1 %v6329_v13  ;;  %v6343_v60 = vpack.c.bf16 %v5157_v50, %v5153_v49  ;;  %v5169_v12 = vld [vmem:[%s11649_s4 + $0x940] sm:$0xff]  ;;  %v5211_v49 = vld [vmem:[%s11649_s4 + $0xa90] sm:$0xff]  ;;  %v6433_v50 = vpack.c.bf16 %v5216_v43, %v5212_v42 }
 0x213   : > { %6402 = vmatprep.subr.bf16.mxu0 %v6401_v17  ;;  %v5173_v13 = vld [vmem:[%s11649_s4 + $0x960] sm:$0xff]  ;;  %v5178_v17 = vld [vmem:[%s11649_s4 + $0x988] sm:$0xff]  ;;  %v6435_v59 = vpack.c.bf16 %v5215_v51, %v5211_v49  ;;  %v5255_v49 = vld [vmem:[%s11649_s4 + $0xbf0] sm:$0xff] }
 0x214   : > { %5128 = vmatmul.mubr.msk.f32.vlgmr.msra.gmra.mrb[4].mxu1 %vm1055_vm2, %v781_v11  ;;  %v6349_v11 = vpack.c.bf16 %v5174_v5, %v5170_v4  ;;  %v6351_v21 = vpack.c.bf16 %v5173_v13, %v5169_v12  ;;  %v5228_v4 = vld [vmem:[%s11649_s4 + $0xb18] sm:$0xff]  ;;  %v5227_v12 = vld [vmem:[%s11649_s4 + $0xb10] sm:$0xff]  ;;  %v5246_v51 = vld [vmem:[%s11649_s4 + $0xba8] sm:$0xff] }
 0x215   : > { %6332 = vmatpush1.bf16.msra.mxu1 %v6331_v23  ;;  %1564 = vmatprep.mubr.f32.mxu1 %v8007_v53  ;;  %v5167_v53 = vld [vmem:[%s11649_s4 + $0x930] sm:$0xff]  ;;  %v6353_v23 = vpack.c.bf16 %v5182_v18, %v5178_v17  ;;  %v5232_v5 = vld [vmem:[%s11649_s4 + $0xb38] sm:$0xff]  ;;  %v6443_v20 = vpack.c.bf16 %v5231_v14, %v5227_v12  ;;  %v5249_v63 = vld [vmem:[%s11649_s4 + $0xbc0] sm:$0xff] }
 0x216   : > { %6404 = vmatpush1.bf16.msra.mxu0 %v6403_v24  ;;  %6334 = vmatprep.subr.bf16.mxu1 %v6333_v25  ;;  %v6411_v47 = vpack.c.bf16 %v5167_v53, %v5163_v40  ;;  %v5177_v24 = vld [vmem:[%s11649_s4 + $0x980] sm:$0xff]  ;;  %v5207_v40 = vld [vmem:[%s11649_s4 + $0xa70] sm:$0xff]  ;;  %v5198_v53 = vld [vmem:[%s11649_s4 + $0xa28] sm:$0xff]  ;;  %v6441_v13 = vpack.c.bf16 %v5232_v5, %v5228_v4 }
 0x217   : > { %6406 = vmatprep.subr.bf16.mxu0 %v6405_v29  ;;  %v5181_v25 = vld [vmem:[%s11649_s4 + $0x9a0] sm:$0xff]  ;;  %v5186_v29 = vld [vmem:[%s11649_s4 + $0x9c8] sm:$0xff]  ;;  %v6431_v45 = vpack.c.bf16 %v5207_v40, %v5203_v38  ;;  %v5236_v17 = vld [vmem:[%s11649_s4 + $0xb58] sm:$0xff] }
 0x218   : > { %v6355_v33 = vpack.c.bf16 %v5181_v25, %v5177_v24  ;;  %v5240_v18 = vld [vmem:[%s11649_s4 + $0xb78] sm:$0xff]  ;;  %v5235_v24 = vld [vmem:[%s11649_s4 + $0xb50] sm:$0xff]  ;;  %v5238_v40 = vld [vmem:[%s11649_s4 + $0xb68] sm:$0xff] }
 0x219   : > { %6336 = vmatpush1.bf16.msra.mxu1 %v6335_v35  ;;  %v6357_v35 = vpack.c.bf16 %v5190_v30, %v5186_v29  ;;  %v6445_v25 = vpack.c.bf16 %v5240_v18, %v5236_v17  ;;  %v5244_v29 = vld [vmem:[%s11649_s4 + $0xb98] sm:$0xff]  ;;  %v6447_v32 = vpack.c.bf16 %v5239_v26, %v5235_v24  ;;  %v5247_v38 = vld [vmem:[%s11649_s4 + $0xbb0] sm:$0xff]  ;;  %v1835_v5 = vld [vmem:[%s11652_s7] sm:$0xff] }
 0x21a   : > { %6408 = vmatpush1.bf16.msra.mxu0 %v6407_v36  ;;  %6338 = vmatprep.subr.bf16.mxu1 %v6337_v37  ;;  %v5185_v36 = vld [vmem:[%s11649_s4 + $0x9c0] sm:$0xff]  ;;  %v5248_v30 = vld [vmem:[%s11649_s4 + $0xbb8] sm:$0xff]  ;;  %v1852_v14 = vld [vmem:[%s11652_s7 + $0x88] sm:$0xff] }
 0x21b   : > { %6410 = vmatprep.subr.bf16.mxu0 %v6409_v41  ;;  %v5189_v37 = vld [vmem:[%s11649_s4 + $0x9e0] sm:$0xff]  ;;  %v5194_v41 = vld [vmem:[%s11649_s4 + $0xa08] sm:$0xff] }
 0x21c   : > { %v6359_v44 = vpack.c.bf16 %v5189_v37, %v5185_v36  ;;  %v5243_v36 = vld [vmem:[%s11649_s4 + $0xb90] sm:$0xff]  ;;  %v6449_v37 = vpack.c.bf16 %v5248_v30, %v5244_v29  ;;  %v1847_v12 = vld [vmem:[%s11652_s7 + $0x60] sm:$0xff]  ;;  %v1868_v26 = vld [vmem:[%s11652_s7 + $0x108] sm:$0xff] }
 0x21d   : > { %6340 = vmatpush1.bf16.msra.mxu1 %v6339_v46  ;;  %v6361_v46 = vpack.c.bf16 %v5198_v53, %v5194_v41  ;;  %v5252_v41 = vld [vmem:[%s11649_s4 + $0xbd8] sm:$0xff]  ;;  %v6451_v43 = vpack.c.bf16 %v5247_v38, %v5243_v36  ;;  %v1851_v17 = vld [vmem:[%s11652_s7 + $0x80] sm:$0xff]  ;;  %v1884_v38 = vld [vmem:[%s11652_s7 + $0x188] sm:$0xff] }
 0x21e   : > { %6412 = vmatpush1.bf16.msra.mxu0 %v6411_v47  ;;  %6342 = vmatprep.subr.bf16.mxu1 %v6341_v48  ;;  %v5193_v47 = vld [vmem:[%s11649_s4 + $0xa00] sm:$0xff]  ;;  %v5256_v53 = vld [vmem:[%s11649_s4 + $0xbf8] sm:$0xff] }
 0x21f   : > { %6414 = vmatprep.subr.bf16.mxu0 %v6413_v52  ;;  %v5197_v48 = vld [vmem:[%s11649_s4 + $0xa20] sm:$0xff]  ;;  %v5202_v52 = vld [vmem:[%s11649_s4 + $0xa48] sm:$0xff] }
 0x220   : > { %v6363_v57 = vpack.c.bf16 %v5197_v48, %v5193_v47  ;;  %v5251_v47 = vld [vmem:[%s11649_s4 + $0xbd0] sm:$0xff]  ;;  %v6453_v48 = vpack.c.bf16 %v5256_v53, %v5252_v41  ;;  %v1855_v18 = vld [vmem:[%s11652_s7 + $0xa0] sm:$0xff] }
 0x221   : > { %6344 = vmatpush1.bf16.msra.mxu1 %v6343_v60  ;;  %v6365_v60 = vpack.c.bf16 %v5206_v54, %v5202_v52  ;;  %v6455_v54 = vpack.c.bf16 %v5255_v49, %v5251_v47  ;;  %v1863_v24 = vld [vmem:[%s11652_s7 + $0xe0] sm:$0xff]  ;;  %v1900_v49 = vld [vmem:[%s11652_s7 + $0x208] sm:$0xff] }
 0x222   : > { %6416 = vmatpush1.bf16.msra.mxu0 %v6415_v61  ;;  %6346 = vmatprep.subr.bf16.mxu1 %v6345_v62  ;;  %v5201_v61 = vld [vmem:[%s11649_s4 + $0xa40] sm:$0xff] }
 0x223   : > { %6418 = vmatprep.subr.bf16.mxu0 %v6417_v2  ;;  %v5205_v62 = vld [vmem:[%s11649_s4 + $0xa60] sm:$0xff]  ;;  %v5210_v2 = vld [vmem:[%s11649_s4 + $0xa88] sm:$0xff] }
 0x224   : > { %v6367_v6 = vpack.c.bf16 %v5205_v62, %v5201_v61  ;;  %v1867_v29 = vld [vmem:[%s11652_s7 + $0x100] sm:$0xff] }
 0x225   : > { %6348 = vmatpush1.bf16.msra.mxu1 %v6347_v9  ;;  %v6369_v9 = vpack.c.bf16 %v5214_v3, %v5210_v2  ;;  %v1836_v2 = vld [vmem:[%s11652_s7 + $0x8] sm:$0xff]  ;;  %v1871_v30 = vld [vmem:[%s11652_s7 + $0x120] sm:$0xff] }
 0x226   : > { %6420 = vmatpush1.bf16.msra.mxu0 %v6419_v10  ;;  %6350 = vmatprep.subr.bf16.mxu1 %v6349_v11  ;;  %v5209_v10 = vld [vmem:[%s11649_s4 + $0xa80] sm:$0xff]  ;;  %v1840_v3 = vld [vmem:[%s11652_s7 + $0x28] sm:$0xff] }
 0x227   : > { %6422 = vmatprep.subr.bf16.mxu0 %v6421_v15  ;;  %v5213_v11 = vld [vmem:[%s11649_s4 + $0xaa0] sm:$0xff]  ;;  %v5218_v15 = vld [vmem:[%s11649_s4 + $0xac8] sm:$0xff]  ;;  %v6457_v4 = vpack.c.bf16 %v1840_v3, %v1836_v2 }
 0x228   : > { %v6371_v19 = vpack.c.bf16 %v5213_v11, %v5209_v10  ;;  %v1843_v11 = vld [vmem:[%s11652_s7 + $0x40] sm:$0xff] }
 0x229   : > { %6352 = vmatpush1.bf16.msra.mxu1 %v6351_v21  ;;  %v6373_v21 = vpack.c.bf16 %v5222_v16, %v5218_v15  ;;  %v1856_v15 = vld [vmem:[%s11652_s7 + $0xa8] sm:$0xff]  ;;  %v1879_v36 = vld [vmem:[%s11652_s7 + $0x160] sm:$0xff] }
 0x22a   : > { %6424 = vmatpush1.bf16.msra.mxu0 %v6423_v22  ;;  %6354 = vmatprep.subr.bf16.mxu1 %v6353_v23  ;;  %v5217_v22 = vld [vmem:[%s11649_s4 + $0xac0] sm:$0xff]  ;;  %v6465_v16 = vpack.c.bf16 %v1856_v15, %v1852_v14 }
 0x22b   : > { %6426 = vmatprep.subr.bf16.mxu0 %v6425_v27  ;;  %v5221_v23 = vld [vmem:[%s11649_s4 + $0xae0] sm:$0xff]  ;;  %v5226_v27 = vld [vmem:[%s11649_s4 + $0xb08] sm:$0xff] }
 0x22c   : > { %v6375_v31 = vpack.c.bf16 %v5221_v23, %v5217_v22  ;;  %v1859_v23 = vld [vmem:[%s11652_s7 + $0xc0] sm:$0xff] }
 0x22d   : > { %6356 = vmatpush1.bf16.msra.mxu1 %v6355_v33  ;;  %v6377_v33 = vpack.c.bf16 %v5230_v28, %v5226_v27  ;;  %v1872_v27 = vld [vmem:[%s11652_s7 + $0x128] sm:$0xff]  ;;  %v1883_v41 = vld [vmem:[%s11652_s7 + $0x180] sm:$0xff] }
 0x22e   : > { %6428 = vmatpush1.bf16.msra.mxu0 %v6427_v34  ;;  %6358 = vmatprep.subr.bf16.mxu1 %v6357_v35  ;;  %v5225_v34 = vld [vmem:[%s11649_s4 + $0xb00] sm:$0xff]  ;;  %v6473_v28 = vpack.c.bf16 %v1872_v27, %v1868_v26  ;;  %v1838_v27 = vld [vmem:[%s11652_s7 + $0x18] sm:$0xff] }
 0x22f   : > { %6430 = vmatprep.subr.bf16.mxu0 %v6429_v39  ;;  %v5229_v35 = vld [vmem:[%s11649_s4 + $0xb20] sm:$0xff]  ;;  %v5234_v39 = vld [vmem:[%s11649_s4 + $0xb48] sm:$0xff] }
 0x230   : > { %v6379_v42 = vpack.c.bf16 %v5229_v35, %v5225_v34  ;;  %v1875_v35 = vld [vmem:[%s11652_s7 + $0x140] sm:$0xff] }
 0x231   : > { %6360 = vmatpush1.bf16.msra.mxu1 %v6359_v44  ;;  %v6381_v44 = vpack.c.bf16 %v5238_v40, %v5234_v39  ;;  %v1888_v39 = vld [vmem:[%s11652_s7 + $0x1a8] sm:$0xff]  ;;  %v1887_v53 = vld [vmem:[%s11652_s7 + $0x1a0] sm:$0xff] }
 0x232   : > { %6432 = vmatpush1.bf16.msra.mxu0 %v6431_v45  ;;  %6362 = vmatprep.subr.bf16.mxu1 %v6361_v46  ;;  %v5233_v45 = vld [vmem:[%s11649_s4 + $0xb40] sm:$0xff]  ;;  %v6481_v40 = vpack.c.bf16 %v1888_v39, %v1884_v38  ;;  %v1845_v39 = vld [vmem:[%s11652_s7 + $0x50] sm:$0xff] }
 0x233   : > { %6434 = vmatprep.subr.bf16.mxu0 %v6433_v50  ;;  %v5237_v46 = vld [vmem:[%s11649_s4 + $0xb60] sm:$0xff]  ;;  %v5242_v50 = vld [vmem:[%s11649_s4 + $0xb88] sm:$0xff] }
 0x234   : > { %v6383_v52 = vpack.c.bf16 %v5237_v46, %v5233_v45  ;;  %v6385_v55 = vpack.c.bf16 %v5246_v51, %v5242_v50  ;;  %v1891_v46 = vld [vmem:[%s11652_s7 + $0x1c0] sm:$0xff]  ;;  %v1904_v50 = vld [vmem:[%s11652_s7 + $0x228] sm:$0xff] }
 0x235   : > { %6364 = vmatpush1.bf16.msra.mxu1 %v6363_v57  ;;  %v5245_v57 = vld [vmem:[%s11649_s4 + $0xba0] sm:$0xff]  ;;  %v6489_v51 = vpack.c.bf16 %v1904_v50, %v1900_v49  ;;  %v1861_v50 = vld [vmem:[%s11652_s7 + $0xd0] sm:$0xff] }
 0x236   : > { %6436 = vmatpush1.bf16.msra.mxu0 %v6435_v59  ;;  %6366 = vmatprep.subr.bf16.mxu1 %v6365_v60  ;;  %v5250_v59 = vld [vmem:[%s11649_s4 + $0xbc8] sm:$0xff]  ;;  %v6387_v61 = vpack.c.bf16 %v5245_v57, %v5241_v56  ;;  %v1895_v47 = vld [vmem:[%s11652_s7 + $0x1e0] sm:$0xff] }
 0x237   : > { %6438 = vmatprep.subr.bf16.mxu0 %v6437_v0  ;;  %v5254_v60 = vld [vmem:[%s11649_s4 + $0xbe8] sm:$0xff]  ;;  %v5253_v0 = vld [vmem:[%s11649_s4 + $0xbe0] sm:$0xff] }
 0x238   : > { %v6389_v62 = vpack.c.bf16 %v5254_v60, %v5250_v59  ;;  %v6391_v1 = vpack.c.bf16 %v5253_v0, %v5249_v63  ;;  %v1908_v56 = vld [vmem:[%s11652_s7 + $0x248] sm:$0xff]  ;;  %v1907_v60 = vld [vmem:[%s11652_s7 + $0x240] sm:$0xff] }
 0x239   : > { %6368 = vmatpush1.bf16.msra.mxu1 %v6367_v6  ;;  %v1839_v6 = vld [vmem:[%s11652_s7 + $0x20] sm:$0xff]  ;;  %v1912_v57 = vld [vmem:[%s11652_s7 + $0x268] sm:$0xff] }
 0x23a   : > { %6440 = vmatpush1.bf16.msra.mxu0 %v6439_v8  ;;  %6370 = vmatprep.subr.bf16.mxu1 %v6369_v9  ;;  %v1844_v8 = vld [vmem:[%s11652_s7 + $0x48] sm:$0xff]  ;;  %v6493_v59 = vpack.c.bf16 %v1912_v57, %v1908_v56  ;;  %v1915_v2 = vld [vmem:[%s11652_s7 + $0x280] sm:$0xff]  ;;  %v1869_v57 = vld [vmem:[%s11652_s7 + $0x110] sm:$0xff] }
 0x23b   : > { %6442 = vmatprep.subr.bf16.mxu0 %v6441_v13  ;;  %v1848_v9 = vld [vmem:[%s11652_s7 + $0x68] sm:$0xff]  ;;  %v6463_v13 = vpack.c.bf16 %v1847_v12, %v1843_v11  ;;  %v1919_v3 = vld [vmem:[%s11652_s7 + $0x2a0] sm:$0xff] }
 0x23c   : > { %v6461_v10 = vpack.c.bf16 %v1848_v9, %v1844_v8  ;;  %v1916_v63 = vld [vmem:[%s11652_s7 + $0x288] sm:$0xff]  ;;  %v1923_v8 = vld [vmem:[%s11652_s7 + $0x2c0] sm:$0xff] }
 0x23d   : > { %6372 = vmatpush1.bf16.msra.mxu1 %v6371_v19  ;;  %v6467_v19 = vpack.c.bf16 %v1855_v18, %v1851_v17  ;;  %v1920_v0 = vld [vmem:[%s11652_s7 + $0x2a8] sm:$0xff]  ;;  %v1927_v9 = vld [vmem:[%s11652_s7 + $0x2e0] sm:$0xff] }
 0x23e   : > { %6444 = vmatpush1.bf16.msra.mxu0 %v6443_v20  ;;  %6374 = vmatprep.subr.bf16.mxu1 %v6373_v21  ;;  %v1860_v20 = vld [vmem:[%s11652_s7 + $0xc8] sm:$0xff]  ;;  %v1931_v14 = vld [vmem:[%s11652_s7 + $0x300] sm:$0xff] }
 0x23f   : > { %6446 = vmatprep.subr.bf16.mxu0 %v6445_v25  ;;  %v1864_v21 = vld [vmem:[%s11652_s7 + $0xe8] sm:$0xff]  ;;  %v6471_v25 = vpack.c.bf16 %v1863_v24, %v1859_v23  ;;  %v1935_v15 = vld [vmem:[%s11652_s7 + $0x320] sm:$0xff] }
 0x240   : > { %v6469_v22 = vpack.c.bf16 %v1864_v21, %v1860_v20  ;;  %v1932_v11 = vld [vmem:[%s11652_s7 + $0x308] sm:$0xff]  ;;  %v6507_v18 = vpack.c.bf16 %v1935_v15, %v1931_v14  ;;  %v1943_v23 = vld [vmem:[%s11652_s7 + $0x360] sm:$0xff]  ;;  %v1902_v14 = vld [vmem:[%s11652_s7 + $0x218] sm:$0xff] }
 0x241   : > { %6376 = vmatpush1.bf16.msra.mxu1 %v6375_v31  ;;  %v6475_v31 = vpack.c.bf16 %v1871_v30, %v1867_v29  ;;  %v1936_v12 = vld [vmem:[%s11652_s7 + $0x328] sm:$0xff]  ;;  %v1906_v15 = vld [vmem:[%s11652_s7 + $0x238] sm:$0xff] }
 0x242   : > { %6448 = vmatpush1.bf16.msra.mxu0 %v6447_v32  ;;  %6378 = vmatprep.subr.bf16.mxu1 %v6377_v33  ;;  %v1876_v32 = vld [vmem:[%s11652_s7 + $0x148] sm:$0xff] }
 0x243   : > { %6450 = vmatprep.subr.bf16.mxu0 %v6449_v37  ;;  %v1880_v33 = vld [vmem:[%s11652_s7 + $0x168] sm:$0xff]  ;;  %v6479_v37 = vpack.c.bf16 %v1879_v36, %v1875_v35  ;;  %v1846_v35 = vld [vmem:[%s11652_s7 + $0x58] sm:$0xff] }
 0x244   : > { %v6477_v34 = vpack.c.bf16 %v1880_v33, %v1876_v32  ;;  %v1944_v20 = vld [vmem:[%s11652_s7 + $0x368] sm:$0xff]  ;;  %v1837_v33 = vld [vmem:[%s11652_s7 + $0x10] sm:$0xff]  ;;  %v1850_v36 = vld [vmem:[%s11652_s7 + $0x78] sm:$0xff] }
 0x245   : > { %6380 = vmatpush1.bf16.msra.mxu1 %v6379_v42  ;;  %v6483_v42 = vpack.c.bf16 %v1887_v53, %v1883_v41  ;;  %v6573_v38 = vpack.c.bf16 %v1850_v36, %v1846_v35  ;;  %v1854_v41 = vld [vmem:[%s11652_s7 + $0x98] sm:$0xff] }
 0x246   : > { %6452 = vmatpush1.bf16.msra.mxu0 %v6451_v43  ;;  %6382 = vmatprep.subr.bf16.mxu1 %v6381_v44  ;;  %v1892_v43 = vld [vmem:[%s11652_s7 + $0x1c8] sm:$0xff]  ;;  %v1858_v53 = vld [vmem:[%s11652_s7 + $0xb8] sm:$0xff] }
 0x247   : > { %6454 = vmatprep.subr.bf16.mxu0 %v6453_v48  ;;  %v1896_v44 = vld [vmem:[%s11652_s7 + $0x1e8] sm:$0xff]  ;;  %v6487_v48 = vpack.c.bf16 %v1895_v47, %v1891_v46  ;;  %v1862_v46 = vld [vmem:[%s11652_s7 + $0xd8] sm:$0xff] }
 0x248   : > { %v6485_v45 = vpack.c.bf16 %v1896_v44, %v1892_v43  ;;  %v6577_v43 = vpack.c.bf16 %v1858_v53, %v1854_v41  ;;  %v1853_v44 = vld [vmem:[%s11652_s7 + $0x90] sm:$0xff]  ;;  %v1866_v47 = vld [vmem:[%s11652_s7 + $0xf8] sm:$0xff] }
 0x249   : > { %6384 = vmatpush1.bf16.msra.mxu1 %v6383_v52  ;;  %v1899_v52 = vld [vmem:[%s11652_s7 + $0x200] sm:$0xff]  ;;  %v6581_v49 = vpack.c.bf16 %v1866_v47, %v1862_v46  ;;  %v1930_v35 = vld [vmem:[%s11652_s7 + $0x2f8] sm:$0xff] }
 0x24a   : > { %6456 = vmatpush1.bf16.msra.mxu0 %v6455_v54  ;;  %6386 = vmatprep.subr.bf16.mxu1 %v6385_v55  ;;  %v1903_v54 = vld [vmem:[%s11652_s7 + $0x220] sm:$0xff]  ;;  %v1938_v41 = vld [vmem:[%s11652_s7 + $0x338] sm:$0xff] }
 0x24b   : > { %6458 = vmatprep.subr.bf16.mxu0 %v6457_v4  ;;  %v6491_v55 = vpack.c.bf16 %v1903_v54, %v1899_v52  ;;  %v6499_v4 = vpack.c.bf16 %v1919_v3, %v1915_v2  ;;  %v1870_v52 = vld [vmem:[%s11652_s7 + $0x118] sm:$0xff] }
 0x24c   : > { %v1874_v54 = vld [vmem:[%s11652_s7 + $0x138] sm:$0xff] }
 0x24d   : > { %6388 = vmatpush1.bf16.msra.mxu1 %v6387_v61  ;;  %1636 = vmatmul.mubr.f32.vlgmr.msra.gmra.mrb[8].mxu0 %v8015_v58  ;;  %v1911_v61 = vld [vmem:[%s11652_s7 + $0x260] sm:$0xff]  ;;  %v6585_v56 = vpack.c.bf16 %v1874_v54, %v1870_v52  ;;  %v1886_v2 = vld [vmem:[%s11652_s7 + $0x198] sm:$0xff]  ;;  %v1948_v52 = vld [vmem:[%s11652_s7 + $0x388] sm:$0xff] }
 0x24e   : > { %6390 = vmatprep.subr.bf16.mxu1 %v6389_v62  ;;  %v6495_v62 = vpack.c.bf16 %v1911_v61, %v1907_v60  ;;  %v1878_v60 = vld [vmem:[%s11652_s7 + $0x158] sm:$0xff]  ;;  %v1952_v54 = vld [vmem:[%s11652_s7 + $0x3a8] sm:$0xff] }
 0x24f   : > { %v1882_v61 = vld [vmem:[%s11652_s7 + $0x178] sm:$0xff] }
 0x250   : > { %v1890_v3 = vld [vmem:[%s11652_s7 + $0x1b8] sm:$0xff] }
 0x251   : > { %6392 = vmatpush1.bf16.msra.mxu1 %v6391_v1  ;;  %v6497_v1 = vpack.c.bf16 %v1920_v0, %v1916_v63  ;;  %v6589_v63 = vpack.c.bf16 %v1882_v61, %v1878_v60  ;;  %v1877_v0 = vld [vmem:[%s11652_s7 + $0x150] sm:$0xff]  ;;  %v1946_v46 = vld [vmem:[%s11652_s7 + $0x378] sm:$0xff]  ;;  %v1951_v60 = vld [vmem:[%s11652_s7 + $0x3a0] sm:$0xff] }
 0x254   : > { %1565 = vmatmul.mubr.f32.vlgmr.msra.gmra.mrb[8].mxu1 %v8015_v58  ;;  %v6459_v58 = vpack.c.bf16 %v1839_v6, %v1835_v5  ;;  %v1924_v5 = vld [vmem:[%s11652_s7 + $0x2c8] sm:$0xff] }
 0x255   : > { %1723 = vmatprep.mubr.f32.mxu1 %v7431_v7  ;;  %v1928_v6 = vld [vmem:[%s11652_s7 + $0x2e8] sm:$0xff] }
 0x256   : > { %6460 = vmatpush1.bf16.msra.mxu0 %v6459_v58  ;;  %v6501_v58 = vpack.c.bf16 %v1928_v6, %v1924_v5  ;;  %v6593_v5 = vpack.c.bf16 %v1890_v3, %v1886_v2  ;;  %v1885_v6 = vld [vmem:[%s11652_s7 + $0x190] sm:$0xff]  ;;  %v1956_v2 = vld [vmem:[%s11652_s7 + $0x3c8] sm:$0xff] }
 0x257   : > { %6462 = vmatprep.subr.bf16.mxu0 %v6461_v10  ;;  %v6503_v10 = vpack.c.bf16 %v1927_v9, %v1923_v8  ;;  %v1894_v8 = vld [vmem:[%s11652_s7 + $0x1d8] sm:$0xff]  ;;  %v1960_v3 = vld [vmem:[%s11652_s7 + $0x3e8] sm:$0xff] }
 0x258   : > { %v1898_v9 = vld [vmem:[%s11652_s7 + $0x1f8] sm:$0xff] }
 0x25a   : > { %6464 = vmatpush1.bf16.msra.mxu0 %v6463_v13  ;;  %v6505_v13 = vpack.c.bf16 %v1936_v12, %v1932_v11  ;;  %v6597_v11 = vpack.c.bf16 %v1898_v9, %v1894_v8  ;;  %v1893_v12 = vld [vmem:[%s11652_s7 + $0x1d0] sm:$0xff]  ;;  %v1959_v8 = vld [vmem:[%s11652_s7 + $0x3e0] sm:$0xff] }
 0x25b   : > { %6466 = vmatprep.subr.bf16.mxu0 %v6465_v16 }
 0x25e   : > { %6468 = vmatpush1.bf16.msra.mxu0 %v6467_v19  ;;  %v1940_v19 = vld [vmem:[%s11652_s7 + $0x348] sm:$0xff] }
 0x25f   : > { %6470 = vmatprep.subr.bf16.mxu0 %v6469_v22  ;;  %v6509_v21 = vpack.c.bf16 %v1944_v20, %v1940_v19  ;;  %v1939_v22 = vld [vmem:[%s11652_s7 + $0x340] sm:$0xff]  ;;  %v6601_v19 = vpack.c.bf16 %v1906_v15, %v1902_v14  ;;  %v1901_v20 = vld [vmem:[%s11652_s7 + $0x210] sm:$0xff]  ;;  %v1964_v14 = vld [vmem:[%s11652_s7 + $0x408] sm:$0xff] }
 0x260   : > { %v6511_v24 = vpack.c.bf16 %v1943_v23, %v1939_v22  ;;  %v1910_v22 = vld [vmem:[%s11652_s7 + $0x258] sm:$0xff]  ;;  %v1968_v15 = vld [vmem:[%s11652_s7 + $0x428] sm:$0xff] }
 0x261   : > { %v1914_v23 = vld [vmem:[%s11652_s7 + $0x278] sm:$0xff] }
 0x262   : > { %6472 = vmatpush1.bf16.msra.mxu0 %v6471_v25 }
 0x263   : > { %6474 = vmatprep.subr.bf16.mxu0 %v6473_v28  ;;  %v1842_v28 = vld [vmem:[%s11652_s7 + $0x38] sm:$0xff] }
 0x264   : > { %v6569_v32 = vpack.c.bf16 %v1842_v28, %v1838_v27  ;;  %v1913_v27 = vld [vmem:[%s11652_s7 + $0x270] sm:$0xff]  ;;  %v1918_v28 = vld [vmem:[%s11652_s7 + $0x298] sm:$0xff] }
 0x266   : > { %6476 = vmatpush1.bf16.msra.mxu0 %v6475_v31  ;;  %v5257_v31 = vld [vmem:[%s11648_s3 + $0x10] sm:$0x7f] }
 0x267   : > { %6478 = vmatprep.subr.bf16.mxu0 %v6477_v34  ;;  %v1841_v34 = vld [vmem:[%s11652_s7 + $0x30] sm:$0xff] }
 0x26a   : > { %6480 = vmatpush1.bf16.msra.mxu0 %v6479_v37  ;;  %v6571_v37 = vpack.c.bf16 %v1841_v34, %v1837_v33  ;;  %v1921_v33 = vld [vmem:[%s11652_s7 + $0x2b0] sm:$0xff]  ;;  %v1926_v34 = vld [vmem:[%s11652_s7 + $0x2d8] sm:$0xff] }
 0x26b   : > { %6482 = vmatprep.subr.bf16.mxu0 %v6481_v40  ;;  %v1849_v40 = vld [vmem:[%s11652_s7 + $0x70] sm:$0xff] }
 0x26e   : > { %6484 = vmatpush1.bf16.msra.mxu0 %v6483_v42  ;;  %v6575_v42 = vpack.c.bf16 %v1849_v40, %v1845_v39  ;;  %v1929_v39 = vld [vmem:[%s11652_s7 + $0x2f0] sm:$0xff]  ;;  %v1934_v40 = vld [vmem:[%s11652_s7 + $0x318] sm:$0xff] }
 0x26f   : > { %6486 = vmatprep.subr.bf16.mxu0 %v6485_v45  ;;  %v1857_v45 = vld [vmem:[%s11652_s7 + $0xb0] sm:$0xff] }
 0x272   : > { %6488 = vmatpush1.bf16.msra.mxu0 %v6487_v48  ;;  %v6579_v48 = vpack.c.bf16 %v1857_v45, %v1853_v44  ;;  %v1937_v44 = vld [vmem:[%s11652_s7 + $0x330] sm:$0xff]  ;;  %v1942_v45 = vld [vmem:[%s11652_s7 + $0x358] sm:$0xff] }
 0x273   : > { %6490 = vmatprep.subr.bf16.mxu0 %v6489_v51  ;;  %v1865_v51 = vld [vmem:[%s11652_s7 + $0xf0] sm:$0xff] }
 0x276   : > { %6492 = vmatpush1.bf16.msra.mxu0 %v6491_v55  ;;  %v6583_v55 = vpack.c.bf16 %v1865_v51, %v1861_v50  ;;  %v1945_v50 = vld [vmem:[%s11652_s7 + $0x370] sm:$0xff] }
 0x277   : > { %6494 = vmatprep.subr.bf16.mxu0 %v6493_v59  ;;  %v1873_v59 = vld [vmem:[%s11652_s7 + $0x130] sm:$0xff] }
 0x27a   : > { %6496 = vmatpush1.bf16.msra.mxu0 %v6495_v62  ;;  %v6587_v62 = vpack.c.bf16 %v1873_v59, %v1869_v57  ;;  %v1954_v57 = vld [vmem:[%s11652_s7 + $0x3b8] sm:$0xff]  ;;  %v1947_v59 = vld [vmem:[%s11652_s7 + $0x380] sm:$0xff] }
 0x27b   : > { %6498 = vmatprep.subr.bf16.mxu0 %v6497_v1  ;;  %v1881_v1 = vld [vmem:[%s11652_s7 + $0x170] sm:$0xff] }
 0x27e   : > { %6500 = vmatpush1.bf16.msra.mxu0 %v6499_v4  ;;  %v6591_v4 = vpack.c.bf16 %v1881_v1, %v1877_v0  ;;  %v1953_v0 = vld [vmem:[%s11652_s7 + $0x3b0] sm:$0xff] }
 0x27f   : > { %6502 = vmatprep.subr.bf16.mxu0 %v6501_v58  ;;  %v1889_v58 = vld [vmem:[%s11652_s7 + $0x1b0] sm:$0xff] }
 0x282   : > { %6504 = vmatpush1.bf16.msra.mxu0 %v6503_v10  ;;  %v6595_v10 = vpack.c.bf16 %v1889_v58, %v1885_v6  ;;  %v1962_v6 = vld [vmem:[%s11652_s7 + $0x3f8] sm:$0xff]  ;;  %v1955_v58 = vld [vmem:[%s11652_s7 + $0x3c0] sm:$0xff] }
 0x283   : > { %6506 = vmatprep.subr.bf16.mxu0 %v6505_v13  ;;  %v1897_v13 = vld [vmem:[%s11652_s7 + $0x1f0] sm:$0xff] }
 0x286   : > { %6508 = vmatpush1.bf16.msra.mxu0 %v6507_v18  ;;  %v6599_v18 = vpack.c.bf16 %v1897_v13, %v1893_v12  ;;  %v1961_v12 = vld [vmem:[%s11652_s7 + $0x3f0] sm:$0xff] }
 0x287   : > { %6510 = vmatprep.subr.bf16.mxu0 %v6509_v21  ;;  %v1905_v21 = vld [vmem:[%s11652_s7 + $0x230] sm:$0xff] }
 0x28a   : > { %6512 = vmatpush1.bf16.msra.mxu0 %v6511_v24  ;;  %v6603_v24 = vpack.c.bf16 %v1905_v21, %v1901_v20  ;;  %v1970_v20 = vld [vmem:[%s11652_s7 + $0x438] sm:$0xff] }
 0x2de   : > { %v8934_v16 = vpop.f32.mrb[6].mxu0 }
 0x2df   : > { %v8936_v17 = vpop.f32.mrb[7].mxu0 }
 0x320   : > { %v1637_v25 = vpop.f32.mrb[8].mxu0 }
 0x321   : > { %v1639_v26 = vpop.f32.mrb[9].mxu0 }
 0x327   : > { %v1566_v29 = vpop.f32.mrb[8].mxu1 }
 0x328   : > { %v1568_v30 = vpop.f32.mrb[9].mxu1 }
 0x329   : > { %5258 = vmatprep.subr.msk.mxu1 %vm1059_vm1, %v1568_v30 }
 0x32a   : > { %5259 = vmatpush1.msk.msra.mxu1 %vm1059_vm1, %v1566_v29  ;;  %v1922_v29 = vld [vmem:[%s11652_s7 + $0x2b8] sm:$0xff] }
 0x32b   : > { %5260 = vmatmul.mubr.msk.f32.vlgmr.msra.gmra.mrb[6].mxu1 %vm1055_vm2, %v5257_v31  ;;  %5261 = vmatprep.subr.msk.mxu1 %vm1059_vm1, %v1639_v26  ;;  %v1909_v26 = vld [vmem:[%s11652_s7 + $0x250] sm:$0xff] }
 0x32c   : > { %5262 = vmatpush1.msk.msra.mxu1 %vm1059_vm1, %v1637_v25  ;;  %1794 = vmatprep.mubr.f32.mxu1 %v7431_v7  ;;  %v6605_v25 = vpack.c.bf16 %v1914_v23, %v1910_v22  ;;  %v6607_v30 = vpack.c.bf16 %v1913_v27, %v1909_v26  ;;  %v1807_v22 = vlaneseq }
 0x32d   : > { %6570 = vmatprep.subr.bf16.mxu1 %v6569_v32  ;;  %v1917_v32 = vld [vmem:[%s11652_s7 + $0x290] sm:$0xff] }
 0x32e   : > { %v6611_v36 = vpack.c.bf16 %v1921_v33, %v1917_v32  ;;  %v9188_v23 = vshrl.u32 %v1807_v22, 7  ;;  %v1998_v22 = vld [vmem:[%s11652_s7 + $0x518] sm:$0xff] }
 0x32f   : > { %5263 = vmatmul.mubr.msk.f32.vlgmr.msra.gmra.mrb[4].mxu1 %vm1055_vm2, %v5257_v31  ;;  %v6609_v31 = vpack.c.bf16 %v1922_v29, %v1918_v28 }
 0x330   : > { %6572 = vmatpush1.bf16.msra.mxu1 %v6571_v37  ;;  %v6613_v37 = vpack.c.bf16 %v1930_v35, %v1926_v34  ;;  %v1813_v26 = vsub.s32 1, %v9188_v23  ;;  %v1821_v27 = vsub.s32 3, %v9188_v23  ;;  %v1963_v35 = vld [vmem:[%s11652_s7 + $0x400] sm:$0xff] }
 0x331   : > { %6574 = vmatprep.subr.bf16.mxu1 %v6573_v38  ;;  %v1925_v38 = vld [vmem:[%s11652_s7 + $0x2d0] sm:$0xff] }
 0x332   : > { %v6615_v53 = vpack.c.bf16 %v1929_v39, %v1925_v38 }
 0x334   : > { %6576 = vmatpush1.bf16.msra.mxu1 %v6575_v42  ;;  %v6617_v42 = vpack.c.bf16 %v1938_v41, %v1934_v40  ;;  %v1972_v40 = vld [vmem:[%s11652_s7 + $0x448] sm:$0xff] }
 0x335   : > { %6578 = vmatprep.subr.bf16.mxu1 %v6577_v43  ;;  %v1933_v43 = vld [vmem:[%s11652_s7 + $0x310] sm:$0xff] }
 0x336   : > { %v6619_v47 = vpack.c.bf16 %v1937_v44, %v1933_v43  ;;  %v1978_v43 = vld [vmem:[%s11652_s7 + $0x478] sm:$0xff] }
 0x338   : > { %6580 = vmatpush1.bf16.msra.mxu1 %v6579_v48  ;;  %v6621_v48 = vpack.c.bf16 %v1946_v46, %v1942_v45 }
 0x339   : > { %6582 = vmatprep.subr.bf16.mxu1 %v6581_v49  ;;  %v1941_v49 = vld [vmem:[%s11652_s7 + $0x350] sm:$0xff] }
 0x33a   : > { %v6623_v51 = vpack.c.bf16 %v1945_v50, %v1941_v49  ;;  %v1975_v49 = vld [vmem:[%s11652_s7 + $0x460] sm:$0xff] }
 0x33c   : > { %6584 = vmatpush1.bf16.msra.mxu1 %v6583_v55  ;;  %v1950_v55 = vld [vmem:[%s11652_s7 + $0x398] sm:$0xff] }
 0x33d   : > { %6586 = vmatprep.subr.bf16.mxu1 %v6585_v56  ;;  %v6513_v56 = vpack.c.bf16 %v1952_v54, %v1948_v52  ;;  %v6625_v61 = vpack.c.bf16 %v1954_v57, %v1950_v55  ;;  %v1977_v52 = vld [vmem:[%s11652_s7 + $0x470] sm:$0xff]  ;;  %v1980_v54 = vld [vmem:[%s11652_s7 + $0x488] sm:$0xff] }
 0x33f   : > { %6514 = vmatprep.subr.bf16.mxu0 %v6513_v56 }
 0x340   : > { %6588 = vmatpush1.bf16.msra.mxu1 %v6587_v62  ;;  %v6515_v62 = vpack.c.bf16 %v1951_v60, %v1947_v59  ;;  %v1984_v59 = vld [vmem:[%s11652_s7 + $0x4a8] sm:$0xff]  ;;  %v1982_v60 = vld [vmem:[%s11652_s7 + $0x498] sm:$0xff] }
 0x341   : > { %6590 = vmatprep.subr.bf16.mxu1 %v6589_v63  ;;  %v1949_v63 = vld [vmem:[%s11652_s7 + $0x390] sm:$0xff] }
 0x342   : > { %v6627_v1 = vpack.c.bf16 %v1953_v0, %v1949_v63  ;;  %6516 = vmatpush1.bf16.msra.mxu0 %v6515_v62  ;;  %v1979_v0 = vld [vmem:[%s11652_s7 + $0x480] sm:$0xff] }
 0x344   : > { %6592 = vmatpush1.bf16.msra.mxu1 %v6591_v4  ;;  %v1958_v4 = vld [vmem:[%s11652_s7 + $0x3d8] sm:$0xff] }
 0x345   : > { %6594 = vmatprep.subr.bf16.mxu1 %v6593_v5  ;;  %v6517_v5 = vpack.c.bf16 %v1960_v3, %v1956_v2  ;;  %v6629_v9 = vpack.c.bf16 %v1962_v6, %v1958_v4  ;;  %v6529_v2 = vpack.c.bf16 %v1984_v59, %v1980_v54  ;;  %v1981_v4 = vld [vmem:[%s11652_s7 + $0x490] sm:$0xff]  ;;  %v1988_v6 = vld [vmem:[%s11652_s7 + $0x4c8] sm:$0xff]  ;;  %v2015_v59 = vld [vmem:[%s11652_s7 + $0x5a0] sm:$0xff] }
 0x347   : > { %6518 = vmatprep.subr.bf16.mxu0 %v6517_v5  ;;  %v1985_v5 = vld [vmem:[%s11652_s7 + $0x4b0] sm:$0xff] }
 0x348   : > { %6596 = vmatpush1.bf16.msra.mxu1 %v6595_v10  ;;  %v6519_v10 = vpack.c.bf16 %v1959_v8, %v1955_v58  ;;  %v1992_v58 = vld [vmem:[%s11652_s7 + $0x4e8] sm:$0xff]  ;;  %v1990_v8 = vld [vmem:[%s11652_s7 + $0x4d8] sm:$0xff] }
 0x349   : > { %6598 = vmatprep.subr.bf16.mxu1 %v6597_v11  ;;  %v1957_v11 = vld [vmem:[%s11652_s7 + $0x3d0] sm:$0xff] }
 0x34a   : > { %v6631_v13 = vpack.c.bf16 %v1961_v12, %v1957_v11  ;;  %6520 = vmatpush1.bf16.msra.mxu0 %v6519_v10  ;;  %v6643_v11 = vpack.c.bf16 %v1985_v5, %v1981_v4  ;;  %v1987_v12 = vld [vmem:[%s11652_s7 + $0x4c0] sm:$0xff] }
 0x34c   : > { %6600 = vmatpush1.bf16.msra.mxu1 %v6599_v18  ;;  %v1966_v18 = vld [vmem:[%s11652_s7 + $0x418] sm:$0xff] }
 0x34d   : > { %6602 = vmatprep.subr.bf16.mxu1 %v6601_v19  ;;  %v6521_v19 = vpack.c.bf16 %v1968_v15, %v1964_v14  ;;  %v6633_v21 = vpack.c.bf16 %v1970_v20, %v1966_v18  ;;  %v6533_v14 = vpack.c.bf16 %v1992_v58, %v1988_v6  ;;  %v1989_v18 = vld [vmem:[%s11652_s7 + $0x4d0] sm:$0xff]  ;;  %v1996_v20 = vld [vmem:[%s11652_s7 + $0x508] sm:$0xff]  ;;  %v2019_v6 = vld [vmem:[%s11652_s7 + $0x5c0] sm:$0xff] }
 0x34e   : > { %v2023_v58 = vld [vmem:[%s11652_s7 + $0x5e0] sm:$0xff] }
 0x34f   : > { %6522 = vmatprep.subr.bf16.mxu0 %v6521_v19  ;;  %v1993_v19 = vld [vmem:[%s11652_s7 + $0x4f0] sm:$0xff] }
 0x350   : > { %6604 = vmatpush1.bf16.msra.mxu1 %v6603_v24  ;;  %v1809_v24 = vsub.s32 0, %v9188_v23 }
 0x351   : > { %6606 = vmatprep.subr.bf16.mxu1 %v6605_v25  ;;  %v9194_v25 = vld [vmem:[%s11650_s5] sm:$0xf] }
 0x352   : > { %v1810_v28 = vrot.slane %v9194_v25, %v1809_v24  ;;  %v1822_v34 = vrot.slane %v9194_v25, %v1821_v27 }
 0x354   : > { %6608 = vmatpush1.bf16.msra.mxu1 %v6607_v30  ;;  %v1814_v30 = vrot.slane %v9194_v25, %v1813_v26 }
 0x355   : > { %6610 = vmatprep.subr.bf16.mxu1 %v6609_v31 }
 0x358   : > { %6612 = vmatpush1.bf16.msra.mxu1 %v6611_v36 }
 0x359   : > { %6614 = vmatprep.subr.bf16.mxu1 %v6613_v37  ;;  %v1967_v37 = vld [vmem:[%s11652_s7 + $0x420] sm:$0xff] }
 0x35a   : > { %v6523_v46 = vpack.c.bf16 %v1967_v37, %v1963_v35  ;;  %v1997_v35 = vld [vmem:[%s11652_s7 + $0x510] sm:$0xff]  ;;  %v2004_v37 = vld [vmem:[%s11652_s7 + $0x548] sm:$0xff] }
 0x35c   : > { %6616 = vmatpush1.bf16.msra.mxu1 %v6615_v53  ;;  %v1976_v53 = vld [vmem:[%s11652_s7 + $0x468] sm:$0xff] }
 0x35d   : > { %6618 = vmatprep.subr.bf16.mxu1 %v6617_v42  ;;  %v1974_v42 = vld [vmem:[%s11652_s7 + $0x458] sm:$0xff]  ;;  %v6525_v56 = vpack.c.bf16 %v1976_v53, %v1972_v40  ;;  %v2003_v53 = vld [vmem:[%s11652_s7 + $0x540] sm:$0xff] }
 0x35e   : > { %v6637_v57 = vpack.c.bf16 %v1978_v43, %v1974_v42  ;;  %v2007_v42 = vld [vmem:[%s11652_s7 + $0x560] sm:$0xff] }
 0x35f   : > { %v6543_v54 = vpack.c.bf16 %v2007_v42, %v2003_v53  ;;  %v2044_v53 = vld [vmem:[%s11652_s7 + $0x688] sm:$0xff] }
 0x360   : > { %6620 = vmatpush1.bf16.msra.mxu1 %v6619_v47  ;;  %v2048_v42 = vld [vmem:[%s11652_s7 + $0x6a8] sm:$0xff] }
 0x361   : > { %6622 = vmatprep.subr.bf16.mxu1 %v6621_v48  ;;  %v1971_v48 = vld [vmem:[%s11652_s7 + $0x440] sm:$0xff] }
 0x362   : > { %v6527_v62 = vpack.c.bf16 %v1975_v49, %v1971_v48  ;;  %v2012_v48 = vld [vmem:[%s11652_s7 + $0x588] sm:$0xff] }
 0x363   : > { %v2016_v49 = vld [vmem:[%s11652_s7 + $0x5a8] sm:$0xff] }
 0x364   : > { %6624 = vmatpush1.bf16.msra.mxu1 %v6623_v51  ;;  %v1973_v51 = vld [vmem:[%s11652_s7 + $0x450] sm:$0xff] }
 0x365   : > { %6626 = vmatprep.subr.bf16.mxu1 %v6625_v61  ;;  %v1986_v61 = vld [vmem:[%s11652_s7 + $0x4b8] sm:$0xff]  ;;  %v6639_v63 = vpack.c.bf16 %v1977_v52, %v1973_v51 }
 0x366   : > { %v6641_v3 = vpack.c.bf16 %v1986_v61, %v1982_v60  ;;  %v2014_v51 = vld [vmem:[%s11652_s7 + $0x598] sm:$0xff]  ;;  %v6545_v60 = vpack.c.bf16 %v2016_v49, %v2012_v48  ;;  %v2043_v48 = vld [vmem:[%s11652_s7 + $0x680] sm:$0xff] }
 0x367   : > { %v2018_v52 = vld [vmem:[%s11652_s7 + $0x5b8] sm:$0xff]  ;;  %v2047_v49 = vld [vmem:[%s11652_s7 + $0x6a0] sm:$0xff] }
 0x368   : > { %6628 = vmatpush1.bf16.msra.mxu1 %v6627_v1  ;;  %v1983_v1 = vld [vmem:[%s11652_s7 + $0x4a0] sm:$0xff]  ;;  %v6657_v61 = vpack.c.bf16 %v2018_v52, %v2014_v51  ;;  %v1817_v51 = vsub.s32 2, %v9188_v23  ;;  %v6561_v52 = vpack.c.bf16 %v2048_v42, %v2044_v53  ;;  %v5767_v23 = vld [vmem:[%s11655_s10 + $0x258] sm:$0xff] }
 0x369   : > { %6630 = vmatprep.subr.bf16.mxu1 %v6629_v9  ;;  %v1994_v9 = vld [vmem:[%s11652_s7 + $0x4f8] sm:$0xff]  ;;  %v6531_v10 = vpack.c.bf16 %v1983_v1, %v1979_v0  ;;  %v2020_v0 = vld [vmem:[%s11652_s7 + $0x5c8] sm:$0xff] }
 0x36a   : > { %v6645_v15 = vpack.c.bf16 %v1994_v9, %v1990_v8  ;;  %v2024_v1 = vld [vmem:[%s11652_s7 + $0x5e8] sm:$0xff] }
 0x36b   : > { %v6549_v8 = vpack.c.bf16 %v2024_v1, %v2020_v0  ;;  %v2051_v1 = vld [vmem:[%s11652_s7 + $0x6c0] sm:$0xff] }
 0x36c   : > { %6632 = vmatpush1.bf16.msra.mxu1 %v6631_v13  ;;  %v1991_v13 = vld [vmem:[%s11652_s7 + $0x4e0] sm:$0xff] }
 0x36d   : > { %6634 = vmatprep.subr.bf16.mxu1 %v6633_v21  ;;  %v2000_v21 = vld [vmem:[%s11652_s7 + $0x528] sm:$0xff] }
 0x3fe   : > { %v1725_v29 = vpop.f32.mrb[6].mxu1 }
 0x3ff   : > { %v7351_v31 = vadd.f32 %v1725_v29, %v8934_v16  ;;  %v1727_v32 = vpop.f32.mrb[7].mxu1  ;;  %v1965_v16 = vld [vmem:[%s11652_s7 + $0x410] sm:$0xff]  ;;  %v6535_v29 = vpack.c.bf16 %v1991_v13, %v1987_v12  ;;  %v2028_v12 = vld [vmem:[%s11652_s7 + $0x608] sm:$0xff] }
 0x400   : > { %v7352_v33 = vadd.f32 %v1727_v32, %v8936_v17  ;;  %v1969_v17 = vld [vmem:[%s11652_s7 + $0x430] sm:$0xff]  ;;  %v1999_v32 = vld [vmem:[%s11652_s7 + $0x520] sm:$0xff]  ;;  %v2032_v13 = vld [vmem:[%s11652_s7 + $0x628] sm:$0xff] }
 0x401   : > { %v1827_v36 = vadd.f32 %v7351_v31, %v1810_v28  ;;  %v6635_v47 = vpack.c.bf16 %v1969_v17, %v1965_v16  ;;  %v2002_v28 = vld [vmem:[%s11652_s7 + $0x538] sm:$0xff]  ;;  %v1995_v31 = vld [vmem:[%s11652_s7 + $0x500] sm:$0xff]  ;;  %v2008_v16 = vld [vmem:[%s11652_s7 + $0x568] sm:$0xff] }
 0x402   : > { %v1828_v38 = vadd.f32 %v7352_v33, %v1814_v30  ;;  %v9221_v39 = vpop.f32.mrb[4].mxu1  ;;  %v6647_v30 = vpack.c.bf16 %v1993_v19, %v1989_v18  ;;  %v6537_v33 = vpack.c.bf16 %v2000_v21, %v1996_v20  ;;  %v2006_v17 = vld [vmem:[%s11652_s7 + $0x558] sm:$0xff]  ;;  %v6539_v40 = vpack.c.bf16 %v1999_v32, %v1995_v31  ;;  %v2027_v20 = vld [vmem:[%s11652_s7 + $0x600] sm:$0xff]  ;;  %v2036_v31 = vld [vmem:[%s11652_s7 + $0x648] sm:$0xff] }
 0x403   : > { %v1798_v41 = vpop.f32.mrb[5].mxu1  ;;  %v9243_v50 = vmax.f32 %v1827_v36, 0.0  ;;  %v2001_v36 = vld [vmem:[%s11652_s7 + $0x530] sm:$0xff]  ;;  %v6541_v43 = vpack.c.bf16 %v2008_v16, %v2004_v37  ;;  %v6551_v18 = vpack.c.bf16 %v2023_v58, %v2019_v6  ;;  %v2031_v21 = vld [vmem:[%s11652_s7 + $0x620] sm:$0xff]  ;;  %v2040_v32 = vld [vmem:[%s11652_s7 + $0x668] sm:$0xff] }
 0x404   : > { %v9235_v44 = vmax.f32 %v1828_v38, 0.0  ;;  %v1830_v45 = vadd.f32 %v1822_v34, %v1798_v41  ;;  %v6649_v34 = vpack.c.bf16 %v2002_v28, %v1998_v22  ;;  %v2010_v38 = vld [vmem:[%s11652_s7 + $0x578] sm:$0xff]  ;;  %v6651_v41 = vpack.c.bf16 %v2001_v36, %v1997_v35  ;;  %v2035_v37 = vld [vmem:[%s11652_s7 + $0x640] sm:$0xff]  ;;  %v2053_v6 = vld [vmem:[%s11652_s7 + $0x6d0] sm:$0xff] }
 0x405   : > { %v6553_v22 = vpack.c.bf16 %v2032_v13, %v2028_v12  ;;  %v6555_v35 = vpack.c.bf16 %v2031_v21, %v2027_v20  ;;  %v2039_v16 = vld [vmem:[%s11652_s7 + $0x660] sm:$0xff]  ;;  %v2057_v58 = vld [vmem:[%s11652_s7 + $0x6f0] sm:$0xff]  ;;  %v5275_v21 = vld [vmem:[%s11652_s7 + $0x748] sm:$0xff] }
 0x406   : > { %v9254_v55 = vmax.f32 %v1830_v45, 0.0  ;;  %2127 = vmatprep.mubr.f32.mxu0 %v9235_v44  ;;  %2269 = vmatprep.mubr.f32.mxu1 %v9235_v44  ;;  %v6653_v45 = vpack.c.bf16 %v2010_v38, %v2006_v17  ;;  %v6557_v17 = vpack.c.bf16 %v2040_v32, %v2036_v31  ;;  %v6679_v12 = vpack.c.bf16 %v2057_v58, %v2053_v6  ;;  %v5268_v20 = vld [vmem:[%s11652_s7 + $0x710] sm:$0xff]  ;;  %v5305_v6 = vld [vmem:[%s11652_s7 + $0x838] sm:$0xff] }
 0x407   : > { %2128 = vmatmul.mubr.f32.vlgmr.msra.gmra.mrb[10].mxu0 %v9243_v50  ;;  %2270 = vmatmul.mubr.f32.vlgmr.msra.gmra.mrb[10].mxu1 %v9243_v50 }
 0x408   : > { %6524 = vmatpush1.bf16.msra.mxu0 %v6523_v46  ;;  %6636 = vmatpush1.bf16.msra.mxu1 %v6635_v47  ;;  %v2005_v46 = vld [vmem:[%s11652_s7 + $0x550] sm:$0xff] }
 0x409   : > { %5264 = vmatprep.mubr.msk.f32.mxu0 %vm2059_vm3, %v9254_v55  ;;  %5265 = vmatprep.mubr.msk.f32.mxu1 %vm2059_vm3, %v9254_v55  ;;  %v2009_v47 = vld [vmem:[%s11652_s7 + $0x570] sm:$0xff] }
 0x40a   : > { %6526 = vmatprep.subr.bf16.mxu0 %v6525_v56  ;;  %6638 = vmatprep.subr.bf16.mxu1 %v6637_v57  ;;  %v6655_v56 = vpack.c.bf16 %v2009_v47, %v2005_v46  ;;  %v2011_v57 = vld [vmem:[%s11652_s7 + $0x580] sm:$0xff]  ;;  %v6559_v46 = vpack.c.bf16 %v2039_v16, %v2035_v37  ;;  %v5280_v16 = vld [vmem:[%s11652_s7 + $0x770] sm:$0xff] }
 0x40b   : > { %v6547_v4 = vpack.c.bf16 %v2015_v59, %v2011_v57  ;;  %v2049_v57 = vld [vmem:[%s11652_s7 + $0x6b0] sm:$0xff]  ;;  %v2052_v59 = vld [vmem:[%s11652_s7 + $0x6c8] sm:$0xff] }
 0x40c   : > { %6528 = vmatpush1.bf16.msra.mxu0 %v6527_v62  ;;  %6640 = vmatpush1.bf16.msra.mxu1 %v6639_v63  ;;  %v2013_v62 = vld [vmem:[%s11652_s7 + $0x590] sm:$0xff] }
 0x40d   : > { %6530 = vmatprep.subr.bf16.mxu0 %v6529_v2  ;;  %6642 = vmatprep.subr.bf16.mxu1 %v6641_v3  ;;  %v2017_v63 = vld [vmem:[%s11652_s7 + $0x5b0] sm:$0xff]  ;;  %v2022_v2 = vld [vmem:[%s11652_s7 + $0x5d8] sm:$0xff] }
 0x40e   : > { %v2026_v3 = vld [vmem:[%s11652_s7 + $0x5f8] sm:$0xff]  ;;  %v6659_v5 = vpack.c.bf16 %v2017_v63, %v2013_v62  ;;  %v6563_v63 = vpack.c.bf16 %v2047_v49, %v2043_v48  ;;  %v5288_v49 = vld [vmem:[%s11652_s7 + $0x7b0] sm:$0xff] }
 0x40f   : > { %v6661_v9 = vpack.c.bf16 %v2026_v3, %v2022_v2  ;;  %v2058_v62 = vld [vmem:[%s11652_s7 + $0x6f8] sm:$0xff]  ;;  %v2055_v2 = vld [vmem:[%s11652_s7 + $0x6e0] sm:$0xff]  ;;  %v1818_v3 = vrot.slane %v9194_v25, %v1817_v51  ;;  %v5271_v25 = vld [vmem:[%s11652_s7 + $0x728] sm:$0xff] }
 0x410   : > { %6532 = vmatpush1.bf16.msra.mxu0 %v6531_v10  ;;  %6644 = vmatpush1.bf16.msra.mxu1 %v6643_v11  ;;  %v2021_v10 = vld [vmem:[%s11652_s7 + $0x5d0] sm:$0xff] }
 0x411   : > { %6534 = vmatprep.subr.bf16.mxu0 %v6533_v14  ;;  %6646 = vmatprep.subr.bf16.mxu1 %v6645_v15  ;;  %v2025_v11 = vld [vmem:[%s11652_s7 + $0x5f0] sm:$0xff]  ;;  %v2030_v14 = vld [vmem:[%s11652_s7 + $0x618] sm:$0xff]  ;;  %v1829_v13 = vadd.f32 %v1818_v3, %v9221_v39  ;;  %v5299_v3 = vld [vmem:[%s11652_s7 + $0x808] sm:$0xff] }
 0x412   : > { %v2034_v15 = vld [vmem:[%s11652_s7 + $0x638] sm:$0xff]  ;;  %v6663_v19 = vpack.c.bf16 %v2025_v11, %v2021_v10  ;;  %v6567_v11 = vpack.c.bf16 %v2055_v2, %v2051_v1  ;;  %v5272_v39 = vld [vmem:[%s11652_s7 + $0x730] sm:$0xff] }
 0x413   : > { %v6665_v28 = vpack.c.bf16 %v2034_v15, %v2030_v14  ;;  %v5273_v10 = vld [vmem:[%s11652_s7 + $0x738] sm:$0xff]  ;;  %v9542_v31 = vmax.f32 %v1829_v13, 0.0  ;;  %v6795_v32 = vpack.c.bf16 %v5272_v39, %v5268_v20  ;;  %v5296_v2 = vld [vmem:[%s11652_s7 + $0x7f0] sm:$0xff] }
 0x414   : > { %6536 = vmatpush1.bf16.msra.mxu0 %v6535_v29  ;;  %6648 = vmatpush1.bf16.msra.mxu1 %v6647_v30  ;;  %v2029_v29 = vld [vmem:[%s11652_s7 + $0x610] sm:$0xff] }
 0x415   : > { %6538 = vmatprep.subr.bf16.mxu0 %v6537_v33  ;;  %6650 = vmatprep.subr.bf16.mxu1 %v6649_v34  ;;  %v2033_v30 = vld [vmem:[%s11652_s7 + $0x630] sm:$0xff]  ;;  %v2038_v33 = vld [vmem:[%s11652_s7 + $0x658] sm:$0xff] }
 0x416   : > { %v2042_v34 = vld [vmem:[%s11652_s7 + $0x678] sm:$0xff]  ;;  %v6667_v36 = vpack.c.bf16 %v2033_v30, %v2029_v29  ;;  %v5304_v13 = vld [vmem:[%s11652_s7 + $0x830] sm:$0xff] }
 0x417   : > { %v6669_v38 = vpack.c.bf16 %v2042_v34, %v2038_v33  ;;  %v5281_v29 = vld [vmem:[%s11652_s7 + $0x778] sm:$0xff]  ;;  %v5274_v33 = vld [vmem:[%s11652_s7 + $0x740] sm:$0xff] }
 0x418   : > { %6540 = vmatpush1.bf16.msra.mxu0 %v6539_v40  ;;  %6652 = vmatpush1.bf16.msra.mxu1 %v6651_v41  ;;  %v2037_v40 = vld [vmem:[%s11652_s7 + $0x650] sm:$0xff]  ;;  %v5278_v34 = vld [vmem:[%s11652_s7 + $0x760] sm:$0xff] }
 0x419   : > { %6542 = vmatprep.subr.bf16.mxu0 %v6541_v43  ;;  %6654 = vmatprep.subr.bf16.mxu1 %v6653_v45  ;;  %v2041_v41 = vld [vmem:[%s11652_s7 + $0x670] sm:$0xff]  ;;  %v2046_v43 = vld [vmem:[%s11652_s7 + $0x698] sm:$0xff]  ;;  %v6687_v53 = vpack.c.bf16 %v5278_v34, %v5274_v33  ;;  %v5315_v33 = vld [vmem:[%s11652_s7 + $0x888] sm:$0xff] }
 0x41a   : > { %v2050_v45 = vld [vmem:[%s11652_s7 + $0x6b8] sm:$0xff]  ;;  %v6671_v47 = vpack.c.bf16 %v2041_v41, %v2037_v40  ;;  %v5319_v34 = vld [vmem:[%s11652_s7 + $0x8a8] sm:$0xff] }
 0x41b   : > { %v5285_v40 = vld [vmem:[%s11652_s7 + $0x798] sm:$0xff] }
 0x41c   : > { %6544 = vmatpush1.bf16.msra.mxu0 %v6543_v54  ;;  %6656 = vmatpush1.bf16.msra.mxu1 %v6655_v56  ;;  %v6673_v54 = vpack.c.bf16 %v2050_v45, %v2046_v43  ;;  %v2045_v56 = vld [vmem:[%s11652_s7 + $0x690] sm:$0xff]  ;;  %v5289_v41 = vld [vmem:[%s11652_s7 + $0x7b8] sm:$0xff]  ;;  %v5282_v45 = vld [vmem:[%s11652_s7 + $0x780] sm:$0xff] }
 0x41d   : > { %6546 = vmatprep.subr.bf16.mxu0 %v6545_v60  ;;  %6658 = vmatprep.subr.bf16.mxu1 %v6657_v61  ;;  %v2056_v60 = vld [vmem:[%s11652_s7 + $0x6e8] sm:$0xff]  ;;  %v2054_v61 = vld [vmem:[%s11652_s7 + $0x6d8] sm:$0xff]  ;;  %v6675_v0 = vpack.c.bf16 %v2049_v57, %v2045_v56  ;;  %v6801_v48 = vpack.c.bf16 %v5289_v41, %v5285_v40  ;;  %v5318_v40 = vld [vmem:[%s11652_s7 + $0x8a0] sm:$0xff] }
 0x41e   : > { %v5293_v56 = vld [vmem:[%s11652_s7 + $0x7d8] sm:$0xff]  ;;  %v5316_v41 = vld [vmem:[%s11652_s7 + $0x890] sm:$0xff] }
 0x41f   : > { %v5297_v57 = vld [vmem:[%s11652_s7 + $0x7f8] sm:$0xff] }
 0x420   : > { %6548 = vmatpush1.bf16.msra.mxu0 %v6547_v4  ;;  %6660 = vmatpush1.bf16.msra.mxu1 %v6659_v5  ;;  %v6565_v4 = vpack.c.bf16 %v2056_v60, %v2052_v59  ;;  %v6677_v5 = vpack.c.bf16 %v2058_v62, %v2054_v61  ;;  %v5290_v62 = vld [vmem:[%s11652_s7 + $0x7c0] sm:$0xff]  ;;  %v6805_v1 = vpack.c.bf16 %v5297_v57, %v5293_v56  ;;  %v5324_v57 = vld [vmem:[%s11652_s7 + $0x8d0] sm:$0xff] }
 0x421   : > { %6550 = vmatprep.subr.bf16.mxu0 %v6549_v8  ;;  %6662 = vmatprep.subr.bf16.mxu1 %v6661_v9  ;;  %v5267_v8 = vld [vmem:[%s11652_s7 + $0x708] sm:$0xff]  ;;  %v5269_v9 = vld [vmem:[%s11652_s7 + $0x718] sm:$0xff]  ;;  %v5326_v56 = vld [vmem:[%s11652_s7 + $0x8e0] sm:$0xff] }
 0x422   : > { %v6681_v14 = vpack.c.bf16 %v5271_v25, %v5267_v8  ;;  %v6793_v15 = vpack.c.bf16 %v5273_v10, %v5269_v9  ;;  %v5298_v9 = vld [vmem:[%s11652_s7 + $0x800] sm:$0xff] }
 0x423   : > { %v5302_v10 = vld [vmem:[%s11652_s7 + $0x820] sm:$0xff] }
 0x424   : > { %6552 = vmatpush1.bf16.msra.mxu0 %v6551_v18  ;;  %6664 = vmatpush1.bf16.msra.mxu1 %v6663_v19  ;;  %v5266_v18 = vld [vmem:[%s11652_s7 + $0x700] sm:$0xff]  ;;  %v6699_v20 = vpack.c.bf16 %v5302_v10, %v5298_v9  ;;  %v5343_v9 = vld [vmem:[%s11652_s7 + $0x968] sm:$0xff]  ;;  %v5341_v10 = vld [vmem:[%s11652_s7 + $0x958] sm:$0xff] }
 0x425   : > { %6554 = vmatprep.subr.bf16.mxu0 %v6553_v22  ;;  %6666 = vmatprep.subr.bf16.mxu1 %v6665_v28  ;;  %v5270_v19 = vld [vmem:[%s11652_s7 + $0x720] sm:$0xff]  ;;  %v5279_v22 = vld [vmem:[%s11652_s7 + $0x768] sm:$0xff]  ;;  %v5277_v28 = vld [vmem:[%s11652_s7 + $0x758] sm:$0xff] }
 0x426   : > { %v6683_v30 = vpack.c.bf16 %v5270_v19, %v5266_v18  ;;  %v6797_v37 = vpack.c.bf16 %v5281_v29, %v5277_v28  ;;  %v5309_v18 = vld [vmem:[%s11652_s7 + $0x858] sm:$0xff]  ;;  %v5310_v28 = vld [vmem:[%s11652_s7 + $0x860] sm:$0xff]  ;;  %v5308_v29 = vld [vmem:[%s11652_s7 + $0x850] sm:$0xff] }
 0x427   : > { %v5313_v19 = vld [vmem:[%s11652_s7 + $0x878] sm:$0xff] }
 0x428   : > { %6556 = vmatpush1.bf16.msra.mxu0 %v6555_v35  ;;  %6668 = vmatpush1.bf16.msra.mxu1 %v6667_v36  ;;  %v5276_v35 = vld [vmem:[%s11652_s7 + $0x750] sm:$0xff]  ;;  %v6685_v36 = vpack.c.bf16 %v5279_v22, %v5275_v21  ;;  %v5306_v22 = vld [vmem:[%s11652_s7 + $0x840] sm:$0xff] }
 0x429   : > { %6558 = vmatprep.subr.bf16.mxu0 %v6557_v17  ;;  %6670 = vmatprep.subr.bf16.mxu1 %v6669_v38  ;;  %v5283_v17 = vld [vmem:[%s11652_s7 + $0x788] sm:$0xff]  ;;  %v6799_v42 = vpack.c.bf16 %v5280_v16, %v5276_v35  ;;  %v5317_v35 = vld [vmem:[%s11652_s7 + $0x898] sm:$0xff] }
 0x42a   : > { %v5287_v38 = vld [vmem:[%s11652_s7 + $0x7a8] sm:$0xff] }
 0x42b   : > { %v6689_v43 = vpack.c.bf16 %v5287_v38, %v5283_v17  ;;  %v6705_v17 = vpack.c.bf16 %v5319_v34, %v5315_v33  ;;  %v5314_v38 = vld [vmem:[%s11652_s7 + $0x880] sm:$0xff] }
 0x42c   : > { %6560 = vmatpush1.bf16.msra.mxu0 %v6559_v46  ;;  %6672 = vmatpush1.bf16.msra.mxu1 %v6671_v47  ;;  %v5286_v46 = vld [vmem:[%s11652_s7 + $0x7a0] sm:$0xff]  ;;  %v5284_v47 = vld [vmem:[%s11652_s7 + $0x790] sm:$0xff] }
 0x42d   : > { %6562 = vmatprep.subr.bf16.mxu0 %v6561_v52  ;;  %6674 = vmatprep.subr.bf16.mxu1 %v6673_v54  ;;  %v5291_v52 = vld [vmem:[%s11652_s7 + $0x7c8] sm:$0xff]  ;;  %v6691_v59 = vpack.c.bf16 %v5286_v46, %v5282_v45  ;;  %v6803_v60 = vpack.c.bf16 %v5288_v49, %v5284_v47  ;;  %v5325_v46 = vld [vmem:[%s11652_s7 + $0x8d8] sm:$0xff]  ;;  %v5346_v34 = vld [vmem:[%s11652_s7 + $0x980] sm:$0xff] }
 0x42e   : > { %v5295_v54 = vld [vmem:[%s11652_s7 + $0x7e8] sm:$0xff]  ;;  %v5329_v47 = vld [vmem:[%s11652_s7 + $0x8f8] sm:$0xff] }
 0x42f   : > { %v6693_v61 = vpack.c.bf16 %v5295_v54, %v5291_v52  ;;  %v5327_v45 = vld [vmem:[%s11652_s7 + $0x8e8] sm:$0xff]  ;;  %v5322_v54 = vld [vmem:[%s11652_s7 + $0x8c0] sm:$0xff] }
 0x430   : > { %6564 = vmatpush1.bf16.msra.mxu0 %v6563_v63  ;;  %6676 = vmatpush1.bf16.msra.mxu1 %v6675_v0  ;;  %v5294_v63 = vld [vmem:[%s11652_s7 + $0x7e0] sm:$0xff]  ;;  %v5292_v0 = vld [vmem:[%s11652_s7 + $0x7d0] sm:$0xff] }
 0x431   : > { %6566 = vmatprep.subr.bf16.mxu0 %v6565_v4  ;;  %6678 = vmatprep.subr.bf16.mxu1 %v6677_v5  ;;  %v5303_v4 = vld [vmem:[%s11652_s7 + $0x828] sm:$0xff]  ;;  %v5301_v5 = vld [vmem:[%s11652_s7 + $0x818] sm:$0xff]  ;;  %v6695_v58 = vpack.c.bf16 %v5294_v63, %v5290_v62  ;;  %v6807_v8 = vpack.c.bf16 %v5296_v2, %v5292_v0 }
 0x432   : > { %v6697_v25 = vpack.c.bf16 %v5303_v4, %v5299_v3  ;;  %v5335_v62 = vld [vmem:[%s11652_s7 + $0x928] sm:$0xff]  ;;  %v5333_v63 = vld [vmem:[%s11652_s7 + $0x918] sm:$0xff]  ;;  %v5330_v4 = vld [vmem:[%s11652_s7 + $0x900] sm:$0xff] }
 0x433   : > { %v5337_v0 = vld [vmem:[%s11652_s7 + $0x938] sm:$0xff] }
 0x434   : > { %6568 = vmatpush1.bf16.msra.mxu0 %v6567_v11  ;;  %6680 = vmatpush1.bf16.msra.mxu1 %v6679_v12  ;;  %v5300_v11 = vld [vmem:[%s11652_s7 + $0x810] sm:$0xff]  ;;  %v6809_v12 = vpack.c.bf16 %v5305_v6, %v5301_v5  ;;  %v5334_v5 = vld [vmem:[%s11652_s7 + $0x920] sm:$0xff] }
 0x435   : > { %6682 = vmatprep.subr.bf16.mxu0 %v6681_v14  ;;  %6794 = vmatprep.subr.bf16.mxu1 %v6793_v15  ;;  %v5307_v14 = vld [vmem:[%s11652_s7 + $0x848] sm:$0xff]  ;;  %v6811_v39 = vpack.c.bf16 %v5304_v13, %v5300_v11  ;;  %v5332_v6 = vld [vmem:[%s11652_s7 + $0x910] sm:$0xff]  ;;  %v5345_v11 = vld [vmem:[%s11652_s7 + $0x978] sm:$0xff] }
 0x436   : > { %v5311_v15 = vld [vmem:[%s11652_s7 + $0x868] sm:$0xff] }
 0x437   : > { %2199 = vmatmul.mubr.f32.vlgmr.msra.gmra.mrb[10].mxu0 %v9542_v31  ;;  %2341 = vmatmul.mubr.f32.vlgmr.msra.gmra.mrb[10].mxu1 %v9542_v31  ;;  %v6701_v21 = vpack.c.bf16 %v5311_v15, %v5307_v14  ;;  %v5338_v15 = vld [vmem:[%s11652_s7 + $0x940] sm:$0xff] }
 0x438   : > { %6684 = vmatpush1.bf16.msra.mxu0 %v6683_v30  ;;  %2638 = vmatprep.mubr.f32.mxu0 %v9235_v44  ;;  %v6813_v30 = vpack.c.bf16 %v5313_v19, %v5309_v18  ;;  %v5342_v18 = vld [vmem:[%s11652_s7 + $0x960] sm:$0xff]  ;;  %v5340_v19 = vld [vmem:[%s11652_s7 + $0x950] sm:$0xff] }
 0x439   : > { %6796 = vmatpush1.bf16.msra.mxu1 %v6795_v32  ;;  %2780 = vmatprep.mubr.f32.mxu1 %v9235_v44  ;;  %v5312_v32 = vld [vmem:[%s11652_s7 + $0x870] sm:$0xff] }
 0x43a   : > { %6686 = vmatprep.subr.bf16.mxu0 %v6685_v36  ;;  %6798 = vmatprep.subr.bf16.mxu1 %v6797_v37  ;;  %v5321_v36 = vld [vmem:[%s11652_s7 + $0x8b8] sm:$0xff]  ;;  %v6703_v37 = vpack.c.bf16 %v5310_v28, %v5306_v22  ;;  %v6815_v16 = vpack.c.bf16 %v5312_v32, %v5308_v29  ;;  %v5351_v22 = vld [vmem:[%s11652_s7 + $0x9a8] sm:$0xff] }
 0x43b   : > { %v5349_v28 = vld [vmem:[%s11652_s7 + $0x998] sm:$0xff] }
 0x43c   : > { %6688 = vmatpush1.bf16.msra.mxu0 %v6687_v53  ;;  %v6817_v53 = vpack.c.bf16 %v5321_v36, %v5317_v35  ;;  %v5353_v29 = vld [vmem:[%s11652_s7 + $0x9b8] sm:$0xff]  ;;  %v5350_v35 = vld [vmem:[%s11652_s7 + $0x9a0] sm:$0xff]  ;;  %v5348_v36 = vld [vmem:[%s11652_s7 + $0x990] sm:$0xff] }
 0x43d   : > { %6800 = vmatpush1.bf16.msra.mxu1 %v6799_v42  ;;  %6690 = vmatprep.subr.bf16.mxu0 %v6689_v43  ;;  %v5320_v42 = vld [vmem:[%s11652_s7 + $0x8b0] sm:$0xff]  ;;  %v5323_v43 = vld [vmem:[%s11652_s7 + $0x8c8] sm:$0xff] }
 0x43e   : > { %6802 = vmatprep.subr.bf16.mxu1 %v6801_v48  ;;  %v6707_v48 = vpack.c.bf16 %v5318_v40, %v5314_v38  ;;  %v6819_v49 = vpack.c.bf16 %v5320_v42, %v5316_v41  ;;  %v6709_v52 = vpack.c.bf16 %v5327_v45, %v5323_v43  ;;  %v5359_v38 = vld [vmem:[%s11652_s7 + $0x9e8] sm:$0xff]  ;;  %v5357_v40 = vld [vmem:[%s11652_s7 + $0x9d8] sm:$0xff]  ;;  %v5354_v45 = vld [vmem:[%s11652_s7 + $0x9c0] sm:$0xff] }
 0x43f   : > { %v5361_v41 = vld [vmem:[%s11652_s7 + $0x9f8] sm:$0xff] }
 0x440   : > { %6692 = vmatpush1.bf16.msra.mxu0 %v6691_v59  ;;  %v6821_v59 = vpack.c.bf16 %v5329_v47, %v5325_v46  ;;  %v5358_v46 = vld [vmem:[%s11652_s7 + $0x9e0] sm:$0xff]  ;;  %v5356_v47 = vld [vmem:[%s11652_s7 + $0x9d0] sm:$0xff] }
 0x441   : > { %6804 = vmatpush1.bf16.msra.mxu1 %v6803_v60  ;;  %6694 = vmatprep.subr.bf16.mxu0 %v6693_v61  ;;  %v5328_v60 = vld [vmem:[%s11652_s7 + $0x8f0] sm:$0xff]  ;;  %v5331_v61 = vld [vmem:[%s11652_s7 + $0x908] sm:$0xff] }
 0x442   : > { %6806 = vmatprep.subr.bf16.mxu1 %v6805_v1  ;;  %v6711_v1 = vpack.c.bf16 %v5326_v56, %v5322_v54  ;;  %v6823_v2 = vpack.c.bf16 %v5328_v60, %v5324_v57  ;;  %v6713_v3 = vpack.c.bf16 %v5335_v62, %v5331_v61  ;;  %v5367_v54 = vld [vmem:[%s11652_s7 + $0xa28] sm:$0xff]  ;;  %v5365_v56 = vld [vmem:[%s11652_s7 + $0xa18] sm:$0xff]  ;;  %v5362_v62 = vld [vmem:[%s11652_s7 + $0xa00] sm:$0xff] }
 0x443   : > { %v5369_v57 = vld [vmem:[%s11652_s7 + $0xa38] sm:$0xff] }
 0x444   : > { %6696 = vmatpush1.bf16.msra.mxu0 %v6695_v58  ;;  %v6825_v58 = vpack.c.bf16 %v5337_v0, %v5333_v63  ;;  %v5366_v63 = vld [vmem:[%s11652_s7 + $0xa20] sm:$0xff]  ;;  %v5364_v0 = vld [vmem:[%s11652_s7 + $0xa10] sm:$0xff] }
 0x445   : > { %6808 = vmatpush1.bf16.msra.mxu1 %v6807_v8  ;;  %6698 = vmatprep.subr.bf16.mxu0 %v6697_v25  ;;  %v5336_v8 = vld [vmem:[%s11652_s7 + $0x930] sm:$0xff]  ;;  %v5339_v25 = vld [vmem:[%s11652_s7 + $0x948] sm:$0xff] }
 0x446   : > { %6810 = vmatprep.subr.bf16.mxu1 %v6809_v12  ;;  %v6715_v12 = vpack.c.bf16 %v5334_v5, %v5330_v4  ;;  %v6827_v13 = vpack.c.bf16 %v5336_v8, %v5332_v6  ;;  %v6717_v14 = vpack.c.bf16 %v5343_v9, %v5339_v25  ;;  %v5375_v4 = vld [vmem:[%s11652_s7 + $0xa68] sm:$0xff]  ;;  %v5373_v5 = vld [vmem:[%s11652_s7 + $0xa58] sm:$0xff]  ;;  %v5370_v9 = vld [vmem:[%s11652_s7 + $0xa40] sm:$0xff] }
 0x447   : > { %v5377_v6 = vld [vmem:[%s11652_s7 + $0xa78] sm:$0xff] }
 0x448   : > { %6700 = vmatpush1.bf16.msra.mxu0 %v6699_v20  ;;  %v6829_v20 = vpack.c.bf16 %v5345_v11, %v5341_v10  ;;  %v5374_v10 = vld [vmem:[%s11652_s7 + $0xa60] sm:$0xff]  ;;  %v5372_v11 = vld [vmem:[%s11652_s7 + $0xa50] sm:$0xff] }
 0x449   : > { %6812 = vmatpush1.bf16.msra.mxu1 %v6811_v39  ;;  %6702 = vmatprep.subr.bf16.mxu0 %v6701_v21  ;;  %v5344_v39 = vld [vmem:[%s11652_s7 + $0x970] sm:$0xff]  ;;  %v5347_v21 = vld [vmem:[%s11652_s7 + $0x988] sm:$0xff] }
 0x44a   : > { %6814 = vmatprep.subr.bf16.mxu1 %v6813_v30  ;;  %v6719_v30 = vpack.c.bf16 %v5342_v18, %v5338_v15  ;;  %v6831_v32 = vpack.c.bf16 %v5344_v39, %v5340_v19  ;;  %v6721_v33 = vpack.c.bf16 %v5351_v22, %v5347_v21  ;;  %v5383_v15 = vld [vmem:[%s11652_s7 + $0xaa8] sm:$0xff]  ;;  %v5381_v18 = vld [vmem:[%s11652_s7 + $0xa98] sm:$0xff]  ;;  %v5378_v22 = vld [vmem:[%s11652_s7 + $0xa80] sm:$0xff] }
 0x44b   : > { %v5385_v19 = vld [vmem:[%s11652_s7 + $0xab8] sm:$0xff] }
 0x44c   : > { %6704 = vmatpush1.bf16.msra.mxu0 %v6703_v37  ;;  %v6833_v37 = vpack.c.bf16 %v5353_v29, %v5349_v28  ;;  %v5382_v28 = vld [vmem:[%s11652_s7 + $0xaa0] sm:$0xff]  ;;  %v5380_v29 = vld [vmem:[%s11652_s7 + $0xa90] sm:$0xff] }
 0x44d   : > { %6816 = vmatpush1.bf16.msra.mxu1 %v6815_v16  ;;  %6706 = vmatprep.subr.bf16.mxu0 %v6705_v17  ;;  %v5352_v16 = vld [vmem:[%s11652_s7 + $0x9b0] sm:$0xff]  ;;  %v5355_v17 = vld [vmem:[%s11652_s7 + $0x9c8] sm:$0xff] }
 0x44e   : > { %6818 = vmatprep.subr.bf16.mxu1 %v6817_v53  ;;  %v6723_v53 = vpack.c.bf16 %v5350_v35, %v5346_v34  ;;  %v6835_v42 = vpack.c.bf16 %v5352_v16, %v5348_v36  ;;  %v6725_v43 = vpack.c.bf16 %v5359_v38, %v5355_v17  ;;  %v5391_v34 = vld [vmem:[%s11652_s7 + $0xae8] sm:$0xff]  ;;  %v5389_v35 = vld [vmem:[%s11652_s7 + $0xad8] sm:$0xff]  ;;  %v5386_v38 = vld [vmem:[%s11652_s7 + $0xac0] sm:$0xff] }
 0x44f   : > { %v5393_v36 = vld [vmem:[%s11652_s7 + $0xaf8] sm:$0xff] }
 0x450   : > { %6708 = vmatpush1.bf16.msra.mxu0 %v6707_v48  ;;  %v6837_v48 = vpack.c.bf16 %v5361_v41, %v5357_v40  ;;  %v5390_v40 = vld [vmem:[%s11652_s7 + $0xae0] sm:$0xff]  ;;  %v5388_v41 = vld [vmem:[%s11652_s7 + $0xad0] sm:$0xff] }
 0x451   : > { %6820 = vmatpush1.bf16.msra.mxu1 %v6819_v49  ;;  %6710 = vmatprep.subr.bf16.mxu0 %v6709_v52  ;;  %v5360_v49 = vld [vmem:[%s11652_s7 + $0x9f0] sm:$0xff]  ;;  %v5363_v52 = vld [vmem:[%s11652_s7 + $0xa08] sm:$0xff] }
 0x452   : > { %6822 = vmatprep.subr.bf16.mxu1 %v6821_v59  ;;  %v6727_v59 = vpack.c.bf16 %v5358_v46, %v5354_v45  ;;  %v6839_v60 = vpack.c.bf16 %v5360_v49, %v5356_v47  ;;  %v6729_v61 = vpack.c.bf16 %v5367_v54, %v5363_v52  ;;  %v5399_v45 = vld [vmem:[%s11652_s7 + $0xb28] sm:$0xff]  ;;  %v5397_v46 = vld [vmem:[%s11652_s7 + $0xb18] sm:$0xff]  ;;  %v5394_v54 = vld [vmem:[%s11652_s7 + $0xb00] sm:$0xff] }
 0x453   : > { %v5401_v47 = vld [vmem:[%s11652_s7 + $0xb38] sm:$0xff] }
 0x454   : > { %6712 = vmatpush1.bf16.msra.mxu0 %v6711_v1  ;;  %v6841_v1 = vpack.c.bf16 %v5369_v57, %v5365_v56  ;;  %v5398_v56 = vld [vmem:[%s11652_s7 + $0xb20] sm:$0xff]  ;;  %v6857_v57 = vpack.c.bf16 %v5401_v47, %v5397_v46  ;;  %v5428_v47 = vld [vmem:[%s11652_s7 + $0xc10] sm:$0xff] }
 0x455   : > { %6824 = vmatpush1.bf16.msra.mxu1 %v6823_v2  ;;  %6714 = vmatprep.subr.bf16.mxu0 %v6713_v3  ;;  %v5368_v2 = vld [vmem:[%s11652_s7 + $0xa30] sm:$0xff]  ;;  %v5371_v3 = vld [vmem:[%s11652_s7 + $0xa48] sm:$0xff]  ;;  %v5430_v46 = vld [vmem:[%s11652_s7 + $0xc20] sm:$0xff] }
 0x456   : > { %6826 = vmatprep.subr.bf16.mxu1 %v6825_v58  ;;  %v6731_v58 = vpack.c.bf16 %v5366_v63, %v5362_v62  ;;  %v6843_v8 = vpack.c.bf16 %v5368_v2, %v5364_v0  ;;  %v6733_v25 = vpack.c.bf16 %v5375_v4, %v5371_v3  ;;  %v5407_v62 = vld [vmem:[%s11652_s7 + $0xb68] sm:$0xff]  ;;  %v6747_v63 = vpack.c.bf16 %v5398_v56, %v5394_v54  ;;  %v5405_v0 = vld [vmem:[%s11652_s7 + $0xb58] sm:$0xff]  ;;  %v5402_v3 = vld [vmem:[%s11652_s7 + $0xb40] sm:$0xff] }
 0x457   : > { %v5406_v4 = vld [vmem:[%s11652_s7 + $0xb60] sm:$0xff]  ;;  %v5439_v54 = vld [vmem:[%s11652_s7 + $0xc68] sm:$0xff]  ;;  %v5437_v56 = vld [vmem:[%s11652_s7 + $0xc58] sm:$0xff] }
 0x458   : > { %6716 = vmatpush1.bf16.msra.mxu0 %v6715_v12  ;;  %v6845_v12 = vpack.c.bf16 %v5377_v6, %v5373_v5  ;;  %v5404_v5 = vld [vmem:[%s11652_s7 + $0xb50] sm:$0xff] }
 0x459   : > { %6828 = vmatpush1.bf16.msra.mxu1 %v6827_v13  ;;  %6718 = vmatprep.subr.bf16.mxu0 %v6717_v14  ;;  %v5376_v13 = vld [vmem:[%s11652_s7 + $0xa70] sm:$0xff]  ;;  %v5379_v14 = vld [vmem:[%s11652_s7 + $0xa88] sm:$0xff] }
 0x45a   : > { %6830 = vmatprep.subr.bf16.mxu1 %v6829_v20  ;;  %v6735_v20 = vpack.c.bf16 %v5374_v10, %v5370_v9  ;;  %v6847_v39 = vpack.c.bf16 %v5376_v13, %v5372_v11  ;;  %v6737_v21 = vpack.c.bf16 %v5383_v15, %v5379_v14  ;;  %v5413_v10 = vld [vmem:[%s11652_s7 + $0xb98] sm:$0xff]  ;;  %v5410_v15 = vld [vmem:[%s11652_s7 + $0xb80] sm:$0xff] }
 0x45b   : > { %v5417_v11 = vld [vmem:[%s11652_s7 + $0xbb8] sm:$0xff] }
 0x45c   : > { %6720 = vmatpush1.bf16.msra.mxu0 %v6719_v30  ;;  %v6849_v30 = vpack.c.bf16 %v5385_v19, %v5381_v18  ;;  %v5414_v18 = vld [vmem:[%s11652_s7 + $0xba0] sm:$0xff]  ;;  %v5412_v19 = vld [vmem:[%s11652_s7 + $0xb90] sm:$0xff] }
 0x45d   : > { %6832 = vmatpush1.bf16.msra.mxu1 %v6831_v32  ;;  %6722 = vmatprep.subr.bf16.mxu0 %v6721_v33  ;;  %v5384_v32 = vld [vmem:[%s11652_s7 + $0xab0] sm:$0xff]  ;;  %v5387_v33 = vld [vmem:[%s11652_s7 + $0xac8] sm:$0xff] }
 0x45e   : > { %6834 = vmatprep.subr.bf16.mxu1 %v6833_v37  ;;  %v6739_v37 = vpack.c.bf16 %v5382_v28, %v5378_v22  ;;  %v6851_v16 = vpack.c.bf16 %v5384_v32, %v5380_v29  ;;  %v6741_v17 = vpack.c.bf16 %v5391_v34, %v5387_v33  ;;  %v5423_v22 = vld [vmem:[%s11652_s7 + $0xbe8] sm:$0xff]  ;;  %v5421_v28 = vld [vmem:[%s11652_s7 + $0xbd8] sm:$0xff]  ;;  %v5418_v34 = vld [vmem:[%s11652_s7 + $0xbc0] sm:$0xff] }
 0x45f   : > { %v5425_v29 = vld [vmem:[%s11652_s7 + $0xbf8] sm:$0xff] }
 0x460   : > { %6724 = vmatpush1.bf16.msra.mxu0 %v6723_v53  ;;  %v6853_v53 = vpack.c.bf16 %v5393_v36, %v5389_v35  ;;  %v5422_v35 = vld [vmem:[%s11652_s7 + $0xbe0] sm:$0xff]  ;;  %v5420_v36 = vld [vmem:[%s11652_s7 + $0xbd0] sm:$0xff] }
 0x461   : > { %6836 = vmatpush1.bf16.msra.mxu1 %v6835_v42  ;;  %6726 = vmatprep.subr.bf16.mxu0 %v6725_v43  ;;  %v5392_v42 = vld [vmem:[%s11652_s7 + $0xaf0] sm:$0xff]  ;;  %v5395_v43 = vld [vmem:[%s11652_s7 + $0xb08] sm:$0xff] }
 0x462   : > { %6838 = vmatprep.subr.bf16.mxu1 %v6837_v48  ;;  %v6743_v48 = vpack.c.bf16 %v5390_v40, %v5386_v38  ;;  %v6855_v49 = vpack.c.bf16 %v5392_v42, %v5388_v41  ;;  %v6745_v52 = vpack.c.bf16 %v5399_v45, %v5395_v43  ;;  %v5431_v38 = vld [vmem:[%s11652_s7 + $0xc28] sm:$0xff]  ;;  %v5429_v40 = vld [vmem:[%s11652_s7 + $0xc18] sm:$0xff]  ;;  %v5426_v45 = vld [vmem:[%s11652_s7 + $0xc00] sm:$0xff] }
 0x463   : > { %v5433_v41 = vld [vmem:[%s11652_s7 + $0xc38] sm:$0xff] }
 0x464   : > { %6728 = vmatpush1.bf16.msra.mxu0 %v6727_v59  ;;  %v5396_v59 = vld [vmem:[%s11652_s7 + $0xb10] sm:$0xff] }
 0x465   : > { %6840 = vmatpush1.bf16.msra.mxu1 %v6839_v60  ;;  %6730 = vmatprep.subr.bf16.mxu0 %v6729_v61  ;;  %v5400_v60 = vld [vmem:[%s11652_s7 + $0xb30] sm:$0xff]  ;;  %v5403_v61 = vld [vmem:[%s11652_s7 + $0xb48] sm:$0xff] }
 0x466   : > { %6842 = vmatprep.subr.bf16.mxu1 %v6841_v1  ;;  %v5409_v1 = vld [vmem:[%s11652_s7 + $0xb78] sm:$0xff]  ;;  %v6859_v2 = vpack.c.bf16 %v5400_v60, %v5396_v59  ;;  %v6749_v6 = vpack.c.bf16 %v5407_v62, %v5403_v61  ;;  %v6763_v59 = vpack.c.bf16 %v5430_v46, %v5426_v45  ;;  %v5434_v62 = vld [vmem:[%s11652_s7 + $0xc40] sm:$0xff]  ;;  %v5471_v45 = vld [vmem:[%s11652_s7 + $0xd68] sm:$0xff] }
 0x467   : > { %v6861_v9 = vpack.c.bf16 %v5409_v1, %v5405_v0  ;;  %v5436_v0 = vld [vmem:[%s11652_s7 + $0xc50] sm:$0xff]  ;;  %v5469_v46 = vld [vmem:[%s11652_s7 + $0xd58] sm:$0xff] }
 0x468   : > { %6732 = vmatpush1.bf16.msra.mxu0 %v6731_v58  ;;  %v5408_v58 = vld [vmem:[%s11652_s7 + $0xb70] sm:$0xff] }
 0x469   : > { %6844 = vmatpush1.bf16.msra.mxu1 %v6843_v8  ;;  %6734 = vmatprep.subr.bf16.mxu0 %v6733_v25  ;;  %v5411_v8 = vld [vmem:[%s11652_s7 + $0xb88] sm:$0xff]  ;;  %v6863_v13 = vpack.c.bf16 %v5408_v58, %v5404_v5  ;;  %v5445_v5 = vld [vmem:[%s11652_s7 + $0xc98] sm:$0xff] }
 0x46a   : > { %6846 = vmatprep.subr.bf16.mxu1 %v6845_v12  ;;  %v5415_v25 = vld [vmem:[%s11652_s7 + $0xba8] sm:$0xff]  ;;  %v6751_v12 = vpack.c.bf16 %v5406_v4, %v5402_v3 }
 0x46b   : > { %v6753_v14 = vpack.c.bf16 %v5415_v25, %v5411_v8  ;;  %v5443_v3 = vld [vmem:[%s11652_s7 + $0xc88] sm:$0xff] }
 0x46c   : > { %6736 = vmatpush1.bf16.msra.mxu0 %v6735_v20  ;;  %v6865_v20 = vpack.c.bf16 %v5417_v11, %v5413_v10  ;;  %v5447_v4 = vld [vmem:[%s11652_s7 + $0xca8] sm:$0xff]  ;;  %v5446_v10 = vld [vmem:[%s11652_s7 + $0xca0] sm:$0xff]  ;;  %v5444_v11 = vld [vmem:[%s11652_s7 + $0xc90] sm:$0xff] }
 0x46d   : > { %6848 = vmatpush1.bf16.msra.mxu1 %v6847_v39  ;;  %6738 = vmatprep.subr.bf16.mxu0 %v6737_v21  ;;  %v5416_v39 = vld [vmem:[%s11652_s7 + $0xbb0] sm:$0xff]  ;;  %v5419_v21 = vld [vmem:[%s11652_s7 + $0xbc8] sm:$0xff]  ;;  %v6769_v25 = vpack.c.bf16 %v5447_v4, %v5443_v3  ;;  %v5474_v4 = vld [vmem:[%s11652_s7 + $0xd80] sm:$0xff] }
 0x46e   : > { %6850 = vmatprep.subr.bf16.mxu1 %v6849_v30  ;;  %v6755_v30 = vpack.c.bf16 %v5414_v18, %v5410_v15  ;;  %v6867_v32 = vpack.c.bf16 %v5416_v39, %v5412_v19  ;;  %v6757_v33 = vpack.c.bf16 %v5423_v22, %v5419_v21  ;;  %v5455_v15 = vld [vmem:[%s11652_s7 + $0xce8] sm:$0xff]  ;;  %v5453_v18 = vld [vmem:[%s11652_s7 + $0xcd8] sm:$0xff]  ;;  %v5450_v22 = vld [vmem:[%s11652_s7 + $0xcc0] sm:$0xff] }
 0x46f   : > { %v5457_v19 = vld [vmem:[%s11652_s7 + $0xcf8] sm:$0xff] }
 0x470   : > { %6740 = vmatpush1.bf16.msra.mxu0 %v6739_v37  ;;  %v6869_v37 = vpack.c.bf16 %v5425_v29, %v5421_v28  ;;  %v5454_v28 = vld [vmem:[%s11652_s7 + $0xce0] sm:$0xff]  ;;  %v5452_v29 = vld [vmem:[%s11652_s7 + $0xcd0] sm:$0xff] }
 0x471   : > { %6852 = vmatpush1.bf16.msra.mxu1 %v6851_v16  ;;  %6742 = vmatprep.subr.bf16.mxu0 %v6741_v17  ;;  %v5424_v16 = vld [vmem:[%s11652_s7 + $0xbf0] sm:$0xff]  ;;  %v5427_v17 = vld [vmem:[%s11652_s7 + $0xc08] sm:$0xff] }
 0x472   : > { %6854 = vmatprep.subr.bf16.mxu1 %v6853_v53  ;;  %v6759_v53 = vpack.c.bf16 %v5422_v35, %v5418_v34  ;;  %v6871_v42 = vpack.c.bf16 %v5424_v16, %v5420_v36  ;;  %v6761_v43 = vpack.c.bf16 %v5431_v38, %v5427_v17  ;;  %v5463_v34 = vld [vmem:[%s11652_s7 + $0xd28] sm:$0xff]  ;;  %v5461_v35 = vld [vmem:[%s11652_s7 + $0xd18] sm:$0xff]  ;;  %v5458_v38 = vld [vmem:[%s11652_s7 + $0xd00] sm:$0xff] }
 0x473   : > { %v5465_v36 = vld [vmem:[%s11652_s7 + $0xd38] sm:$0xff] }
 0x474   : > { %6744 = vmatpush1.bf16.msra.mxu0 %v6743_v48  ;;  %v6873_v48 = vpack.c.bf16 %v5433_v41, %v5429_v40  ;;  %v5462_v40 = vld [vmem:[%s11652_s7 + $0xd20] sm:$0xff]  ;;  %v5460_v41 = vld [vmem:[%s11652_s7 + $0xd10] sm:$0xff] }
 0x475   : > { %6856 = vmatpush1.bf16.msra.mxu1 %v6855_v49  ;;  %6746 = vmatprep.subr.bf16.mxu0 %v6745_v52  ;;  %v5432_v49 = vld [vmem:[%s11652_s7 + $0xc30] sm:$0xff]  ;;  %v5435_v52 = vld [vmem:[%s11652_s7 + $0xc48] sm:$0xff] }
 0x476   : > { %6858 = vmatprep.subr.bf16.mxu1 %v6857_v57  ;;  %v5441_v57 = vld [vmem:[%s11652_s7 + $0xc78] sm:$0xff]  ;;  %v6875_v60 = vpack.c.bf16 %v5432_v49, %v5428_v47  ;;  %v6765_v61 = vpack.c.bf16 %v5439_v54, %v5435_v52  ;;  %v5466_v54 = vld [vmem:[%s11652_s7 + $0xd40] sm:$0xff] }
 0x477   : > { %2639 = vmatmul.mubr.f32.vlgmr.msra.gmra.mrb[12].mxu0 %v9243_v50  ;;  %v6877_v1 = vpack.c.bf16 %v5441_v57, %v5437_v56  ;;  %v5473_v47 = vld [vmem:[%s11652_s7 + $0xd78] sm:$0xff]  ;;  %v5470_v56 = vld [vmem:[%s11652_s7 + $0xd60] sm:$0xff]  ;;  %v5468_v57 = vld [vmem:[%s11652_s7 + $0xd50] sm:$0xff] }
 0x478   : > { %2781 = vmatmul.mubr.f32.vlgmr.msra.gmra.mrb[12].mxu1 %v9243_v50  ;;  %6748 = vmatpush1.bf16.msra.mxu0 %v6747_v63  ;;  %v5438_v63 = vld [vmem:[%s11652_s7 + $0xc60] sm:$0xff] }
 0x479   : > { %5490 = vmatprep.mubr.msk.f32.mxu0 %vm2059_vm3, %v9254_v55  ;;  %6860 = vmatpush1.bf16.msra.mxu1 %v6859_v2  ;;  %v5440_v2 = vld [vmem:[%s11652_s7 + $0xc70] sm:$0xff]  ;;  %v6767_v58 = vpack.c.bf16 %v5438_v63, %v5434_v62  ;;  %v5479_v62 = vld [vmem:[%s11652_s7 + $0xda8] sm:$0xff]  ;;  %v5477_v63 = vld [vmem:[%s11652_s7 + $0xd98] sm:$0xff] }
 0x47a   : > { %5491 = vmatprep.mubr.msk.f32.mxu1 %vm2059_vm3, %v9254_v55  ;;  %6750 = vmatprep.subr.bf16.mxu0 %v6749_v6  ;;  %v5449_v6 = vld [vmem:[%s11652_s7 + $0xcb8] sm:$0xff]  ;;  %v6879_v8 = vpack.c.bf16 %v5440_v2, %v5436_v0 }
 0x47b   : > { %6862 = vmatprep.subr.bf16.mxu1 %v6861_v9  ;;  %v5442_v9 = vld [vmem:[%s11652_s7 + $0xc80] sm:$0xff]  ;;  %v5481_v0 = vld [vmem:[%s11652_s7 + $0xdb8] sm:$0xff] }
 0x47c   : > { %6752 = vmatpush1.bf16.msra.mxu0 %v6751_v12  ;;  %v6881_v12 = vpack.c.bf16 %v5449_v6, %v5445_v5  ;;  %v5478_v5 = vld [vmem:[%s11652_s7 + $0xda0] sm:$0xff]  ;;  %v5476_v6 = vld [vmem:[%s11652_s7 + $0xd90] sm:$0xff] }
 0x47d   : > { %6864 = vmatpush1.bf16.msra.mxu1 %v6863_v13  ;;  %6754 = vmatprep.subr.bf16.mxu0 %v6753_v14  ;;  %v5448_v13 = vld [vmem:[%s11652_s7 + $0xcb0] sm:$0xff]  ;;  %v5451_v14 = vld [vmem:[%s11652_s7 + $0xcc8] sm:$0xff] }
 0x47e   : > { %6866 = vmatprep.subr.bf16.mxu1 %v6865_v20  ;;  %v6771_v20 = vpack.c.bf16 %v5446_v10, %v5442_v9  ;;  %v6883_v39 = vpack.c.bf16 %v5448_v13, %v5444_v11  ;;  %v6773_v21 = vpack.c.bf16 %v5455_v15, %v5451_v14  ;;  %v5487_v9 = vld [vmem:[%s11652_s7 + $0xde8] sm:$0xff]  ;;  %v5485_v10 = vld [vmem:[%s11652_s7 + $0xdd8] sm:$0xff]  ;;  %v5482_v15 = vld [vmem:[%s11652_s7 + $0xdc0] sm:$0xff] }
 0x47f   : > { %v5489_v11 = vld [vmem:[%s11652_s7 + $0xdf8] sm:$0xff] }
 0x480   : > { %6756 = vmatpush1.bf16.msra.mxu0 %v6755_v30  ;;  %v6885_v30 = vpack.c.bf16 %v5457_v19, %v5453_v18  ;;  %v5486_v18 = vld [vmem:[%s11652_s7 + $0xde0] sm:$0xff]  ;;  %v6901_v19 = vpack.c.bf16 %v5489_v11, %v5485_v10  ;;  %v5565_v10 = vld [vmem:[%s11652_s7 + $0xfb8] sm:$0xff] }
 0x481   : > { %6868 = vmatpush1.bf16.msra.mxu1 %v6867_v32  ;;  %6758 = vmatprep.subr.bf16.mxu0 %v6757_v33  ;;  %v5456_v32 = vld [vmem:[%s11652_s7 + $0xcf0] sm:$0xff]  ;;  %v5459_v33 = vld [vmem:[%s11652_s7 + $0xd08] sm:$0xff] }
 0x482   : > { %6870 = vmatprep.subr.bf16.mxu1 %v6869_v37  ;;  %v6775_v37 = vpack.c.bf16 %v5454_v28, %v5450_v22  ;;  %v6887_v16 = vpack.c.bf16 %v5456_v32, %v5452_v29  ;;  %v6777_v17 = vpack.c.bf16 %v5463_v34, %v5459_v33  ;;  %v5513_v28 = vld [vmem:[%s11652_s7 + $0xe18] sm:$0xff]  ;;  %v5516_v32 = vld [vmem:[%s11652_s7 + $0xe30] sm:$0xff] }
 0x483   : > { %v5517_v29 = vld [vmem:[%s11652_s7 + $0xe38] sm:$0xff] }
 0x484   : > { %6760 = vmatpush1.bf16.msra.mxu0 %v6759_v53  ;;  %v6889_v53 = vpack.c.bf16 %v5465_v36, %v5461_v35  ;;  %v5521_v33 = vld [vmem:[%s11652_s7 + $0xe58] sm:$0xff] }
 0x485   : > { %6872 = vmatpush1.bf16.msra.mxu1 %v6871_v42  ;;  %6762 = vmatprep.subr.bf16.mxu0 %v6761_v43  ;;  %v5464_v42 = vld [vmem:[%s11652_s7 + $0xd30] sm:$0xff]  ;;  %v5467_v43 = vld [vmem:[%s11652_s7 + $0xd48] sm:$0xff]  ;;  %v5525_v34 = vld [vmem:[%s11652_s7 + $0xe78] sm:$0xff] }
 0x486   : > { %6874 = vmatprep.subr.bf16.mxu1 %v6873_v48  ;;  %v6779_v48 = vpack.c.bf16 %v5462_v40, %v5458_v38  ;;  %v6891_v49 = vpack.c.bf16 %v5464_v42, %v5460_v41  ;;  %v6781_v52 = vpack.c.bf16 %v5471_v45, %v5467_v43  ;;  %v10219_v38 = vld [vmem:[%s11651_s6] sm:$0xff]  ;;  %v7021_v41 = vpack.c.bf16 %v5525_v34, %v5521_v33  ;;  %v5524_v42 = vld [vmem:[%s11652_s7 + $0xe70] sm:$0xff]  ;;  %v5529_v43 = vld [vmem:[%s11652_s7 + $0xe98] sm:$0xff] }
 0x487   : > { %v5533_v45 = vld [vmem:[%s11652_s7 + $0xeb8] sm:$0xff]  ;;  %v5580_v33 = vld [vmem:[%s11652_s7 + $0x1030] sm:$0xff] }
 0x488   : > { %6764 = vmatpush1.bf16.msra.mxu0 %v6763_v59  ;;  %v6893_v59 = vpack.c.bf16 %v5473_v47, %v5469_v46  ;;  %v10241_v46 = vld [vmem:[%s11651_s6 + $0x8] sm:$0x3f]  ;;  %v5585_v34 = vld [vmem:[%s11652_s7 + $0x1058] sm:$0xff] }
 0x489   : > { %6876 = vmatpush1.bf16.msra.mxu1 %v6875_v60  ;;  %6766 = vmatprep.subr.bf16.mxu0 %v6765_v61  ;;  %v5472_v60 = vld [vmem:[%s11652_s7 + $0xd70] sm:$0xff]  ;;  %v5475_v61 = vld [vmem:[%s11652_s7 + $0xd88] sm:$0xff] }
 0x48a   : > { %6878 = vmatprep.subr.bf16.mxu1 %v6877_v1  ;;  %v6783_v1 = vpack.c.bf16 %v5470_v56, %v5466_v54  ;;  %v6895_v2 = vpack.c.bf16 %v5472_v60, %v5468_v57  ;;  %v6785_v3 = vpack.c.bf16 %v5479_v62, %v5475_v61  ;;  %v5537_v54 = vld [vmem:[%s11652_s7 + $0xed8] sm:$0xff]  ;;  %v5536_v60 = vld [vmem:[%s11652_s7 + $0xed0] sm:$0xff] }
 0x48b   : > { %v5541_v56 = vld [vmem:[%s11652_s7 + $0xef8] sm:$0xff]  ;;  %v5540_v61 = vld [vmem:[%s11652_s7 + $0xef0] sm:$0xff] }
 0x48c   : > { %6768 = vmatpush1.bf16.msra.mxu0 %v6767_v58  ;;  %v6897_v58 = vpack.c.bf16 %v5481_v0, %v5477_v63  ;;  %v5545_v62 = vld [vmem:[%s11652_s7 + $0xf18] sm:$0xff]  ;;  %v7031_v0 = vpack.c.bf16 %v5540_v61, %v5536_v60 }
 0x48d   : > { %6880 = vmatpush1.bf16.msra.mxu1 %v6879_v8  ;;  %6770 = vmatprep.subr.bf16.mxu0 %v6769_v25  ;;  %v5480_v8 = vld [vmem:[%s11652_s7 + $0xdb0] sm:$0xff]  ;;  %v5483_v25 = vld [vmem:[%s11652_s7 + $0xdc8] sm:$0xff]  ;;  %v5549_v63 = vld [vmem:[%s11652_s7 + $0xf38] sm:$0xff] }
 0x48e   : > { %6882 = vmatprep.subr.bf16.mxu1 %v6881_v12  ;;  %v6787_v12 = vpack.c.bf16 %v5478_v5, %v5474_v4  ;;  %v6899_v13 = vpack.c.bf16 %v5480_v8, %v5476_v6  ;;  %v6789_v14 = vpack.c.bf16 %v5487_v9, %v5483_v25  ;;  %v5553_v4 = vld [vmem:[%s11652_s7 + $0xf58] sm:$0xff]  ;;  %v5552_v8 = vld [vmem:[%s11652_s7 + $0xf50] sm:$0xff] }
 0x48f   : > { %v5557_v5 = vld [vmem:[%s11652_s7 + $0xf78] sm:$0xff]  ;;  %v5556_v25 = vld [vmem:[%s11652_s7 + $0xf70] sm:$0xff] }
 0x490   : > { %6772 = vmatpush1.bf16.msra.mxu0 %v6771_v20  ;;  %v5484_v20 = vld [vmem:[%s11652_s7 + $0xdd0] sm:$0xff]  ;;  %v5561_v9 = vld [vmem:[%s11652_s7 + $0xf98] sm:$0xff]  ;;  %v7039_v11 = vpack.c.bf16 %v5556_v25, %v5552_v8 }
 0x491   : > { %6884 = vmatpush1.bf16.msra.mxu1 %v6883_v39  ;;  %6774 = vmatprep.subr.bf16.mxu0 %v6773_v21  ;;  %v5488_v39 = vld [vmem:[%s11652_s7 + $0xdf0] sm:$0xff]  ;;  %v6791_v21 = vpack.c.bf16 %v5486_v18, %v5482_v15  ;;  %v5569_v15 = vld [vmem:[%s11652_s7 + $0xfd8] sm:$0xff] }
 0x492   : > { %6886 = vmatprep.subr.bf16.mxu1 %v6885_v30  ;;  %v6903_v22 = vpack.c.bf16 %v5488_v39, %v5484_v20  ;;  %v5512_v30 = vld [vmem:[%s11652_s7 + $0xe10] sm:$0xff]  ;;  %v5573_v18 = vld [vmem:[%s11652_s7 + $0xff8] sm:$0xff] }
 0x493   : > { %v7019_v40 = vpack.c.bf16 %v5516_v32, %v5512_v30  ;;  %v7045_v20 = vpack.c.bf16 %v5573_v18, %v5569_v15  ;;  %v5568_v39 = vld [vmem:[%s11652_s7 + $0xfd0] sm:$0xff]  ;;  %v5609_v60 = vld [vmem:[%s11652_s7 + $0x1118] sm:$0xff] }
 0x494   : > { %6776 = vmatpush1.bf16.msra.mxu0 %v6775_v37  ;;  %v7017_v37 = vpack.c.bf16 %v5517_v29, %v5513_v28  ;;  %v5581_v28 = vld [vmem:[%s11652_s7 + $0x1038] sm:$0xff]  ;;  %v5576_v32 = vld [vmem:[%s11652_s7 + $0x1010] sm:$0xff] }
 0x495   : > { %6888 = vmatpush1.bf16.msra.mxu1 %v6887_v16  ;;  %6778 = vmatprep.subr.bf16.mxu0 %v6777_v17  ;;  %v5613_v61 = vld [vmem:[%s11652_s7 + $0x1138] sm:$0xff] }
 0x496   : > { %6890 = vmatprep.subr.bf16.mxu1 %v6889_v53  ;;  %v5520_v53 = vld [vmem:[%s11652_s7 + $0xe50] sm:$0xff]  ;;  %v5625_v8 = vld [vmem:[%s11652_s7 + $0x1198] sm:$0xff] }
 0x497   : > { %v7023_v47 = vpack.c.bf16 %v5524_v42, %v5520_v53  ;;  %v5593_v53 = vld [vmem:[%s11652_s7 + $0x1098] sm:$0xff] }
 0x498   : > { %6780 = vmatpush1.bf16.msra.mxu0 %v6779_v48  ;;  %v7025_v48 = vpack.c.bf16 %v5533_v45, %v5529_v43  ;;  %v5597_v42 = vld [vmem:[%s11652_s7 + $0x10b8] sm:$0xff] }
 0x499   : > { %6892 = vmatpush1.bf16.msra.mxu1 %v6891_v49  ;;  %6782 = vmatprep.subr.bf16.mxu0 %v6781_v52  ;;  %v5528_v49 = vld [vmem:[%s11652_s7 + $0xe90] sm:$0xff]  ;;  %v7057_v45 = vpack.c.bf16 %v5597_v42, %v5593_v53  ;;  %v5629_v25 = vld [vmem:[%s11652_s7 + $0x11b8] sm:$0xff] }
 0x49a   : > { %6894 = vmatprep.subr.bf16.mxu1 %v6893_v59  ;;  %v5532_v52 = vld [vmem:[%s11652_s7 + $0xeb0] sm:$0xff]  ;;  %v7029_v59 = vpack.c.bf16 %v5541_v56, %v5537_v54 }
 0x49b   : > { %v7027_v57 = vpack.c.bf16 %v5532_v52, %v5528_v49  ;;  %v5601_v49 = vld [vmem:[%s11652_s7 + $0x10d8] sm:$0xff] }
 0x49c   : > { %6784 = vmatpush1.bf16.msra.mxu0 %v6783_v1  ;;  %v7033_v1 = vpack.c.bf16 %v5549_v63, %v5545_v62  ;;  %v5605_v52 = vld [vmem:[%s11652_s7 + $0x10f8] sm:$0xff]  ;;  %v7065_v63 = vpack.c.bf16 %v5613_v61, %v5609_v60 }
 0x49d   : > { %6896 = vmatpush1.bf16.msra.mxu1 %v6895_v2  ;;  %6786 = vmatprep.subr.bf16.mxu0 %v6785_v3  ;;  %v5544_v2 = vld [vmem:[%s11652_s7 + $0xf10] sm:$0xff]  ;;  %v7061_v56 = vpack.c.bf16 %v5605_v52, %v5601_v49 }
 0x49e   : > { %6898 = vmatprep.subr.bf16.mxu1 %v6897_v58  ;;  %v5548_v3 = vld [vmem:[%s11652_s7 + $0xf30] sm:$0xff]  ;;  %v7037_v58 = vpack.c.bf16 %v5557_v5, %v5553_v4 }
 0x49f   : > { %v7035_v6 = vpack.c.bf16 %v5548_v3, %v5544_v2  ;;  %v5617_v2 = vld [vmem:[%s11652_s7 + $0x1158] sm:$0xff] }
 0x4a0   : > { %6788 = vmatpush1.bf16.msra.mxu0 %v6787_v12  ;;  %v7041_v12 = vpack.c.bf16 %v5565_v10, %v5561_v9  ;;  %v5621_v3 = vld [vmem:[%s11652_s7 + $0x1178] sm:$0xff]  ;;  %v7073_v10 = vpack.c.bf16 %v5629_v25, %v5625_v8 }
 0x4a1   : > { %6900 = vmatpush1.bf16.msra.mxu1 %v6899_v13  ;;  %6790 = vmatprep.subr.bf16.mxu0 %v6789_v14  ;;  %v5560_v13 = vld [vmem:[%s11652_s7 + $0xf90] sm:$0xff]  ;;  %v7069_v5 = vpack.c.bf16 %v5621_v3, %v5617_v2 }
 0x4a2   : > { %6902 = vmatprep.subr.bf16.mxu1 %v6901_v19  ;;  %v5564_v14 = vld [vmem:[%s11652_s7 + $0xfb0] sm:$0xff] }
 0x4a3   : > { %v7043_v19 = vpack.c.bf16 %v5564_v14, %v5560_v13  ;;  %v5633_v13 = vld [vmem:[%s11652_s7 + $0x11d8] sm:$0xff] }
 0x4a4   : > { %6792 = vmatpush1.bf16.msra.mxu0 %v6791_v21  ;;  %v5572_v21 = vld [vmem:[%s11652_s7 + $0xff0] sm:$0xff]  ;;  %v5637_v14 = vld [vmem:[%s11652_s7 + $0x11f8] sm:$0xff] }
 0x4a5   : > { %6904 = vmatpush1.bf16.msra.mxu1 %v6903_v22  ;;  %v5577_v22 = vld [vmem:[%s11652_s7 + $0x1018] sm:$0xff]  ;;  %v7047_v29 = vpack.c.bf16 %v5572_v21, %v5568_v39  ;;  %v7077_v18 = vpack.c.bf16 %v5637_v14, %v5633_v13 }
 0x4a6   : > { %v7049_v30 = vpack.c.bf16 %v5581_v28, %v5577_v22  ;;  %v5641_v39 = vld [vmem:[%s11652_s7 + $0x1218] sm:$0xff] }
 0x4a7   : > { %2710 = vmatmul.mubr.f32.vlgmr.msra.gmra.mrb[12].mxu0 %v9542_v31  ;;  %v5645_v21 = vld [vmem:[%s11652_s7 + $0x1238] sm:$0xff] }
 0x4a8   : > { %2852 = vmatmul.mubr.f32.vlgmr.msra.gmra.mrb[12].mxu1 %v9542_v31  ;;  %2945 = vmatprep.mubr.f32.mxu0 %v7431_v7  ;;  %v7081_v28 = vpack.c.bf16 %v5645_v21, %v5641_v39 }
 0x4a9   : > { %3194 = vmatprep.mubr.f32.mxu1 %v7431_v7 }
 0x50a   : > { %v10212_v35 = vpop.f32.mrb[10].mxu0  ;;  %v2342_v36 = vpop.f32.mrb[10].mxu1 }
 0x50b   : > { %v10214_v16 = vpop.f32.mrb[11].mxu0  ;;  %v2344_v17 = vpop.f32.mrb[11].mxu1 }
 0x50c   : > { %5506 = vmatprep.subr.msk.mxu1 %vm2868_vm4, %v2344_v17 }
 0x50d   : > { %5507 = vmatpush1.msk.msra.mxu1 %vm2868_vm4, %v2342_v36  ;;  %v5589_v36 = vld [vmem:[%s11652_s7 + $0x1078] sm:$0xff] }
 0x50e   : > { %5508 = vmatmul.mubr.msk.f32.vlgmr.msra.gmra.mrb[14].mxu1 %vm2861_vm5, %v10219_v38  ;;  %7018 = vmatprep.subr.bf16.mxu1 %v7017_v37  ;;  %v7051_v37 = vpack.c.bf16 %v5580_v33, %v5576_v32  ;;  %v7053_v17 = vpack.c.bf16 %v5589_v36, %v5585_v34  ;;  %v5649_v32 = vld [vmem:[%s11652_s7 + $0x1258] sm:$0xff] }
 0x50f   : > { %7020 = vmatpush1.bf16.msra.mxu1 %v7019_v40  ;;  %3200 = vmatprep.mubr.f32.mxu1 %v7431_v7  ;;  %v5584_v40 = vld [vmem:[%s11652_s7 + $0x1050] sm:$0xff]  ;;  %v5653_v33 = vld [vmem:[%s11652_s7 + $0x1278] sm:$0xff] }
 0x510   : > { %7022 = vmatprep.subr.bf16.mxu1 %v7021_v41  ;;  %v5588_v41 = vld [vmem:[%s11652_s7 + $0x1070] sm:$0xff]  ;;  %v7085_v36 = vpack.c.bf16 %v5653_v33, %v5649_v32 }
 0x511   : > { %v7055_v43 = vpack.c.bf16 %v5588_v41, %v5584_v40  ;;  %v5657_v40 = vld [vmem:[%s11652_s7 + $0x1298] sm:$0xff] }
 0x512   : > { %5509 = vmatmul.mubr.msk.f32.gmra.mrb[16].mxu1 %vm2861_vm5, %v10241_v46  ;;  %v5661_v41 = vld [vmem:[%s11652_s7 + $0x12b8] sm:$0xff] }
 0x513   : > { %7024 = vmatpush1.bf16.msra.mxu1 %v7023_v47  ;;  %3638 = vmatprep.mubr.f32.mxu1 %v9235_v44  ;;  %v5592_v47 = vld [vmem:[%s11652_s7 + $0x1090] sm:$0xff]  ;;  %v7089_v42 = vpack.c.bf16 %v5661_v41, %v5657_v40 }
 0x514   : > { %7026 = vmatprep.subr.bf16.mxu1 %v7025_v48  ;;  %v5596_v48 = vld [vmem:[%s11652_s7 + $0x10b0] sm:$0xff] }
 0x515   : > { %v7059_v54 = vpack.c.bf16 %v5596_v48, %v5592_v47  ;;  %v5665_v47 = vld [vmem:[%s11652_s7 + $0x12d8] sm:$0xff] }
 0x516   : > { %v5669_v48 = vld [vmem:[%s11652_s7 + $0x12f8] sm:$0xff] }
 0x517   : > { %7028 = vmatpush1.bf16.msra.mxu1 %v7027_v57  ;;  %v5600_v57 = vld [vmem:[%s11652_s7 + $0x10d0] sm:$0xff]  ;;  %v7093_v52 = vpack.c.bf16 %v5669_v48, %v5665_v47 }
 0x518   : > { %7030 = vmatprep.subr.bf16.mxu1 %v7029_v59  ;;  %v5604_v59 = vld [vmem:[%s11652_s7 + $0x10f0] sm:$0xff] }
 0x519   : > { %v7063_v62 = vpack.c.bf16 %v5604_v59, %v5600_v57  ;;  %v5673_v57 = vld [vmem:[%s11652_s7 + $0x1318] sm:$0xff] }
 0x51a   : > { %v5677_v59 = vld [vmem:[%s11652_s7 + $0x1338] sm:$0xff] }
 0x51b   : > { %7032 = vmatpush1.bf16.msra.mxu1 %v7031_v0  ;;  %v5608_v0 = vld [vmem:[%s11652_s7 + $0x1110] sm:$0xff]  ;;  %v7097_v61 = vpack.c.bf16 %v5677_v59, %v5673_v57 }
 0x51c   : > { %7034 = vmatprep.subr.bf16.mxu1 %v7033_v1  ;;  %v5612_v1 = vld [vmem:[%s11652_s7 + $0x1130] sm:$0xff] }
 0x51d   : > { %v7067_v4 = vpack.c.bf16 %v5612_v1, %v5608_v0  ;;  %v5681_v0 = vld [vmem:[%s11652_s7 + $0x1358] sm:$0xff] }
 0x51e   : > { %v5685_v1 = vld [vmem:[%s11652_s7 + $0x1378] sm:$0xff] }
 0x51f   : > { %7036 = vmatpush1.bf16.msra.mxu1 %v7035_v6  ;;  %v5616_v6 = vld [vmem:[%s11652_s7 + $0x1150] sm:$0xff]  ;;  %v7101_v3 = vpack.c.bf16 %v5685_v1, %v5681_v0  ;;  %v5515_v0 = vld [vmem:[%s11652_s7 + $0xe28] sm:$0xff] }
 0x520   : > { %7038 = vmatprep.subr.bf16.mxu1 %v7037_v58  ;;  %v5620_v58 = vld [vmem:[%s11652_s7 + $0x1170] sm:$0xff] }
 0x521   : > { %v7071_v9 = vpack.c.bf16 %v5620_v58, %v5616_v6  ;;  %v5689_v6 = vld [vmem:[%s11652_s7 + $0x1398] sm:$0xff] }
 0x522   : > { %v5693_v58 = vld [vmem:[%s11652_s7 + $0x13b8] sm:$0xff] }
 0x523   : > { %7040 = vmatpush1.bf16.msra.mxu1 %v7039_v11  ;;  %v5624_v11 = vld [vmem:[%s11652_s7 + $0x1190] sm:$0xff]  ;;  %v7105_v25 = vpack.c.bf16 %v5693_v58, %v5689_v6  ;;  %v5518_v6 = vld [vmem:[%s11652_s7 + $0xe40] sm:$0xff] }
 0x524   : > { %7042 = vmatprep.subr.bf16.mxu1 %v7041_v12  ;;  %v5628_v12 = vld [vmem:[%s11652_s7 + $0x11b0] sm:$0xff]  ;;  %v5522_v58 = vld [vmem:[%s11652_s7 + $0xe60] sm:$0xff] }
 0x525   : > { %v7075_v15 = vpack.c.bf16 %v5628_v12, %v5624_v11  ;;  %v5697_v11 = vld [vmem:[%s11652_s7 + $0x13d8] sm:$0xff] }
 0x526   : > { %v5701_v12 = vld [vmem:[%s11652_s7 + $0x13f8] sm:$0xff] }
 0x527   : > { %7044 = vmatpush1.bf16.msra.mxu1 %v7043_v19  ;;  %v5632_v19 = vld [vmem:[%s11652_s7 + $0x11d0] sm:$0xff]  ;;  %v7109_v14 = vpack.c.bf16 %v5701_v12, %v5697_v11  ;;  %v5526_v11 = vld [vmem:[%s11652_s7 + $0xe80] sm:$0xff] }
 0x528   : > { %7046 = vmatprep.subr.bf16.mxu1 %v7045_v20  ;;  %v5636_v20 = vld [vmem:[%s11652_s7 + $0x11f0] sm:$0xff]  ;;  %v5530_v12 = vld [vmem:[%s11652_s7 + $0xea0] sm:$0xff] }
 0x529   : > { %v7079_v22 = vpack.c.bf16 %v5636_v20, %v5632_v19  ;;  %v5705_v19 = vld [vmem:[%s11652_s7 + $0x1418] sm:$0xff] }
 0x52a   : > { %v5709_v20 = vld [vmem:[%s11652_s7 + $0x1438] sm:$0xff] }
 0x52b   : > { %7048 = vmatpush1.bf16.msra.mxu1 %v7047_v29  ;;  %v5640_v29 = vld [vmem:[%s11652_s7 + $0x1210] sm:$0xff]  ;;  %v7113_v21 = vpack.c.bf16 %v5709_v20, %v5705_v19  ;;  %v5538_v19 = vld [vmem:[%s11652_s7 + $0xee0] sm:$0xff]  ;;  %v5543_v20 = vld [vmem:[%s11652_s7 + $0xf08] sm:$0xff] }
 0x52c   : > { %7050 = vmatprep.subr.bf16.mxu1 %v7049_v30  ;;  %v5644_v30 = vld [vmem:[%s11652_s7 + $0x1230] sm:$0xff] }
 0x52d   : > { %v7083_v34 = vpack.c.bf16 %v5644_v30, %v5640_v29  ;;  %v5713_v29 = vld [vmem:[%s11652_s7 + $0x1458] sm:$0xff] }
 0x52e   : > { %v5717_v30 = vld [vmem:[%s11652_s7 + $0x1478] sm:$0xff] }
 0x52f   : > { %7052 = vmatpush1.bf16.msra.mxu1 %v7051_v37  ;;  %v5648_v37 = vld [vmem:[%s11652_s7 + $0x1250] sm:$0xff]  ;;  %v7117_v33 = vpack.c.bf16 %v5717_v30, %v5713_v29  ;;  %v5555_v29 = vld [vmem:[%s11652_s7 + $0xf68] sm:$0xff] }
 0x530   : > { %7054 = vmatprep.subr.bf16.mxu1 %v7053_v17  ;;  %v5652_v17 = vld [vmem:[%s11652_s7 + $0x1270] sm:$0xff] }
 0x531   : > { %v7087_v53 = vpack.c.bf16 %v5652_v17, %v5648_v37  ;;  %v5721_v37 = vld [vmem:[%s11652_s7 + $0x1498] sm:$0xff] }
 0x532   : > { %v5725_v17 = vld [vmem:[%s11652_s7 + $0x14b8] sm:$0xff] }
 0x533   : > { %7056 = vmatpush1.bf16.msra.mxu1 %v7055_v43  ;;  %v5656_v43 = vld [vmem:[%s11652_s7 + $0x1290] sm:$0xff]  ;;  %v7121_v41 = vpack.c.bf16 %v5725_v17, %v5721_v37  ;;  %v5563_v37 = vld [vmem:[%s11652_s7 + $0xfa8] sm:$0xff] }
 0x534   : > { %7058 = vmatprep.subr.bf16.mxu1 %v7057_v45  ;;  %v5660_v45 = vld [vmem:[%s11652_s7 + $0x12b0] sm:$0xff] }
 0x535   : > { %v7091_v49 = vpack.c.bf16 %v5660_v45, %v5656_v43  ;;  %v5729_v43 = vld [vmem:[%s11652_s7 + $0x14d8] sm:$0xff] }
 0x536   : > { %v5733_v45 = vld [vmem:[%s11652_s7 + $0x14f8] sm:$0xff] }
 0x537   : > { %7060 = vmatpush1.bf16.msra.mxu1 %v7059_v54  ;;  %v5664_v54 = vld [vmem:[%s11652_s7 + $0x12d0] sm:$0xff]  ;;  %v7125_v48 = vpack.c.bf16 %v5733_v45, %v5729_v43  ;;  %v5571_v43 = vld [vmem:[%s11652_s7 + $0xfe8] sm:$0xff] }
 0x538   : > { %7062 = vmatprep.subr.bf16.mxu1 %v7061_v56  ;;  %v5668_v56 = vld [vmem:[%s11652_s7 + $0x12f0] sm:$0xff] }
 0x539   : > { %v7095_v60 = vpack.c.bf16 %v5668_v56, %v5664_v54 }
 0x53b   : > { %7064 = vmatpush1.bf16.msra.mxu1 %v7063_v62  ;;  %v5672_v62 = vld [vmem:[%s11652_s7 + $0x1310] sm:$0xff] }
 0x53c   : > { %7066 = vmatprep.subr.bf16.mxu1 %v7065_v63  ;;  %v5676_v63 = vld [vmem:[%s11652_s7 + $0x1330] sm:$0xff] }
 0x53d   : > { %v7099_v2 = vpack.c.bf16 %v5676_v63, %v5672_v62  ;;  %v5493_v62 = vld [vmem:[%s11651_s6 + $0x18] sm:$0x3f]  ;;  %v5511_v63 = vld [vmem:[%s11652_s7 + $0xe08] sm:$0xff] }
 0x53e   : > { %v6905_v1 = vpack.c.bf16 %v5515_v0, %v5511_v63 }
 0x53f   : > { %7068 = vmatpush1.bf16.msra.mxu1 %v7067_v4  ;;  %v5680_v4 = vld [vmem:[%s11652_s7 + $0x1350] sm:$0xff] }
 0x540   : > { %7070 = vmatprep.subr.bf16.mxu1 %v7069_v5  ;;  %v5684_v5 = vld [vmem:[%s11652_s7 + $0x1370] sm:$0xff] }
 0x541   : > { %v7103_v8 = vpack.c.bf16 %v5684_v5, %v5680_v4  ;;  %v5523_v4 = vld [vmem:[%s11652_s7 + $0xe68] sm:$0xff] }
 0x543   : > { %7072 = vmatpush1.bf16.msra.mxu1 %v7071_v9  ;;  %v5688_v9 = vld [vmem:[%s11652_s7 + $0x1390] sm:$0xff] }
 0x544   : > { %7074 = vmatprep.subr.bf16.mxu1 %v7073_v10  ;;  %v5692_v10 = vld [vmem:[%s11652_s7 + $0x13b0] sm:$0xff] }
 0x545   : > { %v7107_v13 = vpack.c.bf16 %v5692_v10, %v5688_v9  ;;  %v6911_v9 = vpack.c.bf16 %v5522_v58, %v5518_v6  ;;  %v5594_v6 = vld [vmem:[%s11652_s7 + $0x10a0] sm:$0xff]  ;;  %v5599_v58 = vld [vmem:[%s11652_s7 + $0x10c8] sm:$0xff] }
 0x547   : > { %7076 = vmatpush1.bf16.msra.mxu1 %v7075_v15  ;;  %v5696_v15 = vld [vmem:[%s11652_s7 + $0x13d0] sm:$0xff] }
 0x548   : > { %7078 = vmatprep.subr.bf16.mxu1 %v7077_v18  ;;  %v5700_v18 = vld [vmem:[%s11652_s7 + $0x13f0] sm:$0xff] }
 0x549   : > { %v7111_v39 = vpack.c.bf16 %v5700_v18, %v5696_v15  ;;  %v5534_v18 = vld [vmem:[%s11652_s7 + $0xec0] sm:$0xff] }
 0x54b   : > { %7080 = vmatpush1.bf16.msra.mxu1 %v7079_v22  ;;  %v5704_v22 = vld [vmem:[%s11652_s7 + $0x1410] sm:$0xff] }
 0x54c   : > { %7082 = vmatprep.subr.bf16.mxu1 %v7081_v28  ;;  %v5708_v28 = vld [vmem:[%s11652_s7 + $0x1430] sm:$0xff] }
 0x54d   : > { %v7115_v32 = vpack.c.bf16 %v5708_v28, %v5704_v22  ;;  %v5546_v22 = vld [vmem:[%s11652_s7 + $0xf20] sm:$0xff]  ;;  %v5551_v28 = vld [vmem:[%s11652_s7 + $0xf48] sm:$0xff] }
 0x54e   : > { %3639 = vmatmul.mubr.f32.vlgmr.msra.gmra.mrb[18].mxu1 %v9243_v50 }
 0x54f   : > { %7084 = vmatpush1.bf16.msra.mxu1 %v7083_v34  ;;  %5735 = vmatprep.mubr.msk.f32.mxu1 %vm2059_vm3, %v9254_v55  ;;  %v5712_v34 = vld [vmem:[%s11652_s7 + $0x1450] sm:$0xff] }
 0x550   : > { %7086 = vmatprep.subr.bf16.mxu1 %v7085_v36  ;;  %v5716_v36 = vld [vmem:[%s11652_s7 + $0x1470] sm:$0xff] }
 0x551   : > { %v7119_v40 = vpack.c.bf16 %v5716_v36, %v5712_v34  ;;  %v5554_v34 = vld [vmem:[%s11652_s7 + $0xf60] sm:$0xff]  ;;  %v5559_v36 = vld [vmem:[%s11652_s7 + $0xf88] sm:$0xff] }
 0x553   : > { %7088 = vmatpush1.bf16.msra.mxu1 %v7087_v53  ;;  %v5720_v53 = vld [vmem:[%s11652_s7 + $0x1490] sm:$0xff] }
 0x554   : > { %7090 = vmatprep.subr.bf16.mxu1 %v7089_v42  ;;  %v5724_v42 = vld [vmem:[%s11652_s7 + $0x14b0] sm:$0xff] }
 0x555   : > { %v7123_v47 = vpack.c.bf16 %v5724_v42, %v5720_v53  ;;  %v5562_v53 = vld [vmem:[%s11652_s7 + $0xfa0] sm:$0xff]  ;;  %v5567_v42 = vld [vmem:[%s11652_s7 + $0xfc8] sm:$0xff] }
 0x557   : > { %7092 = vmatpush1.bf16.msra.mxu1 %v7091_v49  ;;  %v5728_v49 = vld [vmem:[%s11652_s7 + $0x14d0] sm:$0xff] }
 0x558   : > { %7094 = vmatprep.subr.bf16.mxu1 %v7093_v52  ;;  %v5732_v52 = vld [vmem:[%s11652_s7 + $0x14f0] sm:$0xff] }
 0x559   : > { %v7127_v54 = vpack.c.bf16 %v5732_v52, %v5728_v49  ;;  %v5570_v49 = vld [vmem:[%s11652_s7 + $0xfe0] sm:$0xff]  ;;  %v5575_v52 = vld [vmem:[%s11652_s7 + $0x1008] sm:$0xff] }
 0x55b   : > { %7096 = vmatpush1.bf16.msra.mxu1 %v7095_v60  ;;  %v5492_v60 = vld [vmem:[%s11651_s6 + $0x10] sm:$0xff] }
 0x55c   : > { %7098 = vmatprep.subr.bf16.mxu1 %v7097_v61 }
 0x55f   : > { %7100 = vmatpush1.bf16.msra.mxu1 %v7099_v2  ;;  %v5514_v2 = vld [vmem:[%s11652_s7 + $0xe20] sm:$0xff] }
 0x560   : > { %7102 = vmatprep.subr.bf16.mxu1 %v7101_v3  ;;  %v5519_v3 = vld [vmem:[%s11652_s7 + $0xe48] sm:$0xff] }
 0x561   : > { %v6909_v5 = vpack.c.bf16 %v5523_v4, %v5519_v3  ;;  %v5595_v3 = vld [vmem:[%s11652_s7 + $0x10a8] sm:$0xff] }
 0x563   : > { %7104 = vmatpush1.bf16.msra.mxu1 %v7103_v8  ;;  %v5527_v8 = vld [vmem:[%s11652_s7 + $0xe88] sm:$0xff] }
 0x564   : > { %7106 = vmatprep.subr.bf16.mxu1 %v7105_v25  ;;  %v5531_v25 = vld [vmem:[%s11652_s7 + $0xea8] sm:$0xff] }
 0x565   : > { %v6913_v10 = vpack.c.bf16 %v5531_v25, %v5527_v8  ;;  %v5603_v8 = vld [vmem:[%s11652_s7 + $0x10e8] sm:$0xff] }
 0x567   : > { %7108 = vmatpush1.bf16.msra.mxu1 %v7107_v13  ;;  %v5535_v13 = vld [vmem:[%s11652_s7 + $0xec8] sm:$0xff] }
 0x568   : > { %7110 = vmatprep.subr.bf16.mxu1 %v7109_v14  ;;  %v6915_v14 = vpack.c.bf16 %v5530_v12, %v5526_v11  ;;  %v5602_v11 = vld [vmem:[%s11652_s7 + $0x10e0] sm:$0xff]  ;;  %v5607_v12 = vld [vmem:[%s11652_s7 + $0x1108] sm:$0xff] }
 0x56b   : > { %7112 = vmatpush1.bf16.msra.mxu1 %v7111_v39 }
 0x56c   : > { %7114 = vmatprep.subr.bf16.mxu1 %v7113_v21  ;;  %v5542_v21 = vld [vmem:[%s11652_s7 + $0xf00] sm:$0xff] }
 0x56d   : > { %v6923_v30 = vpack.c.bf16 %v5546_v22, %v5542_v21  ;;  %v5618_v21 = vld [vmem:[%s11652_s7 + $0x1160] sm:$0xff]  ;;  %v5623_v22 = vld [vmem:[%s11652_s7 + $0x1188] sm:$0xff] }
 0x56f   : > { %7116 = vmatpush1.bf16.msra.mxu1 %v7115_v32  ;;  %v6925_v32 = vpack.c.bf16 %v5555_v29, %v5551_v28  ;;  %v5627_v28 = vld [vmem:[%s11652_s7 + $0x11a8] sm:$0xff] }
 0x570   : > { %7118 = vmatprep.subr.bf16.mxu1 %v7117_v33  ;;  %v5550_v33 = vld [vmem:[%s11652_s7 + $0xf40] sm:$0xff] }
 0x571   : > { %v6927_v17 = vpack.c.bf16 %v5554_v34, %v5550_v33  ;;  %v5626_v33 = vld [vmem:[%s11652_s7 + $0x11a0] sm:$0xff]  ;;  %v5631_v34 = vld [vmem:[%s11652_s7 + $0x11c8] sm:$0xff] }
 0x573   : > { %7120 = vmatpush1.bf16.msra.mxu1 %v7119_v40  ;;  %v6929_v40 = vpack.c.bf16 %v5563_v37, %v5559_v36  ;;  %v5635_v36 = vld [vmem:[%s11652_s7 + $0x11e8] sm:$0xff] }
 0x574   : > { %7122 = vmatprep.subr.bf16.mxu1 %v7121_v41  ;;  %v5558_v41 = vld [vmem:[%s11652_s7 + $0xf80] sm:$0xff] }
 0x575   : > { %v6931_v45 = vpack.c.bf16 %v5562_v53, %v5558_v41  ;;  %v5634_v41 = vld [vmem:[%s11652_s7 + $0x11e0] sm:$0xff]  ;;  %v5639_v53 = vld [vmem:[%s11652_s7 + $0x1208] sm:$0xff] }
 0x577   : > { %7124 = vmatpush1.bf16.msra.mxu1 %v7123_v47  ;;  %v6933_v47 = vpack.c.bf16 %v5571_v43, %v5567_v42  ;;  %v5643_v42 = vld [vmem:[%s11652_s7 + $0x1228] sm:$0xff] }
 0x578   : > { %7126 = vmatprep.subr.bf16.mxu1 %v7125_v48  ;;  %v5566_v48 = vld [vmem:[%s11652_s7 + $0xfc0] sm:$0xff] }
 0x57a   : > { %v2711_v56 = vpop.f32.mrb[12].mxu0 }
 0x57b   : > { %v2853_v57 = vpop.f32.mrb[12].mxu1  ;;  %v2713_v59 = vpop.f32.mrb[13].mxu0  ;;  %7128 = vmatpush1.bf16.msra.mxu1 %v7127_v54  ;;  %v5579_v54 = vld [vmem:[%s11652_s7 + $0x1028] sm:$0xff] }
 0x57c   : > { %v2855_v61 = vpop.f32.mrb[13].mxu1  ;;  %5494 = vmatprep.subr.msk.mxu0 %vm2868_vm4, %v2713_v59  ;;  %v5574_v59 = vld [vmem:[%s11652_s7 + $0x1000] sm:$0xff] }
 0x57d   : > { %5495 = vmatpush1.msk.msra.mxu0 %vm2868_vm4, %v2711_v56  ;;  %v6935_v56 = vpack.c.bf16 %v5570_v49, %v5566_v48  ;;  %v5642_v48 = vld [vmem:[%s11652_s7 + $0x1220] sm:$0xff]  ;;  %v5647_v49 = vld [vmem:[%s11652_s7 + $0x1248] sm:$0xff] }
 0x57e   : > { %5496 = vmatmul.mubr.msk.f32.vlgmr.msra.gmra.mrb[14].mxu0 %vm2861_vm5, %v5492_v60  ;;  %5498 = vmatprep.subr.msk.mxu0 %vm2868_vm4, %v2855_v61  ;;  %v5583_v61 = vld [vmem:[%s11652_s7 + $0x1048] sm:$0xff] }
 0x57f   : > { %3710 = vmatmul.mubr.f32.vlgmr.msra.gmra.mrb[18].mxu1 %v9542_v31  ;;  %5499 = vmatpush1.msk.msra.mxu0 %vm2868_vm4, %v2853_v57  ;;  %v6937_v57 = vpack.c.bf16 %v5579_v54, %v5575_v52  ;;  %v5651_v52 = vld [vmem:[%s11652_s7 + $0x1268] sm:$0xff] }
 0x580   : > { %5502 = vmatprep.subr.msk.mxu0 %vm2868_vm4, %v10214_v16  ;;  %2951 = vmatprep.mubr.f32.mxu0 %v7431_v7  ;;  %v5510_v16 = vld [vmem:[%s11652_s7 + $0xe00] sm:$0xff] }
 0x581   : > { %3878 = vmatprep.mubr.f32.mxu1 %v7431_v7 }
 0x582   : > { %5497 = vmatmul.mubr.msk.f32.gmra.mrb[16].mxu0 %vm2861_vm5, %v5493_v62 }
 0x583   : > { %3022 = vmatprep.mubr.f32.mxu0 %v7431_v7 }
 0x586   : > { %5500 = vmatmul.mubr.msk.f32.vlgmr.msra.gmra.mrb[18].mxu0 %vm2861_vm5, %v5492_v60  ;;  %v5578_v60 = vld [vmem:[%s11652_s7 + $0x1020] sm:$0xff] }
 0x587   : > { %5503 = vmatpush1.msk.msra.mxu0 %vm2868_vm4, %v10212_v35  ;;  %3028 = vmatprep.mubr.f32.mxu0 %v7431_v7  ;;  %v6907_v35 = vpack.c.bf16 %v5514_v2, %v5510_v16  ;;  %v6939_v63 = vpack.c.bf16 %v5578_v60, %v5574_v59  ;;  %v5586_v16 = vld [vmem:[%s11652_s7 + $0x1060] sm:$0xff]  ;;  %v5591_v2 = vld [vmem:[%s11652_s7 + $0x1088] sm:$0xff] }
 0x588   : > { %6906 = vmatprep.subr.bf16.mxu0 %v6905_v1  ;;  %v5582_v1 = vld [vmem:[%s11652_s7 + $0x1040] sm:$0xff]  ;;  %v5655_v60 = vld [vmem:[%s11652_s7 + $0x1288] sm:$0xff] }
 0x589   : > { %v6943_v4 = vpack.c.bf16 %v5586_v16, %v5582_v1  ;;  %v5650_v59 = vld [vmem:[%s11652_s7 + $0x1260] sm:$0xff]  ;;  %v5663_v16 = vld [vmem:[%s11652_s7 + $0x12c8] sm:$0xff] }
 0x58a   : > { %5501 = vmatmul.mubr.msk.f32.gmra.mrb[20].mxu0 %vm2861_vm5, %v5493_v62  ;;  %v5587_v62 = vld [vmem:[%s11652_s7 + $0x1068] sm:$0xff]  ;;  %v5658_v1 = vld [vmem:[%s11652_s7 + $0x12a0] sm:$0xff] }
 0x58b   : > { %3117 = vmatprep.mubr.f32.mxu0 %v7431_v7  ;;  %v6941_v0 = vpack.c.bf16 %v5587_v62, %v5583_v61  ;;  %v5659_v61 = vld [vmem:[%s11652_s7 + $0x12a8] sm:$0xff] }
 0x58e   : > { %5504 = vmatmul.mubr.msk.f32.vlgmr.msra.gmra.mrb[14].mxu0 %vm2861_vm5, %v10219_v38  ;;  %v5539_v38 = vld [vmem:[%s11652_s7 + $0xee8] sm:$0xff] }
 0x58f   : > { %6908 = vmatpush1.bf16.msra.mxu0 %v6907_v35  ;;  %3123 = vmatprep.mubr.f32.mxu0 %v7431_v7  ;;  %v6917_v15 = vpack.c.bf16 %v5539_v38, %v5535_v13  ;;  %v6945_v35 = vpack.c.bf16 %v5595_v3, %v5591_v2  ;;  %v5611_v13 = vld [vmem:[%s11652_s7 + $0x1128] sm:$0xff]  ;;  %v5662_v3 = vld [vmem:[%s11652_s7 + $0x12c0] sm:$0xff] }
 0x590   : > { %6910 = vmatprep.subr.bf16.mxu0 %v6909_v5  ;;  %v5590_v5 = vld [vmem:[%s11652_s7 + $0x1080] sm:$0xff] }
 0x591   : > { %v6947_v25 = vpack.c.bf16 %v5594_v6, %v5590_v5  ;;  %v5675_v5 = vld [vmem:[%s11652_s7 + $0x1328] sm:$0xff] }
 0x592   : > { %5505 = vmatmul.mubr.msk.f32.gmra.mrb[16].mxu0 %vm2861_vm5, %v10241_v46  ;;  %v5547_v46 = vld [vmem:[%s11652_s7 + $0xf28] sm:$0xff] }
 0x593   : > { %6912 = vmatpush1.bf16.msra.mxu0 %v6911_v9  ;;  %3496 = vmatprep.mubr.f32.mxu0 %v9235_v44  ;;  %v6919_v44 = vpack.c.bf16 %v5538_v19, %v5534_v18  ;;  %v6921_v39 = vpack.c.bf16 %v5547_v46, %v5543_v20  ;;  %v6949_v9 = vpack.c.bf16 %v5603_v8, %v5599_v58  ;;  %v5610_v18 = vld [vmem:[%s11652_s7 + $0x1120] sm:$0xff]  ;;  %v5615_v19 = vld [vmem:[%s11652_s7 + $0x1148] sm:$0xff] }
 0x594   : > { %6914 = vmatprep.subr.bf16.mxu0 %v6913_v10  ;;  %v5598_v10 = vld [vmem:[%s11652_s7 + $0x10c0] sm:$0xff]  ;;  %v5619_v20 = vld [vmem:[%s11652_s7 + $0x1168] sm:$0xff] }
 0x595   : > { %v6951_v38 = vpack.c.bf16 %v5602_v11, %v5598_v10  ;;  %v5670_v8 = vld [vmem:[%s11652_s7 + $0x1300] sm:$0xff]  ;;  %v5683_v10 = vld [vmem:[%s11652_s7 + $0x1368] sm:$0xff] }
 0x597   : > { %6916 = vmatpush1.bf16.msra.mxu0 %v6915_v14  ;;  %v6953_v14 = vpack.c.bf16 %v5611_v13, %v5607_v12  ;;  %v5678_v13 = vld [vmem:[%s11652_s7 + $0x1340] sm:$0xff] }
 0x598   : > { %6918 = vmatprep.subr.bf16.mxu0 %v6917_v15  ;;  %v5606_v15 = vld [vmem:[%s11652_s7 + $0x1100] sm:$0xff] }
 0x599   : > { %v6955_v46 = vpack.c.bf16 %v5610_v18, %v5606_v15  ;;  %v5691_v15 = vld [vmem:[%s11652_s7 + $0x13a8] sm:$0xff] }
 0x59b   : > { %6920 = vmatpush1.bf16.msra.mxu0 %v6919_v44  ;;  %v6957_v44 = vpack.c.bf16 %v5619_v20, %v5615_v19  ;;  %v5686_v20 = vld [vmem:[%s11652_s7 + $0x1380] sm:$0xff] }
 0x59c   : > { %6922 = vmatprep.subr.bf16.mxu0 %v6921_v39  ;;  %v5614_v39 = vld [vmem:[%s11652_s7 + $0x1140] sm:$0xff] }
 0x59d   : > { %v6959_v29 = vpack.c.bf16 %v5618_v21, %v5614_v39  ;;  %v5699_v39 = vld [vmem:[%s11652_s7 + $0x13e8] sm:$0xff] }
 0x59f   : > { %6924 = vmatpush1.bf16.msra.mxu0 %v6923_v30  ;;  %v6961_v30 = vpack.c.bf16 %v5627_v28, %v5623_v22  ;;  %v5694_v28 = vld [vmem:[%s11652_s7 + $0x13c0] sm:$0xff] }
 0x5a0   : > { %6926 = vmatprep.subr.bf16.mxu0 %v6925_v32  ;;  %v5622_v32 = vld [vmem:[%s11652_s7 + $0x1180] sm:$0xff] }
 0x5a1   : > { %v6963_v37 = vpack.c.bf16 %v5626_v33, %v5622_v32  ;;  %v5707_v32 = vld [vmem:[%s11652_s7 + $0x1428] sm:$0xff] }
 0x5a3   : > { %6928 = vmatpush1.bf16.msra.mxu0 %v6927_v17  ;;  %v6965_v17 = vpack.c.bf16 %v5635_v36, %v5631_v34  ;;  %v5702_v36 = vld [vmem:[%s11652_s7 + $0x1400] sm:$0xff] }
 0x5a4   : > { %6930 = vmatprep.subr.bf16.mxu0 %v6929_v40  ;;  %v5630_v40 = vld [vmem:[%s11652_s7 + $0x11c0] sm:$0xff] }
 0x5a5   : > { %v6967_v43 = vpack.c.bf16 %v5634_v41, %v5630_v40  ;;  %v5715_v40 = vld [vmem:[%s11652_s7 + $0x1468] sm:$0xff] }
 0x5a7   : > { %6932 = vmatpush1.bf16.msra.mxu0 %v6931_v45  ;;  %v6969_v45 = vpack.c.bf16 %v5643_v42, %v5639_v53  ;;  %v5710_v42 = vld [vmem:[%s11652_s7 + $0x1440] sm:$0xff] }
 0x5a8   : > { %6934 = vmatprep.subr.bf16.mxu0 %v6933_v47  ;;  %v5638_v47 = vld [vmem:[%s11652_s7 + $0x1200] sm:$0xff] }
 0x5a9   : > { %v6971_v54 = vpack.c.bf16 %v5642_v48, %v5638_v47  ;;  %v5723_v47 = vld [vmem:[%s11652_s7 + $0x14a8] sm:$0xff] }
 0x5ab   : > { %6936 = vmatpush1.bf16.msra.mxu0 %v6935_v56  ;;  %v6973_v56 = vpack.c.bf16 %v5651_v52, %v5647_v49  ;;  %v5718_v52 = vld [vmem:[%s11652_s7 + $0x1480] sm:$0xff] }
 0x5ac   : > { %6938 = vmatprep.subr.bf16.mxu0 %v6937_v57  ;;  %v5646_v57 = vld [vmem:[%s11652_s7 + $0x1240] sm:$0xff] }
 0x5ad   : > { %v6975_v62 = vpack.c.bf16 %v5650_v59, %v5646_v57  ;;  %v5731_v57 = vld [vmem:[%s11652_s7 + $0x14e8] sm:$0xff] }
 0x5af   : > { %6940 = vmatpush1.bf16.msra.mxu0 %v6939_v63  ;;  %v6977_v63 = vpack.c.bf16 %v5659_v61, %v5655_v60  ;;  %v5726_v61 = vld [vmem:[%s11652_s7 + $0x14c0] sm:$0xff] }
 0x5b0   : > { %6942 = vmatprep.subr.bf16.mxu0 %v6941_v0  ;;  %v5654_v0 = vld [vmem:[%s11652_s7 + $0x1280] sm:$0xff] }
 0x5b3   : > { %6944 = vmatpush1.bf16.msra.mxu0 %v6943_v4  ;;  %v5666_v4 = vld [vmem:[%s11652_s7 + $0x12e0] sm:$0xff] }
 0x5b4   : > { %6946 = vmatprep.subr.bf16.mxu0 %v6945_v35  ;;  %v5671_v35 = vld [vmem:[%s11652_s7 + $0x1308] sm:$0xff]  ;;  %v6983_v6 = vpack.c.bf16 %v5666_v4, %v5662_v3  ;;  %v3971_v3 = vld [vmem:[%s11655_s10 + $0x110] sm:$0xff] }
 0x5b5   : > { %v6985_v58 = vpack.c.bf16 %v5675_v5, %v5671_v35  ;;  %v7432_v35 = vmov 0.0|0.0  }
 0x5b7   : > { %6948 = vmatpush1.bf16.msra.mxu0 %v6947_v25  ;;  %v5674_v25 = vld [vmem:[%s11652_s7 + $0x1320] sm:$0xff] }
 0x5b8   : > { %6950 = vmatprep.subr.bf16.mxu0 %v6949_v9  ;;  %v5679_v9 = vld [vmem:[%s11652_s7 + $0x1348] sm:$0xff]  ;;  %v6987_v11 = vpack.c.bf16 %v5674_v25, %v5670_v8  ;;  %v3973_v25 = vld [vmem:[%s11655_s10 + $0x120] sm:$0xff] }
 0x5b9   : > { %v6989_v12 = vpack.c.bf16 %v5683_v10, %v5679_v9  ;;  %v3974_v9 = vld [vmem:[%s11655_s10 + $0x128] sm:$0xff] }
 0x5bb   : > { %6952 = vmatpush1.bf16.msra.mxu0 %v6951_v38  ;;  %v5682_v38 = vld [vmem:[%s11652_s7 + $0x1360] sm:$0xff] }
 0x5bc   : > { %6954 = vmatprep.subr.bf16.mxu0 %v6953_v14  ;;  %v5687_v14 = vld [vmem:[%s11652_s7 + $0x1388] sm:$0xff]  ;;  %v6991_v18 = vpack.c.bf16 %v5682_v38, %v5678_v13  ;;  %v3976_v13 = vld [vmem:[%s11655_s10 + $0x138] sm:$0xff] }
 0x5bd   : > { %v6993_v19 = vpack.c.bf16 %v5691_v15, %v5687_v14  ;;  %v3977_v14 = vld [vmem:[%s11655_s10 + $0x140] sm:$0xff]  ;;  %v3978_v15 = vld [vmem:[%s11655_s10 + $0x148] sm:$0xff] }
 0x5bf   : > { %6956 = vmatpush1.bf16.msra.mxu0 %v6955_v46  ;;  %v5690_v46 = vld [vmem:[%s11652_s7 + $0x13a0] sm:$0xff] }
 0x5c0   : > { %6958 = vmatprep.subr.bf16.mxu0 %v6957_v44  ;;  %v5695_v44 = vld [vmem:[%s11652_s7 + $0x13c8] sm:$0xff]  ;;  %v6995_v21 = vpack.c.bf16 %v5690_v46, %v5686_v20  ;;  %v3980_v20 = vld [vmem:[%s11655_s10 + $0x158] sm:$0xff] }
 0x5c1   : > { %v6997_v22 = vpack.c.bf16 %v5699_v39, %v5695_v44  ;;  %v3981_v44 = vld [vmem:[%s11655_s10 + $0x160] sm:$0xff]  ;;  %v3982_v39 = vld [vmem:[%s11655_s10 + $0x168] sm:$0xff] }
 0x5c3   : > { %6960 = vmatpush1.bf16.msra.mxu0 %v6959_v29  ;;  %v5698_v29 = vld [vmem:[%s11652_s7 + $0x13e0] sm:$0xff] }
 0x5c4   : > { %6962 = vmatprep.subr.bf16.mxu0 %v6961_v30  ;;  %v5703_v30 = vld [vmem:[%s11652_s7 + $0x1408] sm:$0xff]  ;;  %v6999_v33 = vpack.c.bf16 %v5698_v29, %v5694_v28  ;;  %v3984_v28 = vld [vmem:[%s11655_s10 + $0x178] sm:$0xff] }
 0x5c5   : > { %v7001_v34 = vpack.c.bf16 %v5707_v32, %v5703_v30  ;;  %v3985_v30 = vld [vmem:[%s11655_s10 + $0x180] sm:$0xff]  ;;  %v3986_v32 = vld [vmem:[%s11655_s10 + $0x188] sm:$0xff] }
 0x5c7   : > { %6964 = vmatpush1.bf16.msra.mxu0 %v6963_v37  ;;  %v5706_v37 = vld [vmem:[%s11652_s7 + $0x1420] sm:$0xff] }
 0x5c8   : > { %6966 = vmatprep.subr.bf16.mxu0 %v6965_v17  ;;  %v5711_v17 = vld [vmem:[%s11652_s7 + $0x1448] sm:$0xff]  ;;  %v7003_v41 = vpack.c.bf16 %v5706_v37, %v5702_v36  ;;  %v3988_v36 = vld [vmem:[%s11655_s10 + $0x198] sm:$0xff] }
 0x5c9   : > { %v7005_v53 = vpack.c.bf16 %v5715_v40, %v5711_v17  ;;  %v3989_v17 = vld [vmem:[%s11655_s10 + $0x1a0] sm:$0xff]  ;;  %v3990_v40 = vld [vmem:[%s11655_s10 + $0x1a8] sm:$0xff] }
 0x5cb   : > { %6968 = vmatpush1.bf16.msra.mxu0 %v6967_v43  ;;  %v5714_v43 = vld [vmem:[%s11652_s7 + $0x1460] sm:$0xff] }
 0x5cc   : > { %6970 = vmatprep.subr.bf16.mxu0 %v6969_v45  ;;  %v5719_v45 = vld [vmem:[%s11652_s7 + $0x1488] sm:$0xff]  ;;  %v7007_v48 = vpack.c.bf16 %v5714_v43, %v5710_v42  ;;  %v3992_v42 = vld [vmem:[%s11655_s10 + $0x1b8] sm:$0xff] }
 0x5cd   : > { %v7009_v49 = vpack.c.bf16 %v5723_v47, %v5719_v45 }
 0x5ce   : > { %3497 = vmatmul.mubr.f32.vlgmr.msra.gmra.mrb[22].mxu0 %v9243_v50  ;;  %v5667_v50 = vld [vmem:[%s11652_s7 + $0x12e8] sm:$0xff] }
 0x5cf   : > { %6972 = vmatpush1.bf16.msra.mxu0 %v6971_v54  ;;  %5734 = vmatprep.mubr.msk.f32.mxu0 %vm2059_vm3, %v9254_v55  ;;  %v6979_v55 = vpack.c.bf16 %v5658_v1, %v5654_v0  ;;  %v6981_v2 = vpack.c.bf16 %v5667_v50, %v5663_v16  ;;  %v5722_v54 = vld [vmem:[%s11652_s7 + $0x14a0] sm:$0xff] }
 0x5d0   : > { %6974 = vmatprep.subr.bf16.mxu0 %v6973_v56  ;;  %v5727_v56 = vld [vmem:[%s11652_s7 + $0x14c8] sm:$0xff]  ;;  %v7011_v59 = vpack.c.bf16 %v5722_v54, %v5718_v52  ;;  %v10929_v16 = vld [vmem:[%s11651_s6 + $0x20] sm:$0xff] }
 0x5d1   : > { %v7013_v60 = vpack.c.bf16 %v5731_v57, %v5727_v56  ;;  %v3937_v54 = vld [vmem:[%s11655_s10] sm:$0xff]  ;;  %v3955_v57 = vld [vmem:[%s11655_s10 + $0x90] sm:$0xff] }
 0x5d3   : > { %6976 = vmatpush1.bf16.msra.mxu0 %v6975_v62  ;;  %v5730_v62 = vld [vmem:[%s11652_s7 + $0x14e0] sm:$0xff] }
 0x5d4   : > { %6978 = vmatprep.subr.bf16.mxu0 %v6977_v63  ;;  %v7015_v63 = vpack.c.bf16 %v5730_v62, %v5726_v61  ;;  %v3939_v61 = vld [vmem:[%s11655_s10 + $0x10] sm:$0xff]  ;;  %v3940_v62 = vld [vmem:[%s11655_s10 + $0x18] sm:$0xff] }
 0x5d7   : > { %6980 = vmatpush1.bf16.msra.mxu0 %v6979_v55  ;;  %v3969_v55 = vld [vmem:[%s11655_s10 + $0x100] sm:$0xff] }
 0x5d8   : > { %6982 = vmatprep.subr.bf16.mxu0 %v6981_v2  ;;  %v3970_v2 = vld [vmem:[%s11655_s10 + $0x108] sm:$0xff] }
 0x5d9   : > { %v7162_v5 = vpack.c.bf16 %v3970_v2, %v3969_v55  ;;  %v3942_v55 = vld [vmem:[%s11655_s10 + $0x28] sm:$0xff] }
 0x5db   : > { %6984 = vmatpush1.bf16.msra.mxu0 %v6983_v6  ;;  %v3972_v6 = vld [vmem:[%s11655_s10 + $0x118] sm:$0xff] }
 0x5dc   : > { %6986 = vmatprep.subr.bf16.mxu0 %v6985_v58  ;;  %v7165_v58 = vpack.c.bf16 %v3972_v6, %v3971_v3  ;;  %v3959_v3 = vld [vmem:[%s11655_s10 + $0xb0] sm:$0xff] }
 0x5dd   : > { %v3943_v6 = vld [vmem:[%s11655_s10 + $0x30] sm:$0xff] }
 0x5df   : > { %6988 = vmatpush1.bf16.msra.mxu0 %v6987_v11  ;;  %v7168_v11 = vpack.c.bf16 %v3974_v9, %v3973_v25  ;;  %v3944_v25 = vld [vmem:[%s11655_s10 + $0x38] sm:$0xff]  ;;  %v3961_v9 = vld [vmem:[%s11655_s10 + $0xc0] sm:$0xff] }
 0x5e0   : > { %6990 = vmatprep.subr.bf16.mxu0 %v6989_v12  ;;  %v3975_v12 = vld [vmem:[%s11655_s10 + $0x130] sm:$0xff] }
 0x5e1   : > { %v7171_v38 = vpack.c.bf16 %v3976_v13, %v3975_v12  ;;  %v7143_v12 = vpack.c.bf16 %v3944_v25, %v3943_v6  ;;  %v5787_v6 = vld [vmem:[%s11655_s10 + $0x2f8] sm:$0xff]  ;;  %v5788_v25 = vld [vmem:[%s11655_s10 + $0x300] sm:$0xff] }
 0x5e3   : > { %6992 = vmatpush1.bf16.msra.mxu0 %v6991_v18  ;;  %v7174_v18 = vpack.c.bf16 %v3978_v15, %v3977_v14  ;;  %v3946_v14 = vld [vmem:[%s11655_s10 + $0x48] sm:$0xff]  ;;  %v3963_v15 = vld [vmem:[%s11655_s10 + $0xd0] sm:$0xff] }
 0x5e4   : > { %6994 = vmatprep.subr.bf16.mxu0 %v6993_v19  ;;  %v3979_v19 = vld [vmem:[%s11655_s10 + $0x150] sm:$0xff] }
 0x5e5   : > { %v7177_v46 = vpack.c.bf16 %v3980_v20, %v3979_v19 }
 0x5e7   : > { %6996 = vmatpush1.bf16.msra.mxu0 %v6995_v21  ;;  %v7180_v21 = vpack.c.bf16 %v3982_v39, %v3981_v44  ;;  %v3948_v44 = vld [vmem:[%s11655_s10 + $0x58] sm:$0xff]  ;;  %v3965_v39 = vld [vmem:[%s11655_s10 + $0xe0] sm:$0xff] }
 0x5e8   : > { %6998 = vmatprep.subr.bf16.mxu0 %v6997_v22  ;;  %v3983_v22 = vld [vmem:[%s11655_s10 + $0x170] sm:$0xff] }
 0x5e9   : > { %v7183_v29 = vpack.c.bf16 %v3984_v28, %v3983_v22 }
 0x5eb   : > { %7000 = vmatpush1.bf16.msra.mxu0 %v6999_v33  ;;  %v7186_v33 = vpack.c.bf16 %v3986_v32, %v3985_v30  ;;  %v3950_v30 = vld [vmem:[%s11655_s10 + $0x68] sm:$0xff] }
 0x5ec   : > { %7002 = vmatprep.subr.bf16.mxu0 %v7001_v34  ;;  %v3987_v34 = vld [vmem:[%s11655_s10 + $0x190] sm:$0xff] }
 0x5ed   : > { %v7189_v37 = vpack.c.bf16 %v3988_v36, %v3987_v34  ;;  %v3967_v36 = vld [vmem:[%s11655_s10 + $0xf0] sm:$0xff] }
 0x5ef   : > { %7004 = vmatpush1.bf16.msra.mxu0 %v7003_v41  ;;  %v7192_v41 = vpack.c.bf16 %v3990_v40, %v3989_v17 }
 0x5f0   : > { %7006 = vmatprep.subr.bf16.mxu0 %v7005_v53  ;;  %v3991_v53 = vld [vmem:[%s11655_s10 + $0x1b0] sm:$0xff] }
 0x5f1   : > { %v7195_v43 = vpack.c.bf16 %v3992_v42, %v3991_v53  ;;  %v3951_v53 = vld [vmem:[%s11655_s10 + $0x70] sm:$0xff] }
 0x5f3   : > { %7008 = vmatpush1.bf16.msra.mxu0 %v7007_v48  ;;  %v3953_v48 = vld [vmem:[%s11655_s10 + $0x80] sm:$0xff] }
 0x5f4   : > { %7010 = vmatprep.subr.bf16.mxu0 %v7009_v49  ;;  %v3954_v49 = vld [vmem:[%s11655_s10 + $0x88] sm:$0xff] }
 0x5f5   : > { %v7129_v52 = vpack.c.bf16 %v3954_v49, %v3953_v48  ;;  %v5780_v48 = vld [vmem:[%s11655_s10 + $0x2c0] sm:$0xff]  ;;  %v5781_v49 = vld [vmem:[%s11655_s10 + $0x2c8] sm:$0xff] }
 0x5f7   : > { %7012 = vmatpush1.bf16.msra.mxu0 %v7011_v59  ;;  %v3956_v59 = vld [vmem:[%s11655_s10 + $0x98] sm:$0xff] }
 0x5f8   : > { %7014 = vmatprep.subr.bf16.mxu0 %v7013_v60  ;;  %v7133_v60 = vpack.c.bf16 %v3956_v59, %v3955_v57 }
 0x5fb   : > { %7016 = vmatpush1.bf16.msra.mxu0 %v7015_v63  ;;  %v7135_v63 = vpack.c.bf16 %v3940_v62, %v3939_v61  ;;  %v7230_v61 = vpack.c.bf16 %v5781_v49, %v5780_v48  ;;  %v5859_v49 = vld [vmem:[%s11655_s10 + $0x4b8] sm:$0xff] }
 0x5fe   : > { %3568 = vmatmul.mubr.f32.vlgmr.msra.gmra.mrb[22].mxu0 %v9542_v31  ;;  %v10939_v31 = vld [vmem:[%s11651_s6 + $0x28] sm:$0x3f] }
 0x5ff   : > { %3801 = vmatprep.mubr.f32.mxu0 %v7431_v7 }
 0x652   : > { %v3711_v0 = vpop.f32.mrb[18].mxu1 }
 0x653   : > { %v3713_v1 = vpop.f32.mrb[19].mxu1 }
 0x654   : > { %5742 = vmatprep.subr.msk.mxu1 %vm2868_vm4, %v3713_v1  ;;  %v3958_v1 = vld [vmem:[%s11655_s10 + $0xa8] sm:$0xff] }
 0x655   : > { %5743 = vmatpush1.msk.msra.mxu1 %vm2868_vm4, %v3711_v0  ;;  %v3957_v0 = vld [vmem:[%s11655_s10 + $0xa0] sm:$0xff] }
 0x656   : > { %5744 = vmatmul.mubr.msk.f32.vlgmr.msra.gmra.mrb[14].mxu1 %vm2861_vm5, %v10929_v16  ;;  %7161 = vmatprep.subr.bf16.mxu1 %v7432_v35 }
 0x657   : > { %3884 = vmatprep.mubr.f32.mxu1 %v7431_v7  ;;  %7163 = vmatpush1.bf16.msra.mxu1 %v7162_v5  ;;  %v3960_v5 = vld [vmem:[%s11655_s10 + $0xb8] sm:$0xff] }
 0x658   : > { %7164 = vmatprep.subr.bf16.mxu1 %v7432_v35 }
 0x659   : > { %v10941_v50 = vpop.f32.mrb[18].mxu0 }
 0x65a   : > { %5745 = vmatmul.mubr.msk.f32.gmra.mrb[16].mxu1 %vm2861_vm5, %v10939_v31  ;;  %v10954_v4 = vpop.f32.mrb[19].mxu0 }
 0x65b   : > { %7166 = vmatpush1.bf16.msra.mxu1 %v7165_v58  ;;  %v7141_v58 = vpack.c.bf16 %v3960_v5, %v3959_v3  ;;  %v5786_v5 = vld [vmem:[%s11655_s10 + $0x2f0] sm:$0xff] }
 0x65c   : > { %7167 = vmatprep.subr.bf16.mxu1 %v7432_v35 }
 0x65d   : > { %v10960_v8 = vpop.f32.mrb[20].mxu0 }
 0x65e   : > { %v10969_v10 = vpop.f32.mrb[21].mxu0 }
 0x65f   : > { %7169 = vmatpush1.bf16.msra.mxu1 %v7168_v11  ;;  %v3962_v11 = vld [vmem:[%s11655_s10 + $0xc8] sm:$0xff] }
 0x660   : > { %7170 = vmatprep.subr.bf16.mxu1 %v7432_v35  ;;  %v7145_v13 = vpack.c.bf16 %v3962_v11, %v3961_v9  ;;  %v5789_v9 = vld [vmem:[%s11655_s10 + $0x308] sm:$0xff] }
 0x661   : > { %v7242_v11 = vpack.c.bf16 %v5789_v9, %v5788_v25  ;;  %v5874_v9 = vld [vmem:[%s11655_s10 + $0x530] sm:$0xff] }
 0x663   : > { %7172 = vmatpush1.bf16.msra.mxu1 %v7171_v38  ;;  %v3945_v38 = vld [vmem:[%s11655_s10 + $0x40] sm:$0xff] }
 0x664   : > { %7173 = vmatprep.subr.bf16.mxu1 %v7432_v35  ;;  %v7147_v19 = vpack.c.bf16 %v3946_v14, %v3945_v38  ;;  %v5792_v14 = vld [vmem:[%s11655_s10 + $0x320] sm:$0xff] }
 0x667   : > { %7175 = vmatpush1.bf16.msra.mxu1 %v7174_v18  ;;  %v3964_v18 = vld [vmem:[%s11655_s10 + $0xd8] sm:$0xff] }
 0x668   : > { %7176 = vmatprep.subr.bf16.mxu1 %v7432_v35  ;;  %v7149_v20 = vpack.c.bf16 %v3964_v18, %v3963_v15  ;;  %v5793_v15 = vld [vmem:[%s11655_s10 + $0x328] sm:$0xff] }
 0x669   : > { %v7248_v18 = vpack.c.bf16 %v5793_v15, %v5792_v14 }
 0x66b   : > { %7178 = vmatpush1.bf16.msra.mxu1 %v7177_v46  ;;  %v3947_v46 = vld [vmem:[%s11655_s10 + $0x50] sm:$0xff] }
 0x66c   : > { %7179 = vmatprep.subr.bf16.mxu1 %v7432_v35  ;;  %v7151_v22 = vpack.c.bf16 %v3948_v44, %v3947_v46  ;;  %v5796_v44 = vld [vmem:[%s11655_s10 + $0x340] sm:$0xff] }
 0x66f   : > { %7181 = vmatpush1.bf16.msra.mxu1 %v7180_v21  ;;  %v3966_v21 = vld [vmem:[%s11655_s10 + $0xe8] sm:$0xff] }
 0x670   : > { %7182 = vmatprep.subr.bf16.mxu1 %v7432_v35  ;;  %v7153_v28 = vpack.c.bf16 %v3966_v21, %v3965_v39  ;;  %v5797_v39 = vld [vmem:[%s11655_s10 + $0x348] sm:$0xff] }
 0x671   : > { %v7254_v21 = vpack.c.bf16 %v5797_v39, %v5796_v44  ;;  %v5750_v39 = vld [vmem:[%s11655_s10 + $0x1d0] sm:$0xff] }
 0x673   : > { %7184 = vmatpush1.bf16.msra.mxu1 %v7183_v29  ;;  %v3949_v29 = vld [vmem:[%s11655_s10 + $0x60] sm:$0xff] }
 0x674   : > { %7185 = vmatprep.subr.bf16.mxu1 %v7432_v35  ;;  %v7155_v32 = vpack.c.bf16 %v3950_v30, %v3949_v29  ;;  %v5800_v30 = vld [vmem:[%s11655_s10 + $0x360] sm:$0xff] }
 0x677   : > { %7187 = vmatpush1.bf16.msra.mxu1 %v7186_v33  ;;  %v11130_v33 = vld [vmem:[%s11653_s8] sm:$0xf] }
 0x678   : > { %7188 = vmatprep.subr.bf16.mxu1 %v7432_v35  ;;  %v3912_v34 = vrot.slane %v11130_v33, %v1817_v51  ;;  %v3916_v40 = vrot.slane %v11130_v33, %v1821_v27  ;;  %v3952_v51 = vld [vmem:[%s11655_s10 + $0x78] sm:$0xff] }
 0x67b   : > { %7190 = vmatpush1.bf16.msra.mxu1 %v7189_v37  ;;  %v3968_v37 = vld [vmem:[%s11655_s10 + $0xf8] sm:$0xff] }
 0x67c   : > { %7191 = vmatprep.subr.bf16.mxu1 %v7432_v35 }
 0x67f   : > { %7193 = vmatpush1.bf16.msra.mxu1 %v7192_v41  ;;  %v7157_v41 = vpack.c.bf16 %v3968_v37, %v3967_v36  ;;  %v5802_v36 = vld [vmem:[%s11655_s10 + $0x370] sm:$0xff]  ;;  %v5803_v37 = vld [vmem:[%s11655_s10 + $0x378] sm:$0xff] }
 0x680   : > { %7194 = vmatprep.subr.bf16.mxu1 %v7432_v35 }
 0x683   : > { %7196 = vmatpush1.bf16.msra.mxu1 %v7195_v43 }
 0x684   : > { %7229 = vmatprep.subr.bf16.mxu1 %v7432_v35 }
 0x6d1   : > { %v3569_v45 = vpop.f32.mrb[22].mxu0 }
 0x6d2   : > { %v3571_v47 = vpop.f32.mrb[23].mxu0 }
 0x6d3   : > { %5738 = vmatprep.subr.msk.mxu0 %vm2868_vm4, %v3571_v47 }
 0x6d4   : > { %5739 = vmatpush1.msk.msra.mxu0 %vm2868_vm4, %v3569_v45  ;;  %v7159_v45 = vpack.c.bf16 %v3952_v51, %v3951_v53  ;;  %v5854_v51 = vld [vmem:[%s11655_s10 + $0x490] sm:$0xff] }
 0x6d5   : > { %5740 = vmatmul.mubr.msk.f32.vlgmr.msra.gmra.mrb[14].mxu0 %vm2861_vm5, %v10929_v16  ;;  %7130 = vmatprep.subr.bf16.mxu0 %v7129_v52  ;;  %v7137_v16 = vpack.c.bf16 %v3958_v1, %v3957_v0  ;;  %v5764_v52 = vld [vmem:[%s11655_s10 + $0x240] sm:$0xff]  ;;  %v5782_v0 = vld [vmem:[%s11655_s10 + $0x2d0] sm:$0xff]  ;;  %v5783_v1 = vld [vmem:[%s11655_s10 + $0x2d8] sm:$0xff] }
 0x6d6   : > { %3807 = vmatprep.mubr.f32.mxu0 %v7431_v7  ;;  %v3938_v7 = vld [vmem:[%s11655_s10 + $0x8] sm:$0xff] }
 0x6d7   : > { %v7131_v56 = vpack.c.bf16 %v3938_v7, %v3937_v54 }
 0x6d9   : > { %5741 = vmatmul.mubr.msk.f32.gmra.mrb[16].mxu0 %vm2861_vm5, %v10939_v31  ;;  %v3941_v31 = vld [vmem:[%s11655_s10 + $0x20] sm:$0xff] }
 0x6da   : > { %7132 = vmatpush3.bf16.msra.mxu0 %v7131_v56  ;;  %v7139_v2 = vpack.c.bf16 %v3942_v55, %v3941_v31  ;;  %v5784_v55 = vld [vmem:[%s11655_s10 + $0x2e0] sm:$0xff] }
 0x6db   : > { %7134 = vmatprep.subr.bf16.mxu0 %v7133_v60 }
 0x6de   : > { %7136 = vmatpush3.bf16.msra.mxu0 %v7135_v63 }
 0x6df   : > { %7138 = vmatprep.subr.bf16.mxu0 %v7137_v16 }
 0x6e2   : > { %7140 = vmatpush3.bf16.msra.mxu0 %v7139_v2  ;;  %v5785_v2 = vld [vmem:[%s11655_s10 + $0x2e8] sm:$0xff] }
 0x6e3   : > { %7142 = vmatprep.subr.bf16.mxu0 %v7141_v58  ;;  %v7236_v3 = vpack.c.bf16 %v5785_v2, %v5784_v55  ;;  %v7239_v58 = vpack.c.bf16 %v5787_v6, %v5786_v5  ;;  %v5870_v2 = vld [vmem:[%s11655_s10 + $0x510] sm:$0xff]  ;;  %v5872_v6 = vld [vmem:[%s11655_s10 + $0x520] sm:$0xff] }
 0x6e6   : > { %7144 = vmatpush3.bf16.msra.mxu0 %v7143_v12  ;;  %v5790_v12 = vld [vmem:[%s11655_s10 + $0x310] sm:$0xff] }
 0x6e7   : > { %7146 = vmatprep.subr.bf16.mxu0 %v7145_v13  ;;  %v5791_v13 = vld [vmem:[%s11655_s10 + $0x318] sm:$0xff] }
 0x6e8   : > { %v7245_v38 = vpack.c.bf16 %v5791_v13, %v5790_v12  ;;  %v3904_v13 = vrot.slane %v11130_v33, %v1809_v24  ;;  %v5766_v24 = vld [vmem:[%s11655_s10 + $0x250] sm:$0xff] }
 0x6e9   : > { %v7201_v44 = vpack.c.bf16 %v5767_v23, %v5766_v24 }
 0x6ea   : > { %7148 = vmatpush3.bf16.msra.mxu0 %v7147_v19  ;;  %v5794_v19 = vld [vmem:[%s11655_s10 + $0x330] sm:$0xff] }
 0x6eb   : > { %7150 = vmatprep.subr.bf16.mxu0 %v7149_v20  ;;  %v5795_v20 = vld [vmem:[%s11655_s10 + $0x338] sm:$0xff] }
 0x6ec   : > { %v7251_v46 = vpack.c.bf16 %v5795_v20, %v5794_v19 }
 0x6ee   : > { %7152 = vmatpush3.bf16.msra.mxu0 %v7151_v22  ;;  %v5798_v22 = vld [vmem:[%s11655_s10 + $0x350] sm:$0xff] }
 0x6ef   : > { %7154 = vmatprep.subr.bf16.mxu0 %v7153_v28  ;;  %v5799_v28 = vld [vmem:[%s11655_s10 + $0x358] sm:$0xff] }
 0x6f0   : > { %v7257_v29 = vpack.c.bf16 %v5799_v28, %v5798_v22  ;;  %v5768_v28 = vld [vmem:[%s11655_s10 + $0x260] sm:$0xff] }
 0x6f2   : > { %7156 = vmatpush3.bf16.msra.mxu0 %v7155_v32  ;;  %v5801_v32 = vld [vmem:[%s11655_s10 + $0x368] sm:$0xff] }
 0x6f3   : > { %7158 = vmatprep.subr.bf16.mxu0 %v7157_v41  ;;  %v5853_v41 = vld [vmem:[%s11655_s10 + $0x488] sm:$0xff] }
 0x6f6   : > { %7160 = vmatpush3.bf16.msra.mxu0 %v7159_v45  ;;  %v5856_v45 = vld [vmem:[%s11655_s10 + $0x4a0] sm:$0xff] }
 0x729   : > { %v3880_v17 = vpop.f32.mrb[14].mxu1 }
 0x72a   : > { %v7353_v42 = vadd.f32 %v3880_v17, %v10941_v50  ;;  %v3882_v43 = vpop.f32.mrb[15].mxu1  ;;  %v5765_v50 = vld [vmem:[%s11655_s10 + $0x248] sm:$0xff]  ;;  %v7263_v17 = vpack.c.bf16 %v5803_v37, %v5802_v36  ;;  %v5752_v37 = vld [vmem:[%s11655_s10 + $0x1e0] sm:$0xff] }
 0x72b   : > { %v7354_v47 = vadd.f32 %v3882_v43, %v10954_v4  ;;  %v7197_v7 = vpack.c.bf16 %v5765_v50, %v5764_v52  ;;  %v5860_v50 = vld [vmem:[%s11655_s10 + $0x4c0] sm:$0xff] }
 0x72c   : > { %v3923_v27 = vadd.f32 %v7353_v42, %v3912_v34  ;;  %v5855_v42 = vld [vmem:[%s11655_s10 + $0x498] sm:$0xff] }
 0x72d   : > { %v3924_v4 = vadd.f32 %v7354_v47, %v3916_v40  ;;  %v3886_v54 = vpop.f32.mrb[16].mxu1  ;;  %7198 = vmatprep.subr.bf16.mxu0 %v7197_v7  ;;  %v7313_v43 = vpack.c.bf16 %v5855_v42, %v5854_v51  ;;  %v5857_v47 = vld [vmem:[%s11655_s10 + $0x4a8] sm:$0xff]  ;;  %v5862_v7 = vld [vmem:[%s11655_s10 + $0x4d0] sm:$0xff] }
 0x72e   : > { %v7355_v56 = vadd.f32 %v3886_v54, %v10960_v8  ;;  %v3888_v57 = vpop.f32.mrb[17].mxu1  ;;  %v11168_v62 = vmax.f32 %v3923_v27, 0.0  ;;  %v7316_v48 = vpack.c.bf16 %v5857_v47, %v5856_v45  ;;  %v5858_v27 = vld [vmem:[%s11655_s10 + $0x4b0] sm:$0xff]  ;;  %v5772_v45 = vld [vmem:[%s11655_s10 + $0x280] sm:$0xff]  ;;  %v5773_v47 = vld [vmem:[%s11655_s10 + $0x288] sm:$0xff] }
 0x72f   : > { %v11165_v59 = vmax.f32 %v3924_v4, 0.0  ;;  %v7356_v60 = vadd.f32 %v3888_v57, %v10969_v10  ;;  %v7233_v10 = vpack.c.bf16 %v5783_v1, %v5782_v0  ;;  %v7319_v52 = vpack.c.bf16 %v5859_v49, %v5858_v27  ;;  %v5861_v4 = vld [vmem:[%s11655_s10 + $0x4c8] sm:$0xff]  ;;  %v5867_v0 = vld [vmem:[%s11655_s10 + $0x4f8] sm:$0xff]  ;;  %v5754_v42 = vld [vmem:[%s11655_s10 + $0x1f0] sm:$0xff] }
 0x730   : > { %v3927_v63 = vadd.f32 %v7355_v56, %v3912_v34  ;;  %v7260_v34 = vpack.c.bf16 %v5801_v32, %v5800_v30  ;;  %v7322_v54 = vpack.c.bf16 %v5861_v4, %v5860_v50  ;;  %v5863_v56 = vld [vmem:[%s11655_s10 + $0x4d8] sm:$0xff]  ;;  %v7213_v27 = vpack.c.bf16 %v5773_v47, %v5772_v45  ;;  %v5756_v49 = vld [vmem:[%s11655_s10 + $0x200] sm:$0xff]  ;;  %v5774_v50 = vld [vmem:[%s11655_s10 + $0x290] sm:$0xff] }
 0x731   : > { %v3928_v16 = vadd.f32 %v7356_v60, %v3916_v40  ;;  %5746 = vmatprep.mubr.msk.f32.mxu1 %vm2059_vm3, %v11165_v59  ;;  %v5852_v40 = vld [vmem:[%s11655_s10 + $0x480] sm:$0xff]  ;;  %v7325_v57 = vpack.c.bf16 %v5863_v56, %v5862_v7  ;;  %v5865_v60 = vld [vmem:[%s11655_s10 + $0x4e8] sm:$0xff]  ;;  %v5775_v4 = vld [vmem:[%s11655_s10 + $0x298] sm:$0xff] }
 0x732   : > { %4139 = vmatmul.mubr.f32.vlgmr.msra.gmra.mrb[20].mxu1 %v11168_v62  ;;  %v11181_v31 = vmax.f32 %v3927_v63, 0.0  ;;  %v7310_v53 = vpack.c.bf16 %v5853_v41, %v5852_v40  ;;  %v5866_v63 = vld [vmem:[%s11655_s10 + $0x4f0] sm:$0xff]  ;;  %v5771_v41 = vld [vmem:[%s11655_s10 + $0x278] sm:$0xff]  ;;  %v7217_v7 = vpack.c.bf16 %v5775_v4, %v5774_v50 }
 0x733   : > { %v11179_v8 = vmax.f32 %v3928_v16, 0.0  ;;  %7231 = vmatpush1.bf16.msra.mxu1 %v7230_v61  ;;  %v7331_v1 = vpack.c.bf16 %v5867_v0, %v5866_v63  ;;  %v5868_v16 = vld [vmem:[%s11655_s10 + $0x500] sm:$0xff]  ;;  %v5770_v40 = vld [vmem:[%s11655_s10 + $0x270] sm:$0xff]  ;;  %v5839_v4 = vld [vmem:[%s11655_s10 + $0x418] sm:$0xff] }
 0x734   : > { %7232 = vmatprep.subr.bf16.mxu1 %v7432_v35  ;;  %v7209_v51 = vpack.c.bf16 %v5771_v41, %v5770_v40  ;;  %v5758_v56 = vld [vmem:[%s11655_s10 + $0x210] sm:$0xff]  ;;  %v5760_v0 = vld [vmem:[%s11655_s10 + $0x220] sm:$0xff] }
 0x735   : > { %5747 = vmatprep.mubr.msk.f32.mxu1 %vm2059_vm3, %v11179_v8  ;;  %v5808_v45 = vld [vmem:[%s11654_s9 + $0x30] sm:$0xff] }
 0x736   : > { %4144 = vmatmul.mubr.f32.gmra.mrb[22].mxu1 %v11181_v31  ;;  %v5838_v50 = vld [vmem:[%s11655_s10 + $0x410] sm:$0xff] }
 0x737   : > { %7234 = vmatpush1.bf16.msra.mxu1 %v7233_v10  ;;  %5804 = vmatprep.mubr.msk.f32.mxu1 %vm2059_vm3, %v11165_v59  ;;  %v5869_v10 = vld [vmem:[%s11655_s10 + $0x508] sm:$0xff] }
 0x738   : > { %7235 = vmatprep.subr.bf16.mxu1 %v7432_v35  ;;  %v7334_v55 = vpack.c.bf16 %v5869_v10, %v5868_v16  ;;  %v5778_v16 = vld [vmem:[%s11655_s10 + $0x2b0] sm:$0xff]  ;;  %v5779_v10 = vld [vmem:[%s11655_s10 + $0x2b8] sm:$0xff] }
 0x73b   : > { %7237 = vmatpush1.bf16.msra.mxu1 %v7236_v3  ;;  %v5871_v3 = vld [vmem:[%s11655_s10 + $0x518] sm:$0xff] }
 0x73c   : > { %7238 = vmatprep.subr.bf16.mxu1 %v7432_v35  ;;  %v7337_v5 = vpack.c.bf16 %v5871_v3, %v5870_v2  ;;  %v7225_v2 = vpack.c.bf16 %v5779_v10, %v5778_v16  ;;  %v5762_v3 = vld [vmem:[%s11655_s10 + $0x230] sm:$0xff]  ;;  %v5824_v10 = vld [vmem:[%s11655_s10 + $0x3a0] sm:$0xff] }
 0x73f   : > { %7240 = vmatpush1.bf16.msra.mxu1 %v7239_v58  ;;  %v5873_v58 = vld [vmem:[%s11655_s10 + $0x528] sm:$0xff] }
 0x740   : > { %7241 = vmatprep.subr.bf16.mxu1 %v7432_v35  ;;  %v7340_v25 = vpack.c.bf16 %v5873_v58, %v5872_v6 }
 0x743   : > { %7243 = vmatpush1.bf16.msra.mxu1 %v7242_v11  ;;  %v5875_v11 = vld [vmem:[%s11655_s10 + $0x538] sm:$0xff] }
 0x744   : > { %7244 = vmatprep.subr.bf16.mxu1 %v7432_v35  ;;  %v7343_v12 = vpack.c.bf16 %v5875_v11, %v5874_v9 }
 0x747   : > { %7246 = vmatpush1.bf16.msra.mxu1 %v7245_v38  ;;  %v3908_v38 = vrot.slane %v11130_v33, %v1813_v26 }
 0x748   : > { %7247 = vmatprep.subr.bf16.mxu1 %v7432_v35 }
 0x74b   : > { %7249 = vmatpush1.bf16.msra.mxu1 %v7248_v18 }
 0x74c   : > { %7250 = vmatprep.subr.bf16.mxu1 %v7432_v35 }
 0x74f   : > { %7252 = vmatpush1.bf16.msra.mxu1 %v7251_v46 }
 0x750   : > { %7253 = vmatprep.subr.bf16.mxu1 %v7432_v35 }
 0x753   : > { %7255 = vmatpush1.bf16.msra.mxu1 %v7254_v21  ;;  %v5751_v21 = vld [vmem:[%s11655_s10 + $0x1d8] sm:$0xff] }
 0x754   : > { %7256 = vmatprep.subr.bf16.mxu1 %v7432_v35  ;;  %v7203_v32 = vpack.c.bf16 %v5751_v21, %v5750_v39 }
 0x757   : > { %7258 = vmatpush1.bf16.msra.mxu1 %v7257_v29  ;;  %v5769_v29 = vld [vmem:[%s11655_s10 + $0x268] sm:$0xff] }
 0x758   : > { %7259 = vmatprep.subr.bf16.mxu1 %v7432_v35  ;;  %v7205_v36 = vpack.c.bf16 %v5769_v29, %v5768_v28 }
 0x75b   : > { %7261 = vmatpush1.bf16.msra.mxu1 %v7260_v34 }
 0x75c   : > { %7262 = vmatprep.subr.bf16.mxu1 %v7432_v35 }
 0x75f   : > { %7264 = vmatpush1.bf16.msra.mxu1 %v7263_v17  ;;  %v5753_v17 = vld [vmem:[%s11655_s10 + $0x1e8] sm:$0xff] }
 0x760   : > { %7309 = vmatprep.subr.bf16.mxu1 %v7432_v35 }
 0x762   : > { %4350 = vmatmul.mubr.f32.vlgmr.msra.gmra.mrb[24].mxu1 %v11168_v62 }
 0x763   : > { %5805 = vmatprep.mubr.msk.f32.mxu1 %vm2059_vm3, %v11179_v8  ;;  %7311 = vmatpush1.bf16.msra.mxu1 %v7310_v53  ;;  %v7207_v53 = vpack.c.bf16 %v5753_v17, %v5752_v37 }
 0x764   : > { %7312 = vmatprep.subr.bf16.mxu1 %v7432_v35 }
 0x766   : > { %4355 = vmatmul.mubr.f32.gmra.mrb[26].mxu1 %v11181_v31 }
 0x767   : > { %7314 = vmatpush1.bf16.msra.mxu1 %v7313_v43  ;;  %5876 = vmatprep.mubr.msk.f32.mxu1 %vm2059_vm3, %v11165_v59  ;;  %v5864_v59 = vld [vmem:[%s11655_s10 + $0x4e0] sm:$0xff]  ;;  %v5755_v43 = vld [vmem:[%s11655_s10 + $0x1f8] sm:$0xff] }
 0x768   : > { %7315 = vmatprep.subr.bf16.mxu1 %v7432_v35  ;;  %v7328_v61 = vpack.c.bf16 %v5865_v60, %v5864_v59  ;;  %v5776_v59 = vld [vmem:[%s11655_s10 + $0x2a0] sm:$0xff]  ;;  %v5777_v60 = vld [vmem:[%s11655_s10 + $0x2a8] sm:$0xff] }
 0x769   : > { %v7221_v63 = vpack.c.bf16 %v5777_v60, %v5776_v59  ;;  %v5822_v59 = vld [vmem:[%s11655_s10 + $0x390] sm:$0xff]  ;;  %v5823_v60 = vld [vmem:[%s11655_s10 + $0x398] sm:$0xff] }
 0x76b   : > { %7317 = vmatpush1.bf16.msra.mxu1 %v7316_v48  ;;  %v7211_v48 = vpack.c.bf16 %v5755_v43, %v5754_v42  ;;  %v5837_v42 = vld [vmem:[%s11655_s10 + $0x408] sm:$0xff] }
 0x76c   : > { %7318 = vmatprep.subr.bf16.mxu1 %v7432_v35  ;;  %v5807_v43 = vld [vmem:[%s11654_s9 + $0x28] sm:$0xff] }
 0x76f   : > { %7320 = vmatpush1.bf16.msra.mxu1 %v7319_v52  ;;  %v5757_v52 = vld [vmem:[%s11655_s10 + $0x208] sm:$0xff] }
 0x770   : > { %7321 = vmatprep.subr.bf16.mxu1 %v7432_v35 }
 0x773   : > { %7323 = vmatpush1.bf16.msra.mxu1 %v7322_v54  ;;  %v7215_v54 = vpack.c.bf16 %v5757_v52, %v5756_v49  ;;  %v5820_v49 = vld [vmem:[%s11655_s10 + $0x380] sm:$0xff]  ;;  %v5821_v52 = vld [vmem:[%s11655_s10 + $0x388] sm:$0xff] }
 0x774   : > { %7324 = vmatprep.subr.bf16.mxu1 %v7432_v35 }
 0x777   : > { %7326 = vmatpush1.bf16.msra.mxu1 %v7325_v57  ;;  %v5759_v57 = vld [vmem:[%s11655_s10 + $0x218] sm:$0xff] }
 0x778   : > { %7327 = vmatprep.subr.bf16.mxu1 %v7432_v35 }
 0x77b   : > { %7329 = vmatpush1.bf16.msra.mxu1 %v7328_v61  ;;  %v7219_v61 = vpack.c.bf16 %v5759_v57, %v5758_v56  ;;  %v4151_v56 = vld [vmem:[%s11654_s9 + $0x10] sm:$0xff]  ;;  %v7281_v57 = vpack.c.bf16 %v5839_v4, %v5838_v50 }
 0x77c   : > { %7330 = vmatprep.subr.bf16.mxu1 %v7432_v35 }
 0x77f   : > { %7332 = vmatpush1.bf16.msra.mxu1 %v7331_v1  ;;  %v5761_v1 = vld [vmem:[%s11655_s10 + $0x228] sm:$0xff] }
 0x780   : > { %7333 = vmatprep.subr.bf16.mxu1 %v7432_v35 }
 0x783   : > { %7335 = vmatpush1.bf16.msra.mxu1 %v7334_v55  ;;  %v7223_v55 = vpack.c.bf16 %v5761_v1, %v5760_v0  ;;  %v4152_v0 = vld [vmem:[%s11654_s9 + $0x18] sm:$0xf]  ;;  %v7283_v1 = vpack.c.bf16 %v5823_v60, %v5822_v59 }
 0x784   : > { %7336 = vmatprep.subr.bf16.mxu1 %v7432_v35 }
 0x787   : > { %7338 = vmatpush1.bf16.msra.mxu1 %v7337_v5  ;;  %v5763_v5 = vld [vmem:[%s11655_s10 + $0x238] sm:$0xff] }
 0x788   : > { %7339 = vmatprep.subr.bf16.mxu1 %v7432_v35  ;;  %v7227_v6 = vpack.c.bf16 %v5763_v5, %v5762_v3  ;;  %v5843_v3 = vld [vmem:[%s11655_s10 + $0x438] sm:$0xff] }
 0x78b   : > { %7341 = vmatpush1.bf16.msra.mxu1 %v7340_v25 }
 0x78c   : > { %7342 = vmatprep.subr.bf16.mxu1 %v7432_v35  ;;  %v5748_v35 = vld [vmem:[%s11655_s10 + $0x1c0] sm:$0xff] }
 0x78f   : > { %7344 = vmatpush1.bf16.msra.mxu1 %v7343_v12  ;;  %v5806_v12 = vld [vmem:[%s11654_s9 + $0x20] sm:$0xff] }
 0x792   : > { %4764 = vmatmul.mubr.f32.vlgmr.msra.gmra.mrb[28].mxu1 %v11168_v62  ;;  %v5749_v62 = vld [vmem:[%s11655_s10 + $0x1c8] sm:$0xff] }
 0x793   : > { %5877 = vmatprep.mubr.msk.f32.mxu1 %vm2059_vm3, %v11179_v8 }
 0x796   : > { %4769 = vmatmul.mubr.f32.gmra.mrb[30].mxu1 %v11181_v31  ;;  %v7199_v31 = vpack.c.bf16 %v5749_v62, %v5748_v35 }
 0x7a8   : > { %v3803_v14 = vpop.f32.mrb[14].mxu0 }
 0x7a9   : > { %v3921_v15 = vadd.f32 %v3904_v13, %v3803_v14  ;;  %v3805_v18 = vpop.f32.mrb[15].mxu0 }
 0x7aa   : > { %v3922_v8 = vadd.f32 %v3908_v38, %v3805_v18 }
 0x7ab   : > { %v11373_v19 = vmax.f32 %v3921_v15, 0.0 }
 0x7ac   : > { %v11371_v26 = vmax.f32 %v3922_v8, 0.0  ;;  %v3809_v33 = vpop.f32.mrb[16].mxu0 }
 0x7ad   : > { %v3925_v20 = vadd.f32 %v3904_v13, %v3809_v33  ;;  %v3811_v46 = vpop.f32.mrb[17].mxu0 }
 0x7ae   : > { %v3926_v22 = vadd.f32 %v3908_v38, %v3811_v46  ;;  %4063 = vmatprep.mubr.f32.mxu0 %v11371_v26 }
 0x7af   : > { %4064 = vmatmul.mubr.f32.vlgmr.msra.gmra.mrb[24].mxu0 %v11373_v19  ;;  %v11391_v34 = vmax.f32 %v3925_v20, 0.0 }
 0x7b0   : > { %v11389_v30 = vmax.f32 %v3926_v22, 0.0  ;;  %7200 = vmatpush3.bf16.msra.mxu0 %v7199_v31 }
 0x7b1   : > { %7202 = vmatprep.subr.bf16.mxu0 %v7201_v44 }
 0x7b2   : > { %4068 = vmatprep.mubr.f32.mxu0 %v11389_v30 }
 0x7b3   : > { %4069 = vmatmul.mubr.f32.gmra.mrb[26].mxu0 %v11391_v34 }
 0x7b4   : > { %7204 = vmatpush3.bf16.msra.mxu0 %v7203_v32  ;;  %4274 = vmatprep.mubr.f32.mxu0 %v11371_v26 }
 0x7b5   : > { %7206 = vmatprep.subr.bf16.mxu0 %v7205_v36 }
 0x7b8   : > { %7208 = vmatpush3.bf16.msra.mxu0 %v7207_v53 }
 0x7b9   : > { %7210 = vmatprep.subr.bf16.mxu0 %v7209_v51  ;;  %v5836_v51 = vld [vmem:[%s11655_s10 + $0x400] sm:$0xff] }
 0x7ba   : > { %v7277_v47 = vpack.c.bf16 %v5837_v42, %v5836_v51 }
 0x7bc   : > { %7212 = vmatpush3.bf16.msra.mxu0 %v7211_v48  ;;  %v5809_v48 = vld [vmem:[%s11654_s9 + $0x38] sm:$0xf] }
 0x7bd   : > { %7214 = vmatprep.subr.bf16.mxu0 %v7213_v27  ;;  %v4149_v27 = vld [vmem:[%s11654_s9] sm:$0xff] }
 0x7c0   : > { %7216 = vmatpush3.bf16.msra.mxu0 %v7215_v54  ;;  %v4150_v54 = vld [vmem:[%s11654_s9 + $0x8] sm:$0xff] }
 0x7c1   : > { %7218 = vmatprep.subr.bf16.mxu0 %v7217_v7  ;;  %v7279_v7 = vpack.c.bf16 %v5821_v52, %v5820_v49 }
 0x7c4   : > { %7220 = vmatpush3.bf16.msra.mxu0 %v7219_v61  ;;  %v5840_v61 = vld [vmem:[%s11655_s10 + $0x420] sm:$0xff] }
 0x7c5   : > { %7222 = vmatprep.subr.bf16.mxu0 %v7221_v63  ;;  %v5841_v63 = vld [vmem:[%s11655_s10 + $0x428] sm:$0xff] }
 0x7c6   : > { %v7285_v16 = vpack.c.bf16 %v5841_v63, %v5840_v61 }
 0x7c8   : > { %7224 = vmatpush3.bf16.msra.mxu0 %v7223_v55  ;;  %v5825_v55 = vld [vmem:[%s11655_s10 + $0x3a8] sm:$0xff] }
 0x7c9   : > { %7226 = vmatprep.subr.bf16.mxu0 %v7225_v2  ;;  %v5842_v2 = vld [vmem:[%s11655_s10 + $0x430] sm:$0xff]  ;;  %v7287_v5 = vpack.c.bf16 %v5825_v55, %v5824_v10 }
 0x7cc   : > { %7228 = vmatpush3.bf16.msra.mxu0 %v7227_v6  ;;  %v7289_v6 = vpack.c.bf16 %v5843_v3, %v5842_v2 }
 0x7cf   : > { %4275 = vmatmul.mubr.f32.vlgmr.msra.gmra.mrb[28].mxu0 %v11373_v19 }
 0x7d0   : > { %4279 = vmatprep.mubr.f32.mxu0 %v11389_v30 }
 0x7d3   : > { %4280 = vmatmul.mubr.f32.gmra.mrb[30].mxu0 %v11391_v34 }
 0x7d4   : > { %6027 = vmatprep.mubr.msk.f32.mxu0 %vm4365_vm6, %v5806_v12 }
 0x805   : > { %v4140_v58 = vpop.f32.mrb[20].mxu1 }
 0x806   : > { %v4142_v25 = vpop.f32.mrb[21].mxu1 }
 0x807   : > { %v5827_v25 = vld [vmem:[%s11655_s10 + $0x3b8] sm:$0xff] }
 0x809   : > { %v4145_v9 = vpop.f32.mrb[22].mxu1 }
 0x80a   : > { %v4147_v11 = vpop.f32.mrb[23].mxu1 }
 0x80b   : > { %v5845_v11 = vld [vmem:[%s11655_s10 + $0x448] sm:$0xff] }
 0x835   : > { %v4351_v13 = vpop.f32.mrb[24].mxu1 }
 0x836   : > { %v4353_v38 = vpop.f32.mrb[25].mxu1 }
 0x837   : > { %v5829_v38 = vld [vmem:[%s11655_s10 + $0x3c8] sm:$0xff] }
 0x839   : > { %v4356_v14 = vpop.f32.mrb[26].mxu1 }
 0x83a   : > { %v4358_v15 = vpop.f32.mrb[27].mxu1 }
 0x83b   : > { %v5847_v15 = vld [vmem:[%s11655_s10 + $0x458] sm:$0xff] }
 0x865   : > { %v11469_v18 = vpop.f32.mrb[28].mxu1 }
 0x866   : > { %v4767_v35 = vpop.f32.mrb[29].mxu1 }
 0x869   : > { %v11471_v62 = vpop.f32.mrb[30].mxu1 }
 0x86a   : > { %v4772_v8 = vpop.f32.mrb[31].mxu1 }
 0x882   : > { %v5923_v24 = vpop.f32.mrb[24].mxu0 }
 0x883   : > { %v5924_v23 = vpop.f32.mrb[25].mxu0 }
 0x884   : > { %v5925_v33 = vadd.f32 %v5924_v23, %v5923_v24  ;;  %v5830_v24 = vld [vmem:[%s11655_s10 + $0x3d0] sm:$0xff]  ;;  %v5831_v23 = vld [vmem:[%s11655_s10 + $0x3d8] sm:$0xff] }
 0x886   : > { %v4141_v31 = vadd.f32 %v5925_v33, %v4140_v58  ;;  %v5926_v20 = vpop.f32.mrb[26].mxu0  ;;  %v5826_v58 = vld [vmem:[%s11655_s10 + $0x3b0] sm:$0xff]  ;;  %v5848_v33 = vld [vmem:[%s11655_s10 + $0x460] sm:$0xff] }
 0x887   : > { %v5927_v46 = vpop.f32.mrb[27].mxu0 }
 0x888   : > { %v5928_v44 = vadd.f32 %v5927_v46, %v5926_v20  ;;  %v7299_v20 = vpack.c.bf16 %v5831_v23, %v5830_v24 }
 0x88a   : > { %v4146_v39 = vadd.f32 %v5928_v44, %v4145_v9  ;;  %v5844_v9 = vld [vmem:[%s11655_s10 + $0x440] sm:$0xff] }
 0x88b   : > { %v7293_v12 = vpack.c.bf16 %v5845_v11, %v5844_v9  ;;  %v5832_v44 = vld [vmem:[%s11655_s10 + $0x3e0] sm:$0xff] }
 0x88c   : > { %v7271_v21 = vpack.c.bf16 %v4146_v39, %v4141_v31  ;;  %v5849_v31 = vld [vmem:[%s11655_s10 + $0x468] sm:$0xff] }
 0x88d   : > { %v7301_v46 = vpack.c.bf16 %v5849_v31, %v5848_v33  ;;  %v5833_v39 = vld [vmem:[%s11655_s10 + $0x3e8] sm:$0xff] }
 0x8a2   : > { %v5961_v22 = vpop.f32.mrb[28].mxu0 }
 0x8a3   : > { %v5962_v28 = vpop.f32.mrb[29].mxu0 }
 0x8a4   : > { %v5963_v29 = vadd.f32 %v5962_v28, %v5961_v22  ;;  %v5851_v22 = vld [vmem:[%s11655_s10 + $0x478] sm:$0xff]  ;;  %v7303_v28 = vpack.c.bf16 %v5833_v39, %v5832_v44 }
 0x8a6   : > { %v4352_v32 = vadd.f32 %v5963_v29, %v4351_v13  ;;  %v5964_v36 = vpop.f32.mrb[30].mxu0  ;;  %v5828_v13 = vld [vmem:[%s11655_s10 + $0x3c0] sm:$0xff] }
 0x8a7   : > { %v5965_v37 = vpop.f32.mrb[31].mxu0  ;;  %v7295_v35 = vpack.c.bf16 %v5829_v38, %v5828_v13 }
 0x8a8   : > { %v5966_v17 = vadd.f32 %v5965_v37, %v5964_v36  ;;  %v5835_v36 = vld [vmem:[%s11655_s10 + $0x3f8] sm:$0xff] }
 0x8aa   : > { %v4357_v40 = vadd.f32 %v5966_v17, %v4356_v14  ;;  %v5846_v14 = vld [vmem:[%s11655_s10 + $0x450] sm:$0xff]  ;;  %v5878_v17 = vld [vmem:[%s11654_s9 + $0x40] sm:$0xff] }
 0x8ab   : > { %v7297_v8 = vpack.c.bf16 %v5847_v15, %v5846_v14 }
 0x8ac   : > { %v7265_v53 = vpack.c.bf16 %v4357_v40, %v4352_v32  ;;  %v5834_v32 = vld [vmem:[%s11655_s10 + $0x3f0] sm:$0xff] }
 0x8ad   : > { %v7307_v37 = vpack.c.bf16 %v5835_v36, %v5834_v32 }
 0x8ae   : > { %7267 = vmatprep.subr.msk.bf16.mxu0 %vm11473_vm9, %v7265_v53 }
 0x8af   : > { %7270 = vmatpush3.bf16.msk.msra.mxu0 %vm11473_vm9, %v7265_v53 }
 0x8b0   : > { %7273 = vmatprep.subr.msk.bf16.mxu0 %vm11473_vm9, %v7271_v21 }
 0x8b2   : > { %6028 = vmatmul.mubr.msk.f32.vlgmr.msra.gmra.mrb[32].mxu0 %vm4365_vm6, %v5807_v43 }
 0x8b3   : > { %7276 = vmatpush3.bf16.msk.msra.mxu0 %vm11473_vm9, %v7271_v21  ;;  %6030 = vmatprep.mubr.msk.f32.mxu0 %vm4365_vm6, %v5808_v45  ;;  %v5850_v21 = vld [vmem:[%s11655_s10 + $0x470] sm:$0xff] }
 0x8b4   : > { %7278 = vmatprep.subr.bf16.mxu0 %v7277_v47  ;;  %v7305_v29 = vpack.c.bf16 %v5851_v22, %v5850_v21 }
 0x8b6   : > { %6031 = vmatmul.mubr.msk.f32.gmra.mrb[34].mxu0 %vm4365_vm6, %v5809_v48 }
 0x8b7   : > { %6037 = vmatprep.mubr.msk.f32.mxu0 %vm4365_vm6, %v4149_v27 }
 0x8ba   : > { %6038 = vmatmul.mubr.msk.f32.vlgmr.msra.gmra.mrb[32].mxu0 %vm4365_vm6, %v4150_v54 }
 0x8bb   : > { %7280 = vmatpush3.bf16.msra.mxu0 %v7279_v7  ;;  %6040 = vmatprep.mubr.msk.f32.mxu0 %vm4365_vm6, %v4151_v56 }
 0x8bc   : > { %7282 = vmatprep.subr.bf16.mxu0 %v7281_v57 }
 0x8be   : > { %6041 = vmatmul.mubr.msk.f32.gmra.mrb[34].mxu0 %vm4365_vm6, %v4152_v0 }
 0x8bf   : > { %7284 = vmatpush3.bf16.msra.mxu0 %v7283_v1  ;;  %4688 = vmatprep.mubr.f32.mxu0 %v11371_v26  ;;  %v7291_v26 = vpack.c.bf16 %v5827_v25, %v5826_v58 }
 0x8c0   : > { %7286 = vmatprep.subr.bf16.mxu0 %v7285_v16 }
 0x8c3   : > { %7288 = vmatpush3.bf16.msra.mxu0 %v7287_v5 }
 0x8c4   : > { %7290 = vmatprep.subr.bf16.mxu0 %v7289_v6 }
 0x8c7   : > { %7292 = vmatpush3.bf16.msra.mxu0 %v7291_v26 }
 0x8c8   : > { %7294 = vmatprep.subr.bf16.mxu0 %v7293_v12 }
 0x8cb   : > { %7296 = vmatpush3.bf16.msra.mxu0 %v7295_v35 }
 0x8cc   : > { %7298 = vmatprep.subr.bf16.mxu0 %v7297_v8 }
 0x8cf   : > { %7300 = vmatpush3.bf16.msra.mxu0 %v7299_v20 }
 0x8d0   : > { %7302 = vmatprep.subr.bf16.mxu0 %v7301_v46 }
 0x8d3   : > { %7304 = vmatpush3.bf16.msra.mxu0 %v7303_v28 }
 0x8d4   : > { %7306 = vmatprep.subr.bf16.mxu0 %v7305_v29 }
 0x8d7   : > { %7308 = vmatpush3.bf16.msra.mxu0 %v7307_v37 }
 0x8da   : > { %4689 = vmatmul.mubr.f32.vlgmr.msra.gmra.mrb[36].mxu0 %v11373_v19 }
 0x8db   : > { %4693 = vmatprep.mubr.f32.mxu0 %v11389_v30  ;;  %v5879_v30 = vld [vmem:[%s11654_s9 + $0x48] sm:$0xff] }
 0x8de   : > { %4694 = vmatmul.mubr.f32.gmra.mrb[38].mxu0 %v11391_v34  ;;  %v5880_v34 = vld [vmem:[%s11654_s9 + $0x50] sm:$0xff] }
 0x8df   : > { %6047 = vmatprep.mubr.msk.f32.mxu0 %vm4365_vm6, %v5878_v17 }
 0x9ad   : > { %v6011_v40 = vpop.f32.mrb[36].mxu0 }
 0x9ae   : > { %v6012_v53 = vpop.f32.mrb[37].mxu0 }
 0x9af   : > { %v6013_v51 = vadd.f32 %v6012_v53, %v6011_v40 }
 0x9b1   : > { %v4766_v42 = vadd.f32 %v6013_v51, %v11469_v18  ;;  %v6014_v43 = vpop.f32.mrb[38].mxu0  ;;  %v5881_v18 = vld [vmem:[%s11654_s9 + $0x58] sm:$0xf] }
 0x9b2   : > { %v6015_v45 = vpop.f32.mrb[39].mxu0 }
 0x9b3   : > { %v6016_v47 = vadd.f32 %v6015_v45, %v6014_v43 }
 0x9b5   : > { %v4771_v19 = vadd.f32 %v6016_v47, %v11471_v62  ;;  %v5887_v62 = vld [vmem:[%s11656_s11] ss:$0 sm:$0xff] }
 0x9b7   : > { %v7345_v48 = vpack.c.bf16 %v4771_v19, %v4766_v42 }
 0x9b9   : > { %7347 = vmatprep.subr.msk.bf16.mxu0 %vm11473_vm9, %v7345_v48 }
 0x9ba   : > { %7350 = vmatpush3.bf16.msk.msra.mxu0 %vm11473_vm9, %v7345_v48 }
 0x9bd   : > { %6048 = vmatmul.mubr.msk.f32.vlgmr.msra.gmra.mrb[32].mxu0 %vm4365_vm6, %v5879_v30 }
 0x9be   : > { %6050 = vmatprep.mubr.msk.f32.mxu0 %vm4365_vm6, %v5880_v34 }
 0x9c1   : > { %6051 = vmatmul.mubr.msk.f32.gmra.mrb[34].mxu0 %vm4365_vm6, %v5881_v18 }
 0xa90   : > { %v6049_v41 = vpop.f32.mrb[32].mxu0 }
 0xa91   : > { %v4891_v27 = vadd.f32 %v6049_v41, %v5887_v62  ;;  %v4860_v49 = vpop.f32.mrb[33].mxu0 }
 0xa92   : > { %v4890_v52 = vadd.f32 %v5887_v62, %v4860_v49 }
 0xa93   : > { %v4895_v50 = vsub.f32 0.0, %v4891_v27 }
 0xa94   : > { %v4894_v4 = vsub.f32 0.0, %v4890_v52  ;;  %v6052_v54 = vpop.f32.mrb[34].mxu0 }
 0xa95   : > { %v4900_v7 = vmul.f32 1.442695, %v4895_v50  ;;  %v4893_v56 = vadd.f32 %v6052_v54, %v5887_v62  ;;  %v4870_v57 = vpop.f32.mrb[35].mxu0 }
 0xa96   : > { %v4898_v59 = vmul.f32 1.442695, %v4894_v4  ;;  %v4892_v60 = vadd.f32 %v5887_v62, %v4870_v57 }
 0xa97   : > { %7407 = vpow2.f32 %v4900_v7  ;;  %v4897_v61 = vsub.f32 0.0, %v4893_v56 }
 0xa98   : > { %7409 = vpow2.f32 %v4898_v59  ;;  %v4896_v63 = vsub.f32 0.0, %v4892_v60 }
 0xa99   : > { %v4904_v0 = vmul.f32 1.442695, %v4897_v61 }
 0xa9a   : > { %v4902_v1 = vmul.f32 1.442695, %v4896_v63 }
 0xa9b   : > { %7411 = vpow2.f32 %v4904_v0 }
 0xa9c   : > { %7413 = vpow2.f32 %v4902_v1 }
 0xaa1   : > { %v7408_v16 = vpop.eup %7407 }
 0xaa2   : > { %v7410_v10 = vpop.eup %7409  ;;  %v4907_v55 = vadd.f32 1.0, %v7408_v16 }
 0xaa3   : > { %v4906_v2 = vadd.f32 1.0, %v7410_v10 }
 0xaa4   : > { %7415 = vrcp.f32 %v4907_v55 }
 0xaa5   : > { %v7412_v3 = vpop.eup %7411  ;;  %7417 = vrcp.f32 %v4906_v2 }
 0xaa6   : > { %v7414_v5 = vpop.eup %7413  ;;  %v4909_v6 = vadd.f32 1.0, %v7412_v3 }
 0xaa7   : > { %v4908_v58 = vadd.f32 1.0, %v7414_v5 }
 0xaa8   : > { %7419 = vrcp.f32 %v4909_v6 }
 0xaa9   : > { %7421 = vrcp.f32 %v4908_v58 }
 0xaae   : > { %v7416_v25 = vpop.eup %7415 }
 0xaaf   : > { %v7418_v9 = vpop.eup %7417  ;;  %4920 = vst.msk [vmem:[%s410_s27 + $0x8] sm:$0xff] %vm4918_vm10, %v7416_v25 }
 0xab0   : > { %4919 = vst.msk [vmem:[%s410_s27] sm:$0xff] %vm4918_vm10, %v7418_v9 }
 0xab2   : > { %v7420_v11 = vpop.eup %7419 }
 0xab3   : > { %v7422_v26 = vpop.eup %7421  ;;  %4923 = vst.msk [vmem:[%s410_s27 + $0x18] sm:$0xf] %vm4922_vm11, %v7420_v11 }
 0xab4   : > { %4921 = vst.msk [vmem:[%s410_s27 + $0x10] sm:$0xff] %vm4918_vm10, %v7422_v26 }
 0xab5 PF: > { %s22_s21 = sadd.s32 1, %s7429_s21  }
 0xab6   : > { %p19_p4 = scmp.ge.s32.totalorder %s22_s21, 4  }
 0xab8   :  { %21 = sbr.rel (!%p19_p4) target bundleno = 1 (0x1), region = 110 }

</bundles_post_ra>
